<compile_context>
chip_gen: v7x
topology: tpu7x:2x2x1
jax: 0.10.0
libtpu: 0.0.40
codegen_flags: <defaults>
</compile_context>

<pallas_src>
import math

import jax
import jax.numpy as jnp
from jax.experimental import pallas as pl
from jax.experimental.pallas import tpu as pltpu

# ---------------- config (consistent with the module's __init__) ----------------
V_SIZE = 32
MAX_SEQ = 16
D_MODEL = 32
D_FF = 64
N_BLOCKS = 2
N_HEADS = 4
PAD_IDX = 0
EPS = 1e-5
NEG_INF = -1000000000.0  # matches torch masked_fill_(-1e9)
LANE = 128               # lane width / padded slab column count


# ----------------------------- packed-slab layouts -----------------------------
# Embedding slab rows: [enc_emb | enc_pos | dec_emb | dec_pos], all (*, D_MODEL).
ENC_EMB_ROW = 0
ENC_POS_ROW = V_SIZE
DEC_EMB_ROW = V_SIZE + MAX_SEQ
DEC_POS_ROW = 2 * V_SIZE + MAX_SEQ
EMB_ROWS = 2 * (V_SIZE + MAX_SEQ)

# Matrix slab: every matmul weight, column-padded to LANE. (name, rows, read_cols)
MAT_ENTRIES = []
for _i in range(N_BLOCKS):
    MAT_ENTRIES += [
        (f"enc{_i}_wqkv", D_MODEL, 3 * D_MODEL),
        (f"enc{_i}_wo", D_MODEL, D_MODEL),
        (f"enc{_i}_w1", D_MODEL, D_FF),
        (f"enc{_i}_w2", D_FF, D_MODEL),
    ]
for _i in range(N_BLOCKS):
    MAT_ENTRIES += [
        (f"dec{_i}_wqkv", D_MODEL, 3 * D_MODEL),
        (f"dec{_i}_wo_self", D_MODEL, D_MODEL),
        (f"dec{_i}_wq_x", D_MODEL, D_MODEL),
        (f"dec{_i}_wkv_x", D_MODEL, 2 * D_MODEL),
        (f"dec{_i}_wo_x", D_MODEL, D_MODEL),
        (f"dec{_i}_w1", D_MODEL, D_FF),
        (f"dec{_i}_w2", D_FF, D_MODEL),
    ]
MAT_ENTRIES += [("proj_w", D_MODEL, LANE)]   # read full 128 cols -> lane-dense logits

MAT_LAYOUT = {}
_row = 0
for _name, _rows, _cols in MAT_ENTRIES:
    MAT_LAYOUT[_name] = (_row, _rows, _cols)
    _row += _rows
MAT_ROWS = _row

# Vector slab: every 1-row tensor (biases, LN params), column-padded to LANE.
VEC_ENTRIES = []
for _i in range(N_BLOCKS):
    VEC_ENTRIES += [
        (f"enc{_i}_bqkv", 3 * D_MODEL), (f"enc{_i}_bo", D_MODEL),
        (f"enc{_i}_ln1_g", D_MODEL), (f"enc{_i}_ln1_b", D_MODEL),
        (f"enc{_i}_ln2_g", D_MODEL), (f"enc{_i}_ln2_b", D_MODEL),
        (f"enc{_i}_b1", D_FF), (f"enc{_i}_b2", D_MODEL),
    ]
VEC_ENTRIES += [("enc_lnf_g", D_MODEL), ("enc_lnf_b", D_MODEL)]
for _i in range(N_BLOCKS):
    VEC_ENTRIES += [
        (f"dec{_i}_bqkv", 3 * D_MODEL), (f"dec{_i}_bo_self", D_MODEL),
        (f"dec{_i}_bq_x", D_MODEL), (f"dec{_i}_bkv_x", 2 * D_MODEL),
        (f"dec{_i}_bo_x", D_MODEL),
        (f"dec{_i}_ln1_g", D_MODEL), (f"dec{_i}_ln1_b", D_MODEL),
        (f"dec{_i}_ln2_g", D_MODEL), (f"dec{_i}_ln2_b", D_MODEL),
        (f"dec{_i}_ln3_g", D_MODEL), (f"dec{_i}_ln3_b", D_MODEL),
        (f"dec{_i}_b1", D_FF), (f"dec{_i}_b2", D_MODEL),
    ]
VEC_ENTRIES += [("dec_lnf_g", D_MODEL), ("dec_lnf_b", D_MODEL), ("proj_b", LANE)]
VEC_LAYOUT = {name: (r, cols) for r, (name, cols) in enumerate(VEC_ENTRIES)}
VEC_ROWS = len(VEC_ENTRIES)


# ----------------------- in-kernel helpers (values, not refs) -----------------------
def _ln(x, g, b):
    # x: (1, S, D) f32; g/b: (1, D)
    mu = jnp.mean(x, axis=-1, keepdims=True)
    var = jnp.mean(jnp.square(x - mu), axis=-1, keepdims=True)
    return (x - mu) * jax.lax.rsqrt(var + EPS) * g + b


def _linear(x3, w, b):
    # (1,S,Din) @ (Din,Dout) + (1,Dout); bf16 MXU operands, f32 accumulation.
    bsz, s, din = x3.shape
    y = jnp.dot(
        x3.reshape(bsz * s, din).astype(jnp.bfloat16),
        w.astype(jnp.bfloat16),
        preferred_element_type=jnp.float32,
    ) + b
    return y.reshape(bsz, s, w.shape[1])


def _attention(q, k, v, wo, bo, mask):
    # q: (1,Sq,D), k/v: (1,Sk,D); mask: bool, (1,1,Sk) or (1,Sq,Sk).
    # All heads are stacked along the leading axis -> ONE masked softmax and ONE
    # batched score/context einsum for the whole attention.
    _, sq, d = q.shape
    sk = k.shape[1]
    hd = d // N_HEADS
    scale = 1.0 / math.sqrt(hd)

    qh = jnp.concatenate([q[:, :, h * hd:(h + 1) * hd] for h in range(N_HEADS)],
                         axis=0).astype(jnp.bfloat16)          # (H, Sq, hd)
    kh = jnp.concatenate([k[:, :, h * hd:(h + 1) * hd] for h in range(N_HEADS)],
                         axis=0).astype(jnp.bfloat16)          # (H, Sk, hd)
    vh = jnp.concatenate([v[:, :, h * hd:(h + 1) * hd] for h in range(N_HEADS)],
                         axis=0).astype(jnp.bfloat16)          # (H, Sk, hd)

    s = jnp.einsum("hqd,hkd->hqk", qh, kh,
                   preferred_element_type=jnp.float32) * scale  # (H, Sq, Sk) f32
    s = jnp.where(mask, s, NEG_INF)                             # mask broadcasts over heads
    s = s - jnp.max(s, axis=-1, keepdims=True)
    e = jnp.exp(s)
    p = e * pl.reciprocal(jnp.sum(e, axis=-1, keepdims=True), approx=True)

    ctx = jnp.einsum("hqk,hkd->hqd", p.astype(jnp.bfloat16), vh,
                     preferred_element_type=jnp.float32)        # (H, Sq, hd)
    # back to (Sq, D) = concat(heads) along lanes -> single output-proj matmul
    ctx2d = jnp.concatenate([ctx[h] for h in range(N_HEADS)], axis=-1)
    out = jnp.dot(ctx2d.astype(jnp.bfloat16), wo.astype(jnp.bfloat16),
                  preferred_element_type=jnp.float32) + bo
    return out.reshape(1, sq, d)


def _self_attn(x3, wqkv, bqkv, wo, bo, mask):
    d = x3.shape[-1]
    qkv = _linear(x3, wqkv, bqkv)                # fused QKV: (1, S, 3D)
    return _attention(qkv[:, :, :d], qkv[:, :, d:2 * d], qkv[:, :, 2 * d:],
                      wo, bo, mask)


def _cross_attn(x3, enc3, wq, bq, wkv, bkv, wo, bo, mask):
    d = x3.shape[-1]
    q = _linear(x3, wq, bq)
    kv = _linear(enc3, wkv, bkv)                 # fused KV: (1, Ss, 2D)
    return _attention(q, kv[:, :, :d], kv[:, :, d:], wo, bo, mask)


def _ffn(x3, w1, b1, w2, b2):
    h = jnp.maximum(_linear(x3, w1, b1), 0.0)    # dropout = identity (eval)
    return _linear(h, w2, b2)


def _embed(col_ids, emb_ref, emb_row, pos_row, s):
    # Embedding "gather" as one-hot @ table on the MXU (one-hot is exact in bf16),
    # plus positional embeddings.
    oh = (col_ids == jax.lax.broadcasted_iota(jnp.int32, (s, V_SIZE), 1)
          ).astype(jnp.bfloat16)                                        # (S, V)
    tok = jnp.dot(oh, emb_ref[emb_row:emb_row + V_SIZE, :].astype(jnp.bfloat16),
                  preferred_element_type=jnp.float32)                    # (S, D)
    pos = emb_ref[pos_row:pos_row + s, :]                                # (S, D) f32
    return (tok + pos).reshape(1, s, D_MODEL)


# ---------------------------------- fused kernel ----------------------------------
def transformer_kernel(src_row_ref, tgt_row_ref, src_col_ref, tgt_col_ref,
                       emb_ref, mat_ref, vec_ref, out_ref):
    ss = src_row_ref.shape[2]
    st = tgt_row_ref.shape[2]

    def M(name):                      # matrix read: (rows, cols)
        r, n, c = MAT_LAYOUT[name]
        return mat_ref[r:r + n, 0:c]

    def Vv(name):                     # vector read: (1, cols)
        r, c = VEC_LAYOUT[name]
        return vec_ref[r:r + 1, 0:c]

    src_row = src_row_ref[0]          # (1, Ss) int32
    tgt_row = tgt_row_ref[0]          # (1, St) int32

    # ---- masks, built once per grid point from raw token ids ----
    src_keep = (src_row != PAD_IDX).reshape(1, 1, ss)                     # enc + cross
    qi = jax.lax.broadcasted_iota(jnp.int32, (st, st), 0)
    ki = jax.lax.broadcasted_iota(jnp.int32, (st, st), 1)
    tgt_keep = jnp.logical_and(ki <= qi, tgt_row != PAD_IDX).reshape(1, st, st)

    # ================= encoder =================
    x = _embed(src_col_ref[0], emb_ref, ENC_EMB_ROW, ENC_POS_ROW, ss)
    for i in range(N_BLOCKS):
        res1 = x
        y = _ln(x, Vv(f"enc{i}_ln1_g"), Vv(f"enc{i}_ln1_b"))
        y = _self_attn(y, M(f"enc{i}_wqkv"), Vv(f"enc{i}_bqkv"),
                       M(f"enc{i}_wo"), Vv(f"enc{i}_bo"), src_keep)
        x = y + res1
        res2 = x
        y = _ln(x, Vv(f"enc{i}_ln2_g"), Vv(f"enc{i}_ln2_b"))
        y = _ffn(y, M(f"enc{i}_w1"), Vv(f"enc{i}_b1"),
                 M(f"enc{i}_w2"), Vv(f"enc{i}_b2"))
        x = y + res2
    enc_out = _ln(x, Vv("enc_lnf_g"), Vv("enc_lnf_b"))

    # ================= decoder (matches the torch DecoderBlock exactly) =================
    x = _embed(tgt_col_ref[0], emb_ref, DEC_EMB_ROW, DEC_POS_ROW, st)
    for i in range(N_BLOCKS):
        res1 = x
        y = _ln(x, Vv(f"dec{i}_ln1_g"), Vv(f"dec{i}_ln1_b"))
        y = _self_attn(y, M(f"dec{i}_wqkv"), Vv(f"dec{i}_bqkv"),
                       M(f"dec{i}_wo_self"), Vv(f"dec{i}_bo_self"), tgt_keep)
        x = _ln(res1 + y, Vv(f"dec{i}_ln1_g"), Vv(f"dec{i}_ln1_b"))   # ln1 reused (torch)
        res2 = x
        y = _cross_attn(x, enc_out,
                        M(f"dec{i}_wq_x"), Vv(f"dec{i}_bq_x"),
                        M(f"dec{i}_wkv_x"), Vv(f"dec{i}_bkv_x"),
                        M(f"dec{i}_wo_x"), Vv(f"dec{i}_bo_x"), src_keep)
        x = _ln(y + res2, Vv(f"dec{i}_ln2_g"), Vv(f"dec{i}_ln2_b")) + res2
        res3 = x
        y = _ffn(x, M(f"dec{i}_w1"), Vv(f"dec{i}_b1"),
                 M(f"dec{i}_w2"), Vv(f"dec{i}_b2"))
        x = _ln(y, Vv(f"dec{i}_ln3_g"), Vv(f"dec{i}_ln3_b")) + res3
    x = _ln(x, Vv("dec_lnf_g"), Vv("dec_lnf_b"))

    # lane-dense (St, 128) logits store; real vocab is the first V_SIZE columns
    logits = jnp.dot(
        x.reshape(st, D_MODEL).astype(jnp.bfloat16),
        M("proj_w").astype(jnp.bfloat16),
        preferred_element_type=jnp.float32,
    ) + Vv("proj_b")
    out_ref[0] = logits


# ---------------------------------- wrapper ----------------------------------
def transformer_forward(packed, input_ids, output_ids):
    bsz, ss = input_ids.shape
    _, st = output_ids.shape
    assert ss <= MAX_SEQ and st <= MAX_SEQ

    src_row = input_ids.reshape(bsz, 1, ss).astype(jnp.int32)   # masks
    tgt_row = output_ids.reshape(bsz, 1, st).astype(jnp.int32)
    src_col = input_ids.reshape(bsz, ss, 1).astype(jnp.int32)   # one-hot embed
    tgt_col = output_ids.reshape(bsz, st, 1).astype(jnp.int32)

    emb_slab, mat_slab, vec_slab = packed["emb"], packed["mat"], packed["vec"]

    out = pl.pallas_call(
        transformer_kernel,
        out_shape=jax.ShapeDtypeStruct((bsz, st, LANE), jnp.float32),
        grid_spec=pltpu.PrefetchScalarGridSpec(
            num_scalar_prefetch=0,
            grid=(bsz,),                      # one batch element per grid point
            in_specs=[
                pl.BlockSpec((1, 1, ss), lambda b: (b, 0, 0)),
                pl.BlockSpec((1, 1, st), lambda b: (b, 0, 0)),
                pl.BlockSpec((1, ss, 1), lambda b: (b, 0, 0)),
                pl.BlockSpec((1, st, 1), lambda b: (b, 0, 0)),
                # weight slabs: constant index_map -> resident across grid steps
                pl.BlockSpec(emb_slab.shape, lambda b: (0, 0)),
                pl.BlockSpec(mat_slab.shape, lambda b: (0, 0)),
                pl.BlockSpec(vec_slab.shape, lambda b: (0, 0)),
            ],
            out_specs=pl.BlockSpec((1, st, LANE), lambda b: (b, 0, 0)),
        ),
        compiler_params=pltpu.CompilerParams(
            dimension_semantics=("parallel",),          # 2 TCs on v7x; loop elsewhere
            vmem_limit_bytes=32 * 1024 * 1024,
        ),
    )(src_row, tgt_row, src_col, tgt_col, emb_slab, mat_slab, vec_slab)
    return out[:, :, :V_SIZE]


# -------------------------- parameter packing (done once) --------------------------
def _pad_cols(x, width=LANE):
    r, c = x.shape
    if c == width:
        return x
    return jnp.concatenate([x, jnp.zeros((r, width - c), x.dtype)], axis=1)


def _collect_tensors(params):
    enc, dec = params["encoder"], params["decoder"]
    mats, vecs = {}, {}
    for i, b in enumerate(enc["blocks"]):
        att, ff = b["att"], b["ff"]
        mats[f"enc{i}_wqkv"] = jnp.concatenate([att["wq"], att["wk"], att["wv"]], axis=1)
        mats[f"enc{i}_wo"] = att["wo"]
        mats[f"enc{i}_w1"] = ff["w1"]
        mats[f"enc{i}_w2"] = ff["w2"]
        vecs[f"enc{i}_bqkv"] = jnp.concatenate([att["bq"], att["bk"], att["bv"]], axis=1)
        vecs[f"enc{i}_bo"] = att["bo"]
        vecs[f"enc{i}_ln1_g"] = b["ln1_g"]; vecs[f"enc{i}_ln1_b"] = b["ln1_b"]
        vecs[f"enc{i}_ln2_g"] = b["ln2_g"]; vecs[f"enc{i}_ln2_b"] = b["ln2_b"]
        vecs[f"enc{i}_b1"] = ff["b1"]; vecs[f"enc{i}_b2"] = ff["b2"]
    vecs["enc_lnf_g"] = enc["ln_g"]; vecs["enc_lnf_b"] = enc["ln_b"]
    for i, b in enumerate(dec["blocks"]):
        sa, ca, ff = b["self_att"], b["cross_att"], b["ff"]
        mats[f"dec{i}_wqkv"] = jnp.concatenate([sa["wq"], sa["wk"], sa["wv"]], axis=1)
        mats[f"dec{i}_wo_self"] = sa["wo"]
        mats[f"dec{i}_wq_x"] = ca["wq"]
        mats[f"dec{i}_wkv_x"] = jnp.concatenate([ca["wk"], ca["wv"]], axis=1)
        mats[f"dec{i}_wo_x"] = ca["wo"]
        mats[f"dec{i}_w1"] = ff["w1"]
        mats[f"dec{i}_w2"] = ff["w2"]
        vecs[f"dec{i}_bqkv"] = jnp.concatenate([sa["bq"], sa["bk"], sa["bv"]], axis=1)
        vecs[f"dec{i}_bo_self"] = sa["bo"]
        vecs[f"dec{i}_bq_x"] = ca["bq"]
        vecs[f"dec{i}_bkv_x"] = jnp.concatenate([ca["bk"], ca["bv"]], axis=1)
        vecs[f"dec{i}_bo_x"] = ca["bo"]
        vecs[f"dec{i}_ln1_g"] = b["ln1_g"]; vecs[f"dec{i}_ln1_b"] = b["ln1_b"]
        vecs[f"dec{i}_ln2_g"] = b["ln2_g"]; vecs[f"dec{i}_ln2_b"] = b["ln2_b"]
        vecs[f"dec{i}_ln3_g"] = b["ln3_g"]; vecs[f"dec{i}_ln3_b"] = b["ln3_b"]
        vecs[f"dec{i}_b1"] = ff["b1"]; vecs[f"dec{i}_b2"] = ff["b2"]
    vecs["dec_lnf_g"] = dec["ln_g"]; vecs["dec_lnf_b"] = dec["ln_b"]
    mats["proj_w"] = dec["proj_w"]
    vecs["proj_b"] = dec["proj_b"]
    return mats, vecs


def pack_params(params):
    enc, dec = params["encoder"], params["decoder"]
    mats, vecs = _collect_tensors(params)

    emb_slab = jnp.concatenate(
        [enc["emb"], enc["pos"], dec["emb"], dec["pos"]], axis=0).astype(jnp.float32)
    assert emb_slab.shape == (EMB_ROWS, D_MODEL)

    mat_rows = []
    for name, rows, _cols in MAT_ENTRIES:
        arr = mats[name].astype(jnp.float32)
        assert arr.shape[0] == rows and arr.shape[1] <= LANE, (name, arr.shape)
        mat_rows.append(_pad_cols(arr))
    mat_slab = jnp.concatenate(mat_rows, axis=0)
    assert mat_slab.shape == (MAT_ROWS, LANE)

    vec_rows = []
    for name, _cols in VEC_ENTRIES:
        arr = vecs[name].astype(jnp.float32)
        assert arr.shape[0] == 1 and arr.shape[1] <= LANE, (name, arr.shape)
        vec_rows.append(_pad_cols(arr))
    vec_slab = jnp.concatenate(vec_rows, axis=0)
    assert vec_slab.shape == (VEC_ROWS, LANE)

    return {"emb": emb_slab, "mat": mat_slab, "vec": vec_slab}


# ---------------------------------- parameter init ----------------------------------
def xavier_uniform(key, shape):
    fan_in, fan_out = shape
    a = math.sqrt(6.0 / (fan_in + fan_out))
    return jax.random.uniform(key, shape, jnp.float32, -a, a)


def init_mha(key, d):
    ks = jax.random.split(key, 4)
    return {
        "wq": xavier_uniform(ks[0], (d, d)), "bq": jnp.zeros((1, d), jnp.float32),
        "wk": xavier_uniform(ks[1], (d, d)), "bk": jnp.zeros((1, d), jnp.float32),
        "wv": xavier_uniform(ks[2], (d, d)), "bv": jnp.zeros((1, d), jnp.float32),
        "wo": xavier_uniform(ks[3], (d, d)), "bo": jnp.zeros((1, d), jnp.float32),
    }


def init_ff(key, d, d_ff):
    k1, k2 = jax.random.split(key)
    return {
        "w1": xavier_uniform(k1, (d, d_ff)), "b1": jnp.zeros((1, d_ff), jnp.float32),
        "w2": xavier_uniform(k2, (d_ff, d)), "b2": jnp.zeros((1, d), jnp.float32),
    }


def init_ln(d):
    return jnp.ones((1, d), jnp.float32), jnp.zeros((1, d), jnp.float32)


def init_encoder_block(key, d, d_ff):
    k1, k2 = jax.random.split(key)
    g1, b1 = init_ln(d)
    g2, b2 = init_ln(d)
    return {"att": init_mha(k1, d), "ff": init_ff(k2, d, d_ff),
            "ln1_g": g1, "ln1_b": b1, "ln2_g": g2, "ln2_b": b2}


def init_decoder_block(key, d, d_ff):
    k1, k2, k3 = jax.random.split(key, 3)
    g1, b1 = init_ln(d)
    g2, b2 = init_ln(d)
    g3, b3 = init_ln(d)
    return {"self_att": init_mha(k1, d), "cross_att": init_mha(k2, d),
            "ff": init_ff(k3, d, d_ff),
            "ln1_g": g1, "ln1_b": b1, "ln2_g": g2, "ln2_b": b2,
            "ln3_g": g3, "ln3_b": b3}


def init_params(key):
    ke, kd = jax.random.split(key)
    ke_emb, ke_pos, ke_blocks = jax.random.split(ke, 3)
    enc = {
        "emb": jax.random.normal(ke_emb, (V_SIZE, D_MODEL), jnp.float32),
        "pos": jax.random.normal(ke_pos, (MAX_SEQ, D_MODEL), jnp.float32),
        "blocks": [init_encoder_block(jax.random.fold_in(ke_blocks, i), D_MODEL, D_FF)
                   for i in range(N_BLOCKS)],
    }
    enc["ln_g"], enc["ln_b"] = init_ln(D_MODEL)
    kd_emb, kd_pos, kd_blocks, kd_proj = jax.random.split(kd, 4)
    dec = {
        "emb": jax.random.normal(kd_emb, (V_SIZE, D_MODEL), jnp.float32),
        "pos": jax.random.normal(kd_pos, (MAX_SEQ, D_MODEL), jnp.float32),
        "blocks": [init_decoder_block(jax.random.fold_in(kd_blocks, i), D_MODEL, D_FF)
                   for i in range(N_BLOCKS)],
        "proj_w": xavier_uniform(kd_proj, (D_MODEL, V_SIZE)),
        "proj_b": jnp.zeros((1, V_SIZE), jnp.float32),
    }
    dec["ln_g"], dec["ln_b"] = init_ln(D_MODEL)
    return {"encoder": enc, "decoder": dec}


# ---------------------------- pure-JAX reference (f32) ----------------------------
def reference_forward(params, input_ids, output_ids):
    def ln(x, g, b):
        mu = jnp.mean(x, -1, keepdims=True)
        var = jnp.mean(jnp.square(x - mu), -1, keepdims=True)
        return (x - mu) * jax.lax.rsqrt(var + EPS) * g + b

    def mha(p, q, k, v, mask):
        b, sq, d = q.shape
        sk = k.shape[1]
        h = d // N_HEADS
        qp = (q @ p["wq"] + p["bq"]).reshape(b, sq, N_HEADS, h).transpose(0, 2, 1, 3)
        kp = (k @ p["wk"] + p["bk"]).reshape(b, sk, N_HEADS, h).transpose(0, 2, 1, 3)
        vp = (v @ p["wv"] + p["bv"]).reshape(b, sk, N_HEADS, h).transpose(0, 2, 1, 3)
        s = jnp.einsum("bnqh,bnkh->bnqk", qp, kp) / math.sqrt(h)
        s = jnp.where(mask, s, NEG_INF)
        a = jax.nn.softmax(s, axis=-1)
        ctx = jnp.einsum("bnqk,bnkh->bnqh", a, vp).transpose(0, 2, 1, 3).reshape(b, sq, d)
        return ctx @ p["wo"] + p["bo"]

    def ff(p, x):
        return jnp.maximum(x @ p["w1"] + p["b1"], 0.0) @ p["w2"] + p["b2"]

    src_mask = (input_ids != PAD_IDX)[:, None, None, :]
    st = output_ids.shape[1]
    causal = jnp.tril(jnp.ones((st, st), dtype=bool))[None, None]
    tgt_mask = causal & (output_ids != PAD_IDX)[:, None, None, :]

    enc = params["encoder"]
    x = jnp.take(enc["emb"], input_ids, axis=0) + enc["pos"][:input_ids.shape[1]][None]
    for bp in enc["blocks"]:
        r1 = x
        y = ln(x, bp["ln1_g"], bp["ln1_b"])
        x = mha(bp["att"], y, y, y, src_mask) + r1
        r2 = x
        y = ln(x, bp["ln2_g"], bp["ln2_b"])
        x = ff(bp["ff"], y) + r2
    enc_out = ln(x, enc["ln_g"], enc["ln_b"])

    dec = params["decoder"]
    x = jnp.take(dec["emb"], output_ids, axis=0) + dec["pos"][:st][None]
    for bp in dec["blocks"]:
        r1 = x
        y = ln(x, bp["ln1_g"], bp["ln1_b"])
        y = mha(bp["self_att"], y, y, y, tgt_mask)
        x = ln(r1 + y, bp["ln1_g"], bp["ln1_b"])
        r2 = x
        y = mha(bp["cross_att"], x, enc_out, enc_out, src_mask)
        x = ln(y + r2, bp["ln2_g"], bp["ln2_b"]) + r2
        r3 = x
        x = ln(ff(bp["ff"], x), bp["ln3_g"], bp["ln3_b"]) + r3
    x = ln(x, dec["ln_g"], dec["ln_b"])
    return x @ dec["proj_w"] + dec["proj_b"]


# ---------------------------------- main ----------------------------------
if __name__ == "__main__":
    key = jax.random.PRNGKey(0)
    kp, ki, ko = jax.random.split(key, 3)

    params = init_params(kp)
    packed = pack_params(params)   # pack / fuse weights once, outside jit

    B, S = 2, 8
    # tokens in [0, V_SIZE); 0 == PAD_IDX exercises the padding masks
    input_ids = jax.random.randint(ki, (B, S), 0, V_SIZE, dtype=jnp.int32)
    output_ids = jax.random.randint(ko, (B, S), 0, V_SIZE, dtype=jnp.int32)

    fwd = jax.jit(transformer_forward)
    logits = jax.block_until_ready(fwd(packed, input_ids, output_ids))

    assert logits.shape == (B, S, V_SIZE), logits.shape
    assert bool(jnp.all(jnp.isfinite(logits)))

    # sanity check vs an f32 pure-JAX reference; tolerance covers bf16 MXU operands
    ref = reference_forward(params, input_ids, output_ids)
    max_err = float(jnp.max(jnp.abs(logits - ref)))
    assert max_err < 0.4, f"max |pallas - reference| = {max_err}"

    print("KERNEL_OK")
</pallas_src>

<mosaic_0001>
module attributes {stable_mosaic.version = 11 : i64} {
  func.func @transformer_kernel(%arg0: i32, %arg1: memref<1x1x8xi32, #tpu.memory_space<vmem>>, %arg2: memref<1x1x8xi32, #tpu.memory_space<vmem>>, %arg3: memref<1x8x1xi32, #tpu.memory_space<vmem>>, %arg4: memref<1x8x1xi32, #tpu.memory_space<vmem>>, %arg5: memref<96x32xf32, #tpu.memory_space<vmem>>, %arg6: memref<864x128xf32, #tpu.memory_space<vmem>>, %arg7: memref<47x128xf32, #tpu.memory_space<vmem>>, %arg8: memref<1x8x128xf32, #tpu.memory_space<vmem>>) attributes {dimension_semantics = [#tpu.dimension_semantics<parallel>], iteration_bounds = array<i64: 2>, scalar_prefetch = 0 : i64, scratch_operands = 0 : i64, tpu.core_type = #tpu.core_type<tc>, window_params = [{transform_indices = @transform_0, window_bounds = array<i64: 1, 1, 8>}, {transform_indices = @transform_1, window_bounds = array<i64: 1, 1, 8>}, {transform_indices = @transform_2, window_bounds = array<i64: 1, 8, 1>}, {transform_indices = @transform_3, window_bounds = array<i64: 1, 8, 1>}, {pipeline_mode = #tpu.pipeline_mode<synchronous>, transform_indices = @transform_4, window_bounds = array<i64: 96, 32>}, {pipeline_mode = #tpu.pipeline_mode<synchronous>, transform_indices = @transform_5, window_bounds = array<i64: 864, 128>}, {pipeline_mode = #tpu.pipeline_mode<synchronous>, transform_indices = @transform_6, window_bounds = array<i64: 47, 128>}, {transform_indices = @transform_7, window_bounds = array<i64: 1, 8, 128>}]} {
    %c0 = arith.constant 0 : index
    %c0_0 = arith.constant 0 : index
    %c0_1 = arith.constant 0 : index
    %0 = vector.load %arg1[%c0, %c0_0, %c0_1] : memref<1x1x8xi32, #tpu.memory_space<vmem>>, vector<1x1x8xi32>
    %1 = vector.shape_cast %0 : vector<1x1x8xi32> to vector<1x8xi32>
    %c0_2 = arith.constant 0 : index
    %c0_3 = arith.constant 0 : index
    %c0_4 = arith.constant 0 : index
    %2 = vector.load %arg2[%c0_2, %c0_3, %c0_4] : memref<1x1x8xi32, #tpu.memory_space<vmem>>, vector<1x1x8xi32>
    %3 = vector.shape_cast %2 : vector<1x1x8xi32> to vector<1x8xi32>
    %c0_i32 = arith.constant 0 : i32
    %4 = vector.broadcast %c0_i32 : i32 to vector<1x8xi32>
    %5 = arith.cmpi ne, %1, %4 : vector<1x8xi32>
    %6 = vector.shape_cast %5 : vector<1x8xi1> to vector<1x1x8xi1>
    %7 = tpu.iota {dimensions = array<i32: 0>} : vector<8x8xi32>
    %8 = tpu.iota {dimensions = array<i32: 1>} : vector<8x8xi32>
    %9 = arith.cmpi sle, %8, %7 : vector<8x8xi32>
    %c0_i32_5 = arith.constant 0 : i32
    %10 = vector.broadcast %c0_i32_5 : i32 to vector<1x8xi32>
    %11 = arith.cmpi ne, %3, %10 : vector<1x8xi32>
    %12 = vector.broadcast %11 : vector<1x8xi1> to vector<8x8xi1>
    %13 = arith.andi %9, %12 : vector<8x8xi1>
    %14 = vector.shape_cast %13 : vector<8x8xi1> to vector<1x8x8xi1>
    %c0_6 = arith.constant 0 : index
    %c0_7 = arith.constant 0 : index
    %c0_8 = arith.constant 0 : index
    %15 = vector.load %arg3[%c0_6, %c0_7, %c0_8] : memref<1x8x1xi32, #tpu.memory_space<vmem>>, vector<1x8x1xi32>
    %16 = vector.shape_cast %15 : vector<1x8x1xi32> to vector<8x1xi32>
    %17 = tpu.iota {dimensions = array<i32: 1>} : vector<8x32xi32>
    %18 = vector.broadcast %16 : vector<8x1xi32> to vector<8x32xi32>
    %19 = arith.cmpi eq, %18, %17 : vector<8x32xi32>
    %20 = arith.extui %19 : vector<8x32xi1> to vector<8x32xi32>
    %21 = arith.sitofp %20 : vector<8x32xi32> to vector<8x32xf32>
    %22 = arith.truncf %21 : vector<8x32xf32> to vector<8x32xbf16>
    %c0_9 = arith.constant 0 : index
    %c0_10 = arith.constant 0 : index
    %23 = vector.load %arg5[%c0_9, %c0_10] : memref<96x32xf32, #tpu.memory_space<vmem>>, vector<32x32xf32>
    %24 = arith.truncf %23 : vector<32x32xf32> to vector<32x32xbf16>
    %cst = arith.constant dense<0.000000e+00> : vector<8x32xf32>
    %25 = tpu.matmul %22, %24, %cst {dimension_numbers = #tpu.dot_dimension_numbers<[1], [0], [0], [1], [0, 0, 1, 1], [], []>} : vector<8x32xbf16>, vector<32x32xbf16>, vector<8x32xf32> -> vector<8x32xf32>
    %c32 = arith.constant 32 : index
    %c0_11 = arith.constant 0 : index
    %26 = vector.load %arg5[%c32, %c0_11] : memref<96x32xf32, #tpu.memory_space<vmem>>, vector<8x32xf32>
    %27 = arith.addf %25, %26 : vector<8x32xf32>
    %28 = vector.shape_cast %27 : vector<8x32xf32> to vector<1x8x32xf32>
    %c2 = arith.constant 2 : index
    %c0_12 = arith.constant 0 : index
    %29 = vector.load %arg7[%c2, %c0_12] : memref<47x128xf32, #tpu.memory_space<vmem>>, vector<1x32xf32>
    %c3 = arith.constant 3 : index
    %c0_13 = arith.constant 0 : index
    %30 = vector.load %arg7[%c3, %c0_13] : memref<47x128xf32, #tpu.memory_space<vmem>>, vector<1x32xf32>
    %cst_14 = arith.constant dense<0.000000e+00> : vector<1x8xf32>
    %31 = vector.multi_reduction <add>, %28, %cst_14 [2] : vector<1x8x32xf32> to vector<1x8xf32>
    %32 = vector.shape_cast %31 : vector<1x8xf32> to vector<1x8x1xf32>
    %cst_15 = arith.constant 3.200000e+01 : f32
    %33 = vector.broadcast %cst_15 : f32 to vector<1x8x1xf32>
    %34 = arith.divf %32, %33 : vector<1x8x1xf32>
    %35 = vector.broadcast %34 : vector<1x8x1xf32> to vector<1x8x32xf32>
    %36 = arith.subf %28, %35 : vector<1x8x32xf32>
    %37 = arith.mulf %36, %36 : vector<1x8x32xf32>
    %cst_16 = arith.constant dense<0.000000e+00> : vector<1x8xf32>
    %38 = vector.multi_reduction <add>, %37, %cst_16 [2] : vector<1x8x32xf32> to vector<1x8xf32>
    %39 = vector.shape_cast %38 : vector<1x8xf32> to vector<1x8x1xf32>
    %cst_17 = arith.constant 3.200000e+01 : f32
    %40 = vector.broadcast %cst_17 : f32 to vector<1x8x1xf32>
    %41 = arith.divf %39, %40 : vector<1x8x1xf32>
    %42 = vector.broadcast %34 : vector<1x8x1xf32> to vector<1x8x32xf32>
    %43 = arith.subf %28, %42 : vector<1x8x32xf32>
    %cst_18 = arith.constant 9.99999974E-6 : f32
    %44 = vector.broadcast %cst_18 : f32 to vector<1x8x1xf32>
    %45 = arith.addf %41, %44 : vector<1x8x1xf32>
    %46 = math.rsqrt %45 : vector<1x8x1xf32>
    %47 = vector.broadcast %46 : vector<1x8x1xf32> to vector<1x8x32xf32>
    %48 = arith.mulf %43, %47 : vector<1x8x32xf32>
    %49 = vector.shape_cast %29 : vector<1x32xf32> to vector<1x1x32xf32>
    %50 = vector.broadcast %49 : vector<1x1x32xf32> to vector<1x8x32xf32>
    %51 = arith.mulf %48, %50 : vector<1x8x32xf32>
    %52 = vector.shape_cast %30 : vector<1x32xf32> to vector<1x1x32xf32>
    %53 = vector.broadcast %52 : vector<1x1x32xf32> to vector<1x8x32xf32>
    %54 = arith.addf %51, %53 : vector<1x8x32xf32>
    %c0_19 = arith.constant 0 : index
    %c0_20 = arith.constant 0 : index
    %55 = vector.load %arg6[%c0_19, %c0_20] : memref<864x128xf32, #tpu.memory_space<vmem>>, vector<32x96xf32>
    %c0_21 = arith.constant 0 : index
    %c0_22 = arith.constant 0 : index
    %56 = vector.load %arg7[%c0_21, %c0_22] : memref<47x128xf32, #tpu.memory_space<vmem>>, vector<1x96xf32>
    %c32_23 = arith.constant 32 : index
    %c0_24 = arith.constant 0 : index
    %57 = vector.load %arg6[%c32_23, %c0_24] : memref<864x128xf32, #tpu.memory_space<vmem>>, vector<32x32xf32>
    %c1 = arith.constant 1 : index
    %c0_25 = arith.constant 0 : index
    %58 = vector.load %arg7[%c1, %c0_25] : memref<47x128xf32, #tpu.memory_space<vmem>>, vector<1x32xf32>
    %59 = vector.shape_cast %54 : vector<1x8x32xf32> to vector<8x32xf32>
    %60 = arith.truncf %59 : vector<8x32xf32> to vector<8x32xbf16>
    %61 = arith.truncf %55 : vector<32x96xf32> to vector<32x96xbf16>
    %cst_26 = arith.constant dense<0.000000e+00> : vector<8x96xf32>
    %62 = tpu.matmul %60, %61, %cst_26 {dimension_numbers = #tpu.dot_dimension_numbers<[1], [0], [0], [1], [0, 0, 1, 1], [], []>} : vector<8x32xbf16>, vector<32x96xbf16>, vector<8x96xf32> -> vector<8x96xf32>
    %63 = vector.broadcast %56 : vector<1x96xf32> to vector<8x96xf32>
    %64 = arith.addf %62, %63 : vector<8x96xf32>
    %65 = vector.shape_cast %64 : vector<8x96xf32> to vector<1x8x96xf32>
    %66 = vector.extract_strided_slice %65 {offsets = [0, 0, 0], sizes = [1, 8, 32], strides = [1, 1, 1]} : vector<1x8x96xf32> to vector<1x8x32xf32>
    %67 = vector.extract_strided_slice %65 {offsets = [0, 0, 32], sizes = [1, 8, 32], strides = [1, 1, 1]} : vector<1x8x96xf32> to vector<1x8x32xf32>
    %68 = vector.extract_strided_slice %65 {offsets = [0, 0, 64], sizes = [1, 8, 32], strides = [1, 1, 1]} : vector<1x8x96xf32> to vector<1x8x32xf32>
    %69 = vector.extract_strided_slice %66 {offsets = [0, 0, 0], sizes = [1, 8, 8], strides = [1, 1, 1]} : vector<1x8x32xf32> to vector<1x8x8xf32>
    %70 = vector.extract_strided_slice %66 {offsets = [0, 0, 8], sizes = [1, 8, 8], strides = [1, 1, 1]} : vector<1x8x32xf32> to vector<1x8x8xf32>
    %71 = vector.extract_strided_slice %66 {offsets = [0, 0, 16], sizes = [1, 8, 8], strides = [1, 1, 1]} : vector<1x8x32xf32> to vector<1x8x8xf32>
    %72 = vector.extract_strided_slice %66 {offsets = [0, 0, 24], sizes = [1, 8, 8], strides = [1, 1, 1]} : vector<1x8x32xf32> to vector<1x8x8xf32>
    %73 = tpu.concatenate %69, %70, %71, %72 in 0 : vector<1x8x8xf32>, vector<1x8x8xf32>, vector<1x8x8xf32>, vector<1x8x8xf32> -> vector<4x8x8xf32>
    %74 = arith.truncf %73 : vector<4x8x8xf32> to vector<4x8x8xbf16>
    %75 = vector.extract_strided_slice %67 {offsets = [0, 0, 0], sizes = [1, 8, 8], strides = [1, 1, 1]} : vector<1x8x32xf32> to vector<1x8x8xf32>
    %76 = vector.extract_strided_slice %67 {offsets = [0, 0, 8], sizes = [1, 8, 8], strides = [1, 1, 1]} : vector<1x8x32xf32> to vector<1x8x8xf32>
    %77 = vector.extract_strided_slice %67 {offsets = [0, 0, 16], sizes = [1, 8, 8], strides = [1, 1, 1]} : vector<1x8x32xf32> to vector<1x8x8xf32>
    %78 = vector.extract_strided_slice %67 {offsets = [0, 0, 24], sizes = [1, 8, 8], strides = [1, 1, 1]} : vector<1x8x32xf32> to vector<1x8x8xf32>
    %79 = tpu.concatenate %75, %76, %77, %78 in 0 : vector<1x8x8xf32>, vector<1x8x8xf32>, vector<1x8x8xf32>, vector<1x8x8xf32> -> vector<4x8x8xf32>
    %80 = arith.truncf %79 : vector<4x8x8xf32> to vector<4x8x8xbf16>
    %81 = vector.extract_strided_slice %68 {offsets = [0, 0, 0], sizes = [1, 8, 8], strides = [1, 1, 1]} : vector<1x8x32xf32> to vector<1x8x8xf32>
    %82 = vector.extract_strided_slice %68 {offsets = [0, 0, 8], sizes = [1, 8, 8], strides = [1, 1, 1]} : vector<1x8x32xf32> to vector<1x8x8xf32>
    %83 = vector.extract_strided_slice %68 {offsets = [0, 0, 16], sizes = [1, 8, 8], strides = [1, 1, 1]} : vector<1x8x32xf32> to vector<1x8x8xf32>
    %84 = vector.extract_strided_slice %68 {offsets = [0, 0, 24], sizes = [1, 8, 8], strides = [1, 1, 1]} : vector<1x8x32xf32> to vector<1x8x8xf32>
    %85 = tpu.concatenate %81, %82, %83, %84 in 0 : vector<1x8x8xf32>, vector<1x8x8xf32>, vector<1x8x8xf32>, vector<1x8x8xf32> -> vector<4x8x8xf32>
    %86 = arith.truncf %85 : vector<4x8x8xf32> to vector<4x8x8xbf16>
    "tpu.trace_start"() <{level = 10 : i32, message = "hqd,hkd->hqk"}> : () -> ()
    %cst_27 = arith.constant dense<0.000000e+00> : vector<4x8x8xf32>
    %87 = tpu.matmul %74, %80, %cst_27 {dimension_numbers = #tpu.dot_dimension_numbers<[2], [2], [1], [1], [0, 0, 0, 1, 1, 1], [0], [0]>} : vector<4x8x8xbf16>, vector<4x8x8xbf16>, vector<4x8x8xf32> -> vector<4x8x8xf32>
    "tpu.trace_stop"() : () -> ()
    %cst_28 = arith.constant 0.353553385 : f32
    %88 = vector.broadcast %cst_28 : f32 to vector<4x8x8xf32>
    %89 = arith.mulf %87, %88 : vector<4x8x8xf32>
    %cst_29 = arith.constant -1.000000e+09 : f32
    %90 = vector.shape_cast %6 : vector<1x1x8xi1> to vector<1x1x8xi1>
    %91 = vector.broadcast %90 : vector<1x1x8xi1> to vector<4x8x8xi1>
    %92 = vector.broadcast %cst_29 : f32 to vector<4x8x8xf32>
    %93 = arith.select %91, %89, %92 : vector<4x8x8xi1>, vector<4x8x8xf32>
    %cst_30 = arith.constant dense<0xFF800000> : vector<4x8xf32>
    %94 = vector.multi_reduction <maximumf>, %93, %cst_30 [2] : vector<4x8x8xf32> to vector<4x8xf32>
    %95 = vector.shape_cast %94 : vector<4x8xf32> to vector<4x8x1xf32>
    %96 = vector.broadcast %95 : vector<4x8x1xf32> to vector<4x8x8xf32>
    %97 = arith.subf %93, %96 : vector<4x8x8xf32>
    %98 = math.exp %97 : vector<4x8x8xf32>
    %cst_31 = arith.constant dense<0.000000e+00> : vector<4x8xf32>
    %99 = vector.multi_reduction <add>, %98, %cst_31 [2] : vector<4x8x8xf32> to vector<4x8xf32>
    %100 = vector.shape_cast %99 : vector<4x8xf32> to vector<4x8x1xf32>
    %101 = tpu.reciprocal %100 {approx = true} : vector<4x8x1xf32> -> vector<4x8x1xf32>
    %102 = vector.broadcast %101 : vector<4x8x1xf32> to vector<4x8x8xf32>
    %103 = arith.mulf %98, %102 : vector<4x8x8xf32>
    %104 = arith.truncf %103 : vector<4x8x8xf32> to vector<4x8x8xbf16>
    "tpu.trace_start"() <{level = 10 : i32, message = "hqk,hkd->hqd"}> : () -> ()
    %cst_32 = arith.constant dense<0.000000e+00> : vector<4x8x8xf32>
    %105 = tpu.matmul %104, %86, %cst_32 {dimension_numbers = #tpu.dot_dimension_numbers<[2], [1], [1], [2], [0, 0, 0, 1, 1, 2], [0], [0]>} : vector<4x8x8xbf16>, vector<4x8x8xbf16>, vector<4x8x8xf32> -> vector<4x8x8xf32>
    "tpu.trace_stop"() : () -> ()
    %106 = vector.extract_strided_slice %105 {offsets = [0, 0, 0], sizes = [1, 8, 8], strides = [1, 1, 1]} : vector<4x8x8xf32> to vector<1x8x8xf32>
    %107 = vector.shape_cast %106 : vector<1x8x8xf32> to vector<8x8xf32>
    %108 = vector.extract_strided_slice %105 {offsets = [1, 0, 0], sizes = [1, 8, 8], strides = [1, 1, 1]} : vector<4x8x8xf32> to vector<1x8x8xf32>
    %109 = vector.shape_cast %108 : vector<1x8x8xf32> to vector<8x8xf32>
    %110 = vector.extract_strided_slice %105 {offsets = [2, 0, 0], sizes = [1, 8, 8], strides = [1, 1, 1]} : vector<4x8x8xf32> to vector<1x8x8xf32>
    %111 = vector.shape_cast %110 : vector<1x8x8xf32> to vector<8x8xf32>
    %112 = vector.extract_strided_slice %105 {offsets = [3, 0, 0], sizes = [1, 8, 8], strides = [1, 1, 1]} : vector<4x8x8xf32> to vector<1x8x8xf32>
    %113 = vector.shape_cast %112 : vector<1x8x8xf32> to vector<8x8xf32>
    %114 = tpu.concatenate %107, %109, %111, %113 in 1 : vector<8x8xf32>, vector<8x8xf32>, vector<8x8xf32>, vector<8x8xf32> -> vector<8x32xf32>
    %115 = arith.truncf %114 : vector<8x32xf32> to vector<8x32xbf16>
    %116 = arith.truncf %57 : vector<32x32xf32> to vector<32x32xbf16>
    %cst_33 = arith.constant dense<0.000000e+00> : vector<8x32xf32>
    %117 = tpu.matmul %115, %116, %cst_33 {dimension_numbers = #tpu.dot_dimension_numbers<[1], [0], [0], [1], [0, 0, 1, 1], [], []>} : vector<8x32xbf16>, vector<32x32xbf16>, vector<8x32xf32> -> vector<8x32xf32>
    %118 = vector.broadcast %58 : vector<1x32xf32> to vector<8x32xf32>
    %119 = arith.addf %117, %118 : vector<8x32xf32>
    %120 = vector.shape_cast %119 : vector<8x32xf32> to vector<1x8x32xf32>
    %121 = arith.addf %120, %28 : vector<1x8x32xf32>
    %c4 = arith.constant 4 : index
    %c0_34 = arith.constant 0 : index
    %122 = vector.load %arg7[%c4, %c0_34] : memref<47x128xf32, #tpu.memory_space<vmem>>, vector<1x32xf32>
    %c5 = arith.constant 5 : index
    %c0_35 = arith.constant 0 : index
    %123 = vector.load %arg7[%c5, %c0_35] : memref<47x128xf32, #tpu.memory_space<vmem>>, vector<1x32xf32>
    %cst_36 = arith.constant dense<0.000000e+00> : vector<1x8xf32>
    %124 = vector.multi_reduction <add>, %121, %cst_36 [2] : vector<1x8x32xf32> to vector<1x8xf32>
    %125 = vector.shape_cast %124 : vector<1x8xf32> to vector<1x8x1xf32>
    %cst_37 = arith.constant 3.200000e+01 : f32
    %126 = vector.broadcast %cst_37 : f32 to vector<1x8x1xf32>
    %127 = arith.divf %125, %126 : vector<1x8x1xf32>
    %128 = vector.broadcast %127 : vector<1x8x1xf32> to vector<1x8x32xf32>
    %129 = arith.subf %121, %128 : vector<1x8x32xf32>
    %130 = arith.mulf %129, %129 : vector<1x8x32xf32>
    %cst_38 = arith.constant dense<0.000000e+00> : vector<1x8xf32>
    %131 = vector.multi_reduction <add>, %130, %cst_38 [2] : vector<1x8x32xf32> to vector<1x8xf32>
    %132 = vector.shape_cast %131 : vector<1x8xf32> to vector<1x8x1xf32>
    %cst_39 = arith.constant 3.200000e+01 : f32
    %133 = vector.broadcast %cst_39 : f32 to vector<1x8x1xf32>
    %134 = arith.divf %132, %133 : vector<1x8x1xf32>
    %135 = vector.broadcast %127 : vector<1x8x1xf32> to vector<1x8x32xf32>
    %136 = arith.subf %121, %135 : vector<1x8x32xf32>
    %cst_40 = arith.constant 9.99999974E-6 : f32
    %137 = vector.broadcast %cst_40 : f32 to vector<1x8x1xf32>
    %138 = arith.addf %134, %137 : vector<1x8x1xf32>
    %139 = math.rsqrt %138 : vector<1x8x1xf32>
    %140 = vector.broadcast %139 : vector<1x8x1xf32> to vector<1x8x32xf32>
    %141 = arith.mulf %136, %140 : vector<1x8x32xf32>
    %142 = vector.shape_cast %122 : vector<1x32xf32> to vector<1x1x32xf32>
    %143 = vector.broadcast %142 : vector<1x1x32xf32> to vector<1x8x32xf32>
    %144 = arith.mulf %141, %143 : vector<1x8x32xf32>
    %145 = vector.shape_cast %123 : vector<1x32xf32> to vector<1x1x32xf32>
    %146 = vector.broadcast %145 : vector<1x1x32xf32> to vector<1x8x32xf32>
    %147 = arith.addf %144, %146 : vector<1x8x32xf32>
    %c64 = arith.constant 64 : index
    %c0_41 = arith.constant 0 : index
    %148 = vector.load %arg6[%c64, %c0_41] : memref<864x128xf32, #tpu.memory_space<vmem>>, vector<32x64xf32>
    %c6 = arith.constant 6 : index
    %c0_42 = arith.constant 0 : index
    %149 = vector.load %arg7[%c6, %c0_42] : memref<47x128xf32, #tpu.memory_space<vmem>>, vector<1x64xf32>
    %c96 = arith.constant 96 : index
    %c0_43 = arith.constant 0 : index
    %150 = vector.load %arg6[%c96, %c0_43] : memref<864x128xf32, #tpu.memory_space<vmem>>, vector<64x32xf32>
    %c7 = arith.constant 7 : index
    %c0_44 = arith.constant 0 : index
    %151 = vector.load %arg7[%c7, %c0_44] : memref<47x128xf32, #tpu.memory_space<vmem>>, vector<1x32xf32>
    %152 = vector.shape_cast %147 : vector<1x8x32xf32> to vector<8x32xf32>
    %153 = arith.truncf %152 : vector<8x32xf32> to vector<8x32xbf16>
    %154 = arith.truncf %148 : vector<32x64xf32> to vector<32x64xbf16>
    %cst_45 = arith.constant dense<0.000000e+00> : vector<8x64xf32>
    %155 = tpu.matmul %153, %154, %cst_45 {dimension_numbers = #tpu.dot_dimension_numbers<[1], [0], [0], [1], [0, 0, 1, 1], [], []>} : vector<8x32xbf16>, vector<32x64xbf16>, vector<8x64xf32> -> vector<8x64xf32>
    %156 = vector.broadcast %149 : vector<1x64xf32> to vector<8x64xf32>
    %157 = arith.addf %155, %156 : vector<8x64xf32>
    %158 = vector.shape_cast %157 : vector<8x64xf32> to vector<1x8x64xf32>
    %cst_46 = arith.constant 0.000000e+00 : f32
    %159 = vector.broadcast %cst_46 : f32 to vector<1x8x64xf32>
    %160 = arith.maximumf %158, %159 : vector<1x8x64xf32>
    %161 = vector.shape_cast %160 : vector<1x8x64xf32> to vector<8x64xf32>
    %162 = arith.truncf %161 : vector<8x64xf32> to vector<8x64xbf16>
    %163 = arith.truncf %150 : vector<64x32xf32> to vector<64x32xbf16>
    %cst_47 = arith.constant dense<0.000000e+00> : vector<8x32xf32>
    %164 = tpu.matmul %162, %163, %cst_47 {dimension_numbers = #tpu.dot_dimension_numbers<[1], [0], [0], [1], [0, 0, 1, 1], [], []>} : vector<8x64xbf16>, vector<64x32xbf16>, vector<8x32xf32> -> vector<8x32xf32>
    %165 = vector.broadcast %151 : vector<1x32xf32> to vector<8x32xf32>
    %166 = arith.addf %164, %165 : vector<8x32xf32>
    %167 = vector.shape_cast %166 : vector<8x32xf32> to vector<1x8x32xf32>
    %168 = arith.addf %167, %121 : vector<1x8x32xf32>
    %c10 = arith.constant 10 : index
    %c0_48 = arith.constant 0 : index
    %169 = vector.load %arg7[%c10, %c0_48] : memref<47x128xf32, #tpu.memory_space<vmem>>, vector<1x32xf32>
    %c11 = arith.constant 11 : index
    %c0_49 = arith.constant 0 : index
    %170 = vector.load %arg7[%c11, %c0_49] : memref<47x128xf32, #tpu.memory_space<vmem>>, vector<1x32xf32>
    %cst_50 = arith.constant dense<0.000000e+00> : vector<1x8xf32>
    %171 = vector.multi_reduction <add>, %168, %cst_50 [2] : vector<1x8x32xf32> to vector<1x8xf32>
    %172 = vector.shape_cast %171 : vector<1x8xf32> to vector<1x8x1xf32>
    %cst_51 = arith.constant 3.200000e+01 : f32
    %173 = vector.broadcast %cst_51 : f32 to vector<1x8x1xf32>
    %174 = arith.divf %172, %173 : vector<1x8x1xf32>
    %175 = vector.broadcast %174 : vector<1x8x1xf32> to vector<1x8x32xf32>
    %176 = arith.subf %168, %175 : vector<1x8x32xf32>
    %177 = arith.mulf %176, %176 : vector<1x8x32xf32>
    %cst_52 = arith.constant dense<0.000000e+00> : vector<1x8xf32>
    %178 = vector.multi_reduction <add>, %177, %cst_52 [2] : vector<1x8x32xf32> to vector<1x8xf32>
    %179 = vector.shape_cast %178 : vector<1x8xf32> to vector<1x8x1xf32>
    %cst_53 = arith.constant 3.200000e+01 : f32
    %180 = vector.broadcast %cst_53 : f32 to vector<1x8x1xf32>
    %181 = arith.divf %179, %180 : vector<1x8x1xf32>
    %182 = vector.broadcast %174 : vector<1x8x1xf32> to vector<1x8x32xf32>
    %183 = arith.subf %168, %182 : vector<1x8x32xf32>
    %cst_54 = arith.constant 9.99999974E-6 : f32
    %184 = vector.broadcast %cst_54 : f32 to vector<1x8x1xf32>
    %185 = arith.addf %181, %184 : vector<1x8x1xf32>
    %186 = math.rsqrt %185 : vector<1x8x1xf32>
    %187 = vector.broadcast %186 : vector<1x8x1xf32> to vector<1x8x32xf32>
    %188 = arith.mulf %183, %187 : vector<1x8x32xf32>
    %189 = vector.shape_cast %169 : vector<1x32xf32> to vector<1x1x32xf32>
    %190 = vector.broadcast %189 : vector<1x1x32xf32> to vector<1x8x32xf32>
    %191 = arith.mulf %188, %190 : vector<1x8x32xf32>
    %192 = vector.shape_cast %170 : vector<1x32xf32> to vector<1x1x32xf32>
    %193 = vector.broadcast %192 : vector<1x1x32xf32> to vector<1x8x32xf32>
    %194 = arith.addf %191, %193 : vector<1x8x32xf32>
    %c160 = arith.constant 160 : index
    %c0_55 = arith.constant 0 : index
    %195 = vector.load %arg6[%c160, %c0_55] : memref<864x128xf32, #tpu.memory_space<vmem>>, vector<32x96xf32>
    %c8 = arith.constant 8 : index
    %c0_56 = arith.constant 0 : index
    %196 = vector.load %arg7[%c8, %c0_56] : memref<47x128xf32, #tpu.memory_space<vmem>>, vector<1x96xf32>
    %c192 = arith.constant 192 : index
    %c0_57 = arith.constant 0 : index
    %197 = vector.load %arg6[%c192, %c0_57] : memref<864x128xf32, #tpu.memory_space<vmem>>, vector<32x32xf32>
    %c9 = arith.constant 9 : index
    %c0_58 = arith.constant 0 : index
    %198 = vector.load %arg7[%c9, %c0_58] : memref<47x128xf32, #tpu.memory_space<vmem>>, vector<1x32xf32>
    %199 = vector.shape_cast %194 : vector<1x8x32xf32> to vector<8x32xf32>
    %200 = arith.truncf %199 : vector<8x32xf32> to vector<8x32xbf16>
    %201 = arith.truncf %195 : vector<32x96xf32> to vector<32x96xbf16>
    %cst_59 = arith.constant dense<0.000000e+00> : vector<8x96xf32>
    %202 = tpu.matmul %200, %201, %cst_59 {dimension_numbers = #tpu.dot_dimension_numbers<[1], [0], [0], [1], [0, 0, 1, 1], [], []>} : vector<8x32xbf16>, vector<32x96xbf16>, vector<8x96xf32> -> vector<8x96xf32>
    %203 = vector.broadcast %196 : vector<1x96xf32> to vector<8x96xf32>
    %204 = arith.addf %202, %203 : vector<8x96xf32>
    %205 = vector.shape_cast %204 : vector<8x96xf32> to vector<1x8x96xf32>
    %206 = vector.extract_strided_slice %205 {offsets = [0, 0, 0], sizes = [1, 8, 32], strides = [1, 1, 1]} : vector<1x8x96xf32> to vector<1x8x32xf32>
    %207 = vector.extract_strided_slice %205 {offsets = [0, 0, 32], sizes = [1, 8, 32], strides = [1, 1, 1]} : vector<1x8x96xf32> to vector<1x8x32xf32>
    %208 = vector.extract_strided_slice %205 {offsets = [0, 0, 64], sizes = [1, 8, 32], strides = [1, 1, 1]} : vector<1x8x96xf32> to vector<1x8x32xf32>
    %209 = vector.extract_strided_slice %206 {offsets = [0, 0, 0], sizes = [1, 8, 8], strides = [1, 1, 1]} : vector<1x8x32xf32> to vector<1x8x8xf32>
    %210 = vector.extract_strided_slice %206 {offsets = [0, 0, 8], sizes = [1, 8, 8], strides = [1, 1, 1]} : vector<1x8x32xf32> to vector<1x8x8xf32>
    %211 = vector.extract_strided_slice %206 {offsets = [0, 0, 16], sizes = [1, 8, 8], strides = [1, 1, 1]} : vector<1x8x32xf32> to vector<1x8x8xf32>
    %212 = vector.extract_strided_slice %206 {offsets = [0, 0, 24], sizes = [1, 8, 8], strides = [1, 1, 1]} : vector<1x8x32xf32> to vector<1x8x8xf32>
    %213 = tpu.concatenate %209, %210, %211, %212 in 0 : vector<1x8x8xf32>, vector<1x8x8xf32>, vector<1x8x8xf32>, vector<1x8x8xf32> -> vector<4x8x8xf32>
    %214 = arith.truncf %213 : vector<4x8x8xf32> to vector<4x8x8xbf16>
    %215 = vector.extract_strided_slice %207 {offsets = [0, 0, 0], sizes = [1, 8, 8], strides = [1, 1, 1]} : vector<1x8x32xf32> to vector<1x8x8xf32>
    %216 = vector.extract_strided_slice %207 {offsets = [0, 0, 8], sizes = [1, 8, 8], strides = [1, 1, 1]} : vector<1x8x32xf32> to vector<1x8x8xf32>
    %217 = vector.extract_strided_slice %207 {offsets = [0, 0, 16], sizes = [1, 8, 8], strides = [1, 1, 1]} : vector<1x8x32xf32> to vector<1x8x8xf32>
    %218 = vector.extract_strided_slice %207 {offsets = [0, 0, 24], sizes = [1, 8, 8], strides = [1, 1, 1]} : vector<1x8x32xf32> to vector<1x8x8xf32>
    %219 = tpu.concatenate %215, %216, %217, %218 in 0 : vector<1x8x8xf32>, vector<1x8x8xf32>, vector<1x8x8xf32>, vector<1x8x8xf32> -> vector<4x8x8xf32>
    %220 = arith.truncf %219 : vector<4x8x8xf32> to vector<4x8x8xbf16>
    %221 = vector.extract_strided_slice %208 {offsets = [0, 0, 0], sizes = [1, 8, 8], strides = [1, 1, 1]} : vector<1x8x32xf32> to vector<1x8x8xf32>
    %222 = vector.extract_strided_slice %208 {offsets = [0, 0, 8], sizes = [1, 8, 8], strides = [1, 1, 1]} : vector<1x8x32xf32> to vector<1x8x8xf32>
    %223 = vector.extract_strided_slice %208 {offsets = [0, 0, 16], sizes = [1, 8, 8], strides = [1, 1, 1]} : vector<1x8x32xf32> to vector<1x8x8xf32>
    %224 = vector.extract_strided_slice %208 {offsets = [0, 0, 24], sizes = [1, 8, 8], strides = [1, 1, 1]} : vector<1x8x32xf32> to vector<1x8x8xf32>
    %225 = tpu.concatenate %221, %222, %223, %224 in 0 : vector<1x8x8xf32>, vector<1x8x8xf32>, vector<1x8x8xf32>, vector<1x8x8xf32> -> vector<4x8x8xf32>
    %226 = arith.truncf %225 : vector<4x8x8xf32> to vector<4x8x8xbf16>
    "tpu.trace_start"() <{level = 10 : i32, message = "hqd,hkd->hqk"}> : () -> ()
    %cst_60 = arith.constant dense<0.000000e+00> : vector<4x8x8xf32>
    %227 = tpu.matmul %214, %220, %cst_60 {dimension_numbers = #tpu.dot_dimension_numbers<[2], [2], [1], [1], [0, 0, 0, 1, 1, 1], [0], [0]>} : vector<4x8x8xbf16>, vector<4x8x8xbf16>, vector<4x8x8xf32> -> vector<4x8x8xf32>
    "tpu.trace_stop"() : () -> ()
    %cst_61 = arith.constant 0.353553385 : f32
    %228 = vector.broadcast %cst_61 : f32 to vector<4x8x8xf32>
    %229 = arith.mulf %227, %228 : vector<4x8x8xf32>
    %cst_62 = arith.constant -1.000000e+09 : f32
    %230 = vector.shape_cast %6 : vector<1x1x8xi1> to vector<1x1x8xi1>
    %231 = vector.broadcast %230 : vector<1x1x8xi1> to vector<4x8x8xi1>
    %232 = vector.broadcast %cst_62 : f32 to vector<4x8x8xf32>
    %233 = arith.select %231, %229, %232 : vector<4x8x8xi1>, vector<4x8x8xf32>
    %cst_63 = arith.constant dense<0xFF800000> : vector<4x8xf32>
    %234 = vector.multi_reduction <maximumf>, %233, %cst_63 [2] : vector<4x8x8xf32> to vector<4x8xf32>
    %235 = vector.shape_cast %234 : vector<4x8xf32> to vector<4x8x1xf32>
    %236 = vector.broadcast %235 : vector<4x8x1xf32> to vector<4x8x8xf32>
    %237 = arith.subf %233, %236 : vector<4x8x8xf32>
    %238 = math.exp %237 : vector<4x8x8xf32>
    %cst_64 = arith.constant dense<0.000000e+00> : vector<4x8xf32>
    %239 = vector.multi_reduction <add>, %238, %cst_64 [2] : vector<4x8x8xf32> to vector<4x8xf32>
    %240 = vector.shape_cast %239 : vector<4x8xf32> to vector<4x8x1xf32>
    %241 = tpu.reciprocal %240 {approx = true} : vector<4x8x1xf32> -> vector<4x8x1xf32>
    %242 = vector.broadcast %241 : vector<4x8x1xf32> to vector<4x8x8xf32>
    %243 = arith.mulf %238, %242 : vector<4x8x8xf32>
    %244 = arith.truncf %243 : vector<4x8x8xf32> to vector<4x8x8xbf16>
    "tpu.trace_start"() <{level = 10 : i32, message = "hqk,hkd->hqd"}> : () -> ()
    %cst_65 = arith.constant dense<0.000000e+00> : vector<4x8x8xf32>
    %245 = tpu.matmul %244, %226, %cst_65 {dimension_numbers = #tpu.dot_dimension_numbers<[2], [1], [1], [2], [0, 0, 0, 1, 1, 2], [0], [0]>} : vector<4x8x8xbf16>, vector<4x8x8xbf16>, vector<4x8x8xf32> -> vector<4x8x8xf32>
    "tpu.trace_stop"() : () -> ()
    %246 = vector.extract_strided_slice %245 {offsets = [0, 0, 0], sizes = [1, 8, 8], strides = [1, 1, 1]} : vector<4x8x8xf32> to vector<1x8x8xf32>
    %247 = vector.shape_cast %246 : vector<1x8x8xf32> to vector<8x8xf32>
    %248 = vector.extract_strided_slice %245 {offsets = [1, 0, 0], sizes = [1, 8, 8], strides = [1, 1, 1]} : vector<4x8x8xf32> to vector<1x8x8xf32>
    %249 = vector.shape_cast %248 : vector<1x8x8xf32> to vector<8x8xf32>
    %250 = vector.extract_strided_slice %245 {offsets = [2, 0, 0], sizes = [1, 8, 8], strides = [1, 1, 1]} : vector<4x8x8xf32> to vector<1x8x8xf32>
    %251 = vector.shape_cast %250 : vector<1x8x8xf32> to vector<8x8xf32>
    %252 = vector.extract_strided_slice %245 {offsets = [3, 0, 0], sizes = [1, 8, 8], strides = [1, 1, 1]} : vector<4x8x8xf32> to vector<1x8x8xf32>
    %253 = vector.shape_cast %252 : vector<1x8x8xf32> to vector<8x8xf32>
    %254 = tpu.concatenate %247, %249, %251, %253 in 1 : vector<8x8xf32>, vector<8x8xf32>, vector<8x8xf32>, vector<8x8xf32> -> vector<8x32xf32>
    %255 = arith.truncf %254 : vector<8x32xf32> to vector<8x32xbf16>
    %256 = arith.truncf %197 : vector<32x32xf32> to vector<32x32xbf16>
    %cst_66 = arith.constant dense<0.000000e+00> : vector<8x32xf32>
    %257 = tpu.matmul %255, %256, %cst_66 {dimension_numbers = #tpu.dot_dimension_numbers<[1], [0], [0], [1], [0, 0, 1, 1], [], []>} : vector<8x32xbf16>, vector<32x32xbf16>, vector<8x32xf32> -> vector<8x32xf32>
    %258 = vector.broadcast %198 : vector<1x32xf32> to vector<8x32xf32>
    %259 = arith.addf %257, %258 : vector<8x32xf32>
    %260 = vector.shape_cast %259 : vector<8x32xf32> to vector<1x8x32xf32>
    %261 = arith.addf %260, %168 : vector<1x8x32xf32>
    %c12 = arith.constant 12 : index
    %c0_67 = arith.constant 0 : index
    %262 = vector.load %arg7[%c12, %c0_67] : memref<47x128xf32, #tpu.memory_space<vmem>>, vector<1x32xf32>
    %c13 = arith.constant 13 : index
    %c0_68 = arith.constant 0 : index
    %263 = vector.load %arg7[%c13, %c0_68] : memref<47x128xf32, #tpu.memory_space<vmem>>, vector<1x32xf32>
    %cst_69 = arith.constant dense<0.000000e+00> : vector<1x8xf32>
    %264 = vector.multi_reduction <add>, %261, %cst_69 [2] : vector<1x8x32xf32> to vector<1x8xf32>
    %265 = vector.shape_cast %264 : vector<1x8xf32> to vector<1x8x1xf32>
    %cst_70 = arith.constant 3.200000e+01 : f32
    %266 = vector.broadcast %cst_70 : f32 to vector<1x8x1xf32>
    %267 = arith.divf %265, %266 : vector<1x8x1xf32>
    %268 = vector.broadcast %267 : vector<1x8x1xf32> to vector<1x8x32xf32>
    %269 = arith.subf %261, %268 : vector<1x8x32xf32>
    %270 = arith.mulf %269, %269 : vector<1x8x32xf32>
    %cst_71 = arith.constant dense<0.000000e+00> : vector<1x8xf32>
    %271 = vector.multi_reduction <add>, %270, %cst_71 [2] : vector<1x8x32xf32> to vector<1x8xf32>
    %272 = vector.shape_cast %271 : vector<1x8xf32> to vector<1x8x1xf32>
    %cst_72 = arith.constant 3.200000e+01 : f32
    %273 = vector.broadcast %cst_72 : f32 to vector<1x8x1xf32>
    %274 = arith.divf %272, %273 : vector<1x8x1xf32>
    %275 = vector.broadcast %267 : vector<1x8x1xf32> to vector<1x8x32xf32>
    %276 = arith.subf %261, %275 : vector<1x8x32xf32>
    %cst_73 = arith.constant 9.99999974E-6 : f32
    %277 = vector.broadcast %cst_73 : f32 to vector<1x8x1xf32>
    %278 = arith.addf %274, %277 : vector<1x8x1xf32>
    %279 = math.rsqrt %278 : vector<1x8x1xf32>
    %280 = vector.broadcast %279 : vector<1x8x1xf32> to vector<1x8x32xf32>
    %281 = arith.mulf %276, %280 : vector<1x8x32xf32>
    %282 = vector.shape_cast %262 : vector<1x32xf32> to vector<1x1x32xf32>
    %283 = vector.broadcast %282 : vector<1x1x32xf32> to vector<1x8x32xf32>
    %284 = arith.mulf %281, %283 : vector<1x8x32xf32>
    %285 = vector.shape_cast %263 : vector<1x32xf32> to vector<1x1x32xf32>
    %286 = vector.broadcast %285 : vector<1x1x32xf32> to vector<1x8x32xf32>
    %287 = arith.addf %284, %286 : vector<1x8x32xf32>
    %c224 = arith.constant 224 : index
    %c0_74 = arith.constant 0 : index
    %288 = vector.load %arg6[%c224, %c0_74] : memref<864x128xf32, #tpu.memory_space<vmem>>, vector<32x64xf32>
    %c14 = arith.constant 14 : index
    %c0_75 = arith.constant 0 : index
    %289 = vector.load %arg7[%c14, %c0_75] : memref<47x128xf32, #tpu.memory_space<vmem>>, vector<1x64xf32>
    %c256 = arith.constant 256 : index
    %c0_76 = arith.constant 0 : index
    %290 = vector.load %arg6[%c256, %c0_76] : memref<864x128xf32, #tpu.memory_space<vmem>>, vector<64x32xf32>
    %c15 = arith.constant 15 : index
    %c0_77 = arith.constant 0 : index
    %291 = vector.load %arg7[%c15, %c0_77] : memref<47x128xf32, #tpu.memory_space<vmem>>, vector<1x32xf32>
    %292 = vector.shape_cast %287 : vector<1x8x32xf32> to vector<8x32xf32>
    %293 = arith.truncf %292 : vector<8x32xf32> to vector<8x32xbf16>
    %294 = arith.truncf %288 : vector<32x64xf32> to vector<32x64xbf16>
    %cst_78 = arith.constant dense<0.000000e+00> : vector<8x64xf32>
    %295 = tpu.matmul %293, %294, %cst_78 {dimension_numbers = #tpu.dot_dimension_numbers<[1], [0], [0], [1], [0, 0, 1, 1], [], []>} : vector<8x32xbf16>, vector<32x64xbf16>, vector<8x64xf32> -> vector<8x64xf32>
    %296 = vector.broadcast %289 : vector<1x64xf32> to vector<8x64xf32>
    %297 = arith.addf %295, %296 : vector<8x64xf32>
    %298 = vector.shape_cast %297 : vector<8x64xf32> to vector<1x8x64xf32>
    %cst_79 = arith.constant 0.000000e+00 : f32
    %299 = vector.broadcast %cst_79 : f32 to vector<1x8x64xf32>
    %300 = arith.maximumf %298, %299 : vector<1x8x64xf32>
    %301 = vector.shape_cast %300 : vector<1x8x64xf32> to vector<8x64xf32>
    %302 = arith.truncf %301 : vector<8x64xf32> to vector<8x64xbf16>
    %303 = arith.truncf %290 : vector<64x32xf32> to vector<64x32xbf16>
    %cst_80 = arith.constant dense<0.000000e+00> : vector<8x32xf32>
    %304 = tpu.matmul %302, %303, %cst_80 {dimension_numbers = #tpu.dot_dimension_numbers<[1], [0], [0], [1], [0, 0, 1, 1], [], []>} : vector<8x64xbf16>, vector<64x32xbf16>, vector<8x32xf32> -> vector<8x32xf32>
    %305 = vector.broadcast %291 : vector<1x32xf32> to vector<8x32xf32>
    %306 = arith.addf %304, %305 : vector<8x32xf32>
    %307 = vector.shape_cast %306 : vector<8x32xf32> to vector<1x8x32xf32>
    %308 = arith.addf %307, %261 : vector<1x8x32xf32>
    %c16 = arith.constant 16 : index
    %c0_81 = arith.constant 0 : index
    %309 = vector.load %arg7[%c16, %c0_81] : memref<47x128xf32, #tpu.memory_space<vmem>>, vector<1x32xf32>
    %c17 = arith.constant 17 : index
    %c0_82 = arith.constant 0 : index
    %310 = vector.load %arg7[%c17, %c0_82] : memref<47x128xf32, #tpu.memory_space<vmem>>, vector<1x32xf32>
    %cst_83 = arith.constant dense<0.000000e+00> : vector<1x8xf32>
    %311 = vector.multi_reduction <add>, %308, %cst_83 [2] : vector<1x8x32xf32> to vector<1x8xf32>
    %312 = vector.shape_cast %311 : vector<1x8xf32> to vector<1x8x1xf32>
    %cst_84 = arith.constant 3.200000e+01 : f32
    %313 = vector.broadcast %cst_84 : f32 to vector<1x8x1xf32>
    %314 = arith.divf %312, %313 : vector<1x8x1xf32>
    %315 = vector.broadcast %314 : vector<1x8x1xf32> to vector<1x8x32xf32>
    %316 = arith.subf %308, %315 : vector<1x8x32xf32>
    %317 = arith.mulf %316, %316 : vector<1x8x32xf32>
    %cst_85 = arith.constant dense<0.000000e+00> : vector<1x8xf32>
    %318 = vector.multi_reduction <add>, %317, %cst_85 [2] : vector<1x8x32xf32> to vector<1x8xf32>
    %319 = vector.shape_cast %318 : vector<1x8xf32> to vector<1x8x1xf32>
    %cst_86 = arith.constant 3.200000e+01 : f32
    %320 = vector.broadcast %cst_86 : f32 to vector<1x8x1xf32>
    %321 = arith.divf %319, %320 : vector<1x8x1xf32>
    %322 = vector.broadcast %314 : vector<1x8x1xf32> to vector<1x8x32xf32>
    %323 = arith.subf %308, %322 : vector<1x8x32xf32>
    %cst_87 = arith.constant 9.99999974E-6 : f32
    %324 = vector.broadcast %cst_87 : f32 to vector<1x8x1xf32>
    %325 = arith.addf %321, %324 : vector<1x8x1xf32>
    %326 = math.rsqrt %325 : vector<1x8x1xf32>
    %327 = vector.broadcast %326 : vector<1x8x1xf32> to vector<1x8x32xf32>
    %328 = arith.mulf %323, %327 : vector<1x8x32xf32>
    %329 = vector.shape_cast %309 : vector<1x32xf32> to vector<1x1x32xf32>
    %330 = vector.broadcast %329 : vector<1x1x32xf32> to vector<1x8x32xf32>
    %331 = arith.mulf %328, %330 : vector<1x8x32xf32>
    %332 = vector.shape_cast %310 : vector<1x32xf32> to vector<1x1x32xf32>
    %333 = vector.broadcast %332 : vector<1x1x32xf32> to vector<1x8x32xf32>
    %334 = arith.addf %331, %333 : vector<1x8x32xf32>
    %c0_88 = arith.constant 0 : index
    %c0_89 = arith.constant 0 : index
    %c0_90 = arith.constant 0 : index
    %335 = vector.load %arg4[%c0_88, %c0_89, %c0_90] : memref<1x8x1xi32, #tpu.memory_space<vmem>>, vector<1x8x1xi32>
    %336 = vector.shape_cast %335 : vector<1x8x1xi32> to vector<8x1xi32>
    %337 = tpu.iota {dimensions = array<i32: 1>} : vector<8x32xi32>
    %338 = vector.broadcast %336 : vector<8x1xi32> to vector<8x32xi32>
    %339 = arith.cmpi eq, %338, %337 : vector<8x32xi32>
    %340 = arith.extui %339 : vector<8x32xi1> to vector<8x32xi32>
    %341 = arith.sitofp %340 : vector<8x32xi32> to vector<8x32xf32>
    %342 = arith.truncf %341 : vector<8x32xf32> to vector<8x32xbf16>
    %c48 = arith.constant 48 : index
    %c0_91 = arith.constant 0 : index
    %343 = vector.load %arg5[%c48, %c0_91] : memref<96x32xf32, #tpu.memory_space<vmem>>, vector<32x32xf32>
    %344 = arith.truncf %343 : vector<32x32xf32> to vector<32x32xbf16>
    %cst_92 = arith.constant dense<0.000000e+00> : vector<8x32xf32>
    %345 = tpu.matmul %342, %344, %cst_92 {dimension_numbers = #tpu.dot_dimension_numbers<[1], [0], [0], [1], [0, 0, 1, 1], [], []>} : vector<8x32xbf16>, vector<32x32xbf16>, vector<8x32xf32> -> vector<8x32xf32>
    %c80 = arith.constant 80 : index
    %c0_93 = arith.constant 0 : index
    %346 = vector.load %arg5[%c80, %c0_93] : memref<96x32xf32, #tpu.memory_space<vmem>>, vector<8x32xf32>
    %347 = arith.addf %345, %346 : vector<8x32xf32>
    %348 = vector.shape_cast %347 : vector<8x32xf32> to vector<1x8x32xf32>
    %c23 = arith.constant 23 : index
    %c0_94 = arith.constant 0 : index
    %349 = vector.load %arg7[%c23, %c0_94] : memref<47x128xf32, #tpu.memory_space<vmem>>, vector<1x32xf32>
    %c24 = arith.constant 24 : index
    %c0_95 = arith.constant 0 : index
    %350 = vector.load %arg7[%c24, %c0_95] : memref<47x128xf32, #tpu.memory_space<vmem>>, vector<1x32xf32>
    %cst_96 = arith.constant dense<0.000000e+00> : vector<1x8xf32>
    %351 = vector.multi_reduction <add>, %348, %cst_96 [2] : vector<1x8x32xf32> to vector<1x8xf32>
    %352 = vector.shape_cast %351 : vector<1x8xf32> to vector<1x8x1xf32>
    %cst_97 = arith.constant 3.200000e+01 : f32
    %353 = vector.broadcast %cst_97 : f32 to vector<1x8x1xf32>
    %354 = arith.divf %352, %353 : vector<1x8x1xf32>
    %355 = vector.broadcast %354 : vector<1x8x1xf32> to vector<1x8x32xf32>
    %356 = arith.subf %348, %355 : vector<1x8x32xf32>
    %357 = arith.mulf %356, %356 : vector<1x8x32xf32>
    %cst_98 = arith.constant dense<0.000000e+00> : vector<1x8xf32>
    %358 = vector.multi_reduction <add>, %357, %cst_98 [2] : vector<1x8x32xf32> to vector<1x8xf32>
    %359 = vector.shape_cast %358 : vector<1x8xf32> to vector<1x8x1xf32>
    %cst_99 = arith.constant 3.200000e+01 : f32
    %360 = vector.broadcast %cst_99 : f32 to vector<1x8x1xf32>
    %361 = arith.divf %359, %360 : vector<1x8x1xf32>
    %362 = vector.broadcast %354 : vector<1x8x1xf32> to vector<1x8x32xf32>
    %363 = arith.subf %348, %362 : vector<1x8x32xf32>
    %cst_100 = arith.constant 9.99999974E-6 : f32
    %364 = vector.broadcast %cst_100 : f32 to vector<1x8x1xf32>
    %365 = arith.addf %361, %364 : vector<1x8x1xf32>
    %366 = math.rsqrt %365 : vector<1x8x1xf32>
    %367 = vector.broadcast %366 : vector<1x8x1xf32> to vector<1x8x32xf32>
    %368 = arith.mulf %363, %367 : vector<1x8x32xf32>
    %369 = vector.shape_cast %349 : vector<1x32xf32> to vector<1x1x32xf32>
    %370 = vector.broadcast %369 : vector<1x1x32xf32> to vector<1x8x32xf32>
    %371 = arith.mulf %368, %370 : vector<1x8x32xf32>
    %372 = vector.shape_cast %350 : vector<1x32xf32> to vector<1x1x32xf32>
    %373 = vector.broadcast %372 : vector<1x1x32xf32> to vector<1x8x32xf32>
    %374 = arith.addf %371, %373 : vector<1x8x32xf32>
    %c320 = arith.constant 320 : index
    %c0_101 = arith.constant 0 : index
    %375 = vector.load %arg6[%c320, %c0_101] : memref<864x128xf32, #tpu.memory_space<vmem>>, vector<32x96xf32>
    %c18 = arith.constant 18 : index
    %c0_102 = arith.constant 0 : index
    %376 = vector.load %arg7[%c18, %c0_102] : memref<47x128xf32, #tpu.memory_space<vmem>>, vector<1x96xf32>
    %c352 = arith.constant 352 : index
    %c0_103 = arith.constant 0 : index
    %377 = vector.load %arg6[%c352, %c0_103] : memref<864x128xf32, #tpu.memory_space<vmem>>, vector<32x32xf32>
    %c19 = arith.constant 19 : index
    %c0_104 = arith.constant 0 : index
    %378 = vector.load %arg7[%c19, %c0_104] : memref<47x128xf32, #tpu.memory_space<vmem>>, vector<1x32xf32>
    %379 = vector.shape_cast %374 : vector<1x8x32xf32> to vector<8x32xf32>
    %380 = arith.truncf %379 : vector<8x32xf32> to vector<8x32xbf16>
    %381 = arith.truncf %375 : vector<32x96xf32> to vector<32x96xbf16>
    %cst_105 = arith.constant dense<0.000000e+00> : vector<8x96xf32>
    %382 = tpu.matmul %380, %381, %cst_105 {dimension_numbers = #tpu.dot_dimension_numbers<[1], [0], [0], [1], [0, 0, 1, 1], [], []>} : vector<8x32xbf16>, vector<32x96xbf16>, vector<8x96xf32> -> vector<8x96xf32>
    %383 = vector.broadcast %376 : vector<1x96xf32> to vector<8x96xf32>
    %384 = arith.addf %382, %383 : vector<8x96xf32>
    %385 = vector.shape_cast %384 : vector<8x96xf32> to vector<1x8x96xf32>
    %386 = vector.extract_strided_slice %385 {offsets = [0, 0, 0], sizes = [1, 8, 32], strides = [1, 1, 1]} : vector<1x8x96xf32> to vector<1x8x32xf32>
    %387 = vector.extract_strided_slice %385 {offsets = [0, 0, 32], sizes = [1, 8, 32], strides = [1, 1, 1]} : vector<1x8x96xf32> to vector<1x8x32xf32>
    %388 = vector.extract_strided_slice %385 {offsets = [0, 0, 64], sizes = [1, 8, 32], strides = [1, 1, 1]} : vector<1x8x96xf32> to vector<1x8x32xf32>
    %389 = vector.extract_strided_slice %386 {offsets = [0, 0, 0], sizes = [1, 8, 8], strides = [1, 1, 1]} : vector<1x8x32xf32> to vector<1x8x8xf32>
    %390 = vector.extract_strided_slice %386 {offsets = [0, 0, 8], sizes = [1, 8, 8], strides = [1, 1, 1]} : vector<1x8x32xf32> to vector<1x8x8xf32>
    %391 = vector.extract_strided_slice %386 {offsets = [0, 0, 16], sizes = [1, 8, 8], strides = [1, 1, 1]} : vector<1x8x32xf32> to vector<1x8x8xf32>
    %392 = vector.extract_strided_slice %386 {offsets = [0, 0, 24], sizes = [1, 8, 8], strides = [1, 1, 1]} : vector<1x8x32xf32> to vector<1x8x8xf32>
    %393 = tpu.concatenate %389, %390, %391, %392 in 0 : vector<1x8x8xf32>, vector<1x8x8xf32>, vector<1x8x8xf32>, vector<1x8x8xf32> -> vector<4x8x8xf32>
    %394 = arith.truncf %393 : vector<4x8x8xf32> to vector<4x8x8xbf16>
    %395 = vector.extract_strided_slice %387 {offsets = [0, 0, 0], sizes = [1, 8, 8], strides = [1, 1, 1]} : vector<1x8x32xf32> to vector<1x8x8xf32>
    %396 = vector.extract_strided_slice %387 {offsets = [0, 0, 8], sizes = [1, 8, 8], strides = [1, 1, 1]} : vector<1x8x32xf32> to vector<1x8x8xf32>
    %397 = vector.extract_strided_slice %387 {offsets = [0, 0, 16], sizes = [1, 8, 8], strides = [1, 1, 1]} : vector<1x8x32xf32> to vector<1x8x8xf32>
    %398 = vector.extract_strided_slice %387 {offsets = [0, 0, 24], sizes = [1, 8, 8], strides = [1, 1, 1]} : vector<1x8x32xf32> to vector<1x8x8xf32>
    %399 = tpu.concatenate %395, %396, %397, %398 in 0 : vector<1x8x8xf32>, vector<1x8x8xf32>, vector<1x8x8xf32>, vector<1x8x8xf32> -> vector<4x8x8xf32>
    %400 = arith.truncf %399 : vector<4x8x8xf32> to vector<4x8x8xbf16>
    %401 = vector.extract_strided_slice %388 {offsets = [0, 0, 0], sizes = [1, 8, 8], strides = [1, 1, 1]} : vector<1x8x32xf32> to vector<1x8x8xf32>
    %402 = vector.extract_strided_slice %388 {offsets = [0, 0, 8], sizes = [1, 8, 8], strides = [1, 1, 1]} : vector<1x8x32xf32> to vector<1x8x8xf32>
    %403 = vector.extract_strided_slice %388 {offsets = [0, 0, 16], sizes = [1, 8, 8], strides = [1, 1, 1]} : vector<1x8x32xf32> to vector<1x8x8xf32>
    %404 = vector.extract_strided_slice %388 {offsets = [0, 0, 24], sizes = [1, 8, 8], strides = [1, 1, 1]} : vector<1x8x32xf32> to vector<1x8x8xf32>
    %405 = tpu.concatenate %401, %402, %403, %404 in 0 : vector<1x8x8xf32>, vector<1x8x8xf32>, vector<1x8x8xf32>, vector<1x8x8xf32> -> vector<4x8x8xf32>
    %406 = arith.truncf %405 : vector<4x8x8xf32> to vector<4x8x8xbf16>
    "tpu.trace_start"() <{level = 10 : i32, message = "hqd,hkd->hqk"}> : () -> ()
    %cst_106 = arith.constant dense<0.000000e+00> : vector<4x8x8xf32>
    %407 = tpu.matmul %394, %400, %cst_106 {dimension_numbers = #tpu.dot_dimension_numbers<[2], [2], [1], [1], [0, 0, 0, 1, 1, 1], [0], [0]>} : vector<4x8x8xbf16>, vector<4x8x8xbf16>, vector<4x8x8xf32> -> vector<4x8x8xf32>
    "tpu.trace_stop"() : () -> ()
    %cst_107 = arith.constant 0.353553385 : f32
    %408 = vector.broadcast %cst_107 : f32 to vector<4x8x8xf32>
    %409 = arith.mulf %407, %408 : vector<4x8x8xf32>
    %cst_108 = arith.constant -1.000000e+09 : f32
    %410 = vector.shape_cast %14 : vector<1x8x8xi1> to vector<1x8x8xi1>
    %411 = vector.broadcast %410 : vector<1x8x8xi1> to vector<4x8x8xi1>
    %412 = vector.broadcast %cst_108 : f32 to vector<4x8x8xf32>
    %413 = arith.select %411, %409, %412 : vector<4x8x8xi1>, vector<4x8x8xf32>
    %cst_109 = arith.constant dense<0xFF800000> : vector<4x8xf32>
    %414 = vector.multi_reduction <maximumf>, %413, %cst_109 [2] : vector<4x8x8xf32> to vector<4x8xf32>
    %415 = vector.shape_cast %414 : vector<4x8xf32> to vector<4x8x1xf32>
    %416 = vector.broadcast %415 : vector<4x8x1xf32> to vector<4x8x8xf32>
    %417 = arith.subf %413, %416 : vector<4x8x8xf32>
    %418 = math.exp %417 : vector<4x8x8xf32>
    %cst_110 = arith.constant dense<0.000000e+00> : vector<4x8xf32>
    %419 = vector.multi_reduction <add>, %418, %cst_110 [2] : vector<4x8x8xf32> to vector<4x8xf32>
    %420 = vector.shape_cast %419 : vector<4x8xf32> to vector<4x8x1xf32>
    %421 = tpu.reciprocal %420 {approx = true} : vector<4x8x1xf32> -> vector<4x8x1xf32>
    %422 = vector.broadcast %421 : vector<4x8x1xf32> to vector<4x8x8xf32>
    %423 = arith.mulf %418, %422 : vector<4x8x8xf32>
    %424 = arith.truncf %423 : vector<4x8x8xf32> to vector<4x8x8xbf16>
    "tpu.trace_start"() <{level = 10 : i32, message = "hqk,hkd->hqd"}> : () -> ()
    %cst_111 = arith.constant dense<0.000000e+00> : vector<4x8x8xf32>
    %425 = tpu.matmul %424, %406, %cst_111 {dimension_numbers = #tpu.dot_dimension_numbers<[2], [1], [1], [2], [0, 0, 0, 1, 1, 2], [0], [0]>} : vector<4x8x8xbf16>, vector<4x8x8xbf16>, vector<4x8x8xf32> -> vector<4x8x8xf32>
    "tpu.trace_stop"() : () -> ()
    %426 = vector.extract_strided_slice %425 {offsets = [0, 0, 0], sizes = [1, 8, 8], strides = [1, 1, 1]} : vector<4x8x8xf32> to vector<1x8x8xf32>
    %427 = vector.shape_cast %426 : vector<1x8x8xf32> to vector<8x8xf32>
    %428 = vector.extract_strided_slice %425 {offsets = [1, 0, 0], sizes = [1, 8, 8], strides = [1, 1, 1]} : vector<4x8x8xf32> to vector<1x8x8xf32>
    %429 = vector.shape_cast %428 : vector<1x8x8xf32> to vector<8x8xf32>
    %430 = vector.extract_strided_slice %425 {offsets = [2, 0, 0], sizes = [1, 8, 8], strides = [1, 1, 1]} : vector<4x8x8xf32> to vector<1x8x8xf32>
    %431 = vector.shape_cast %430 : vector<1x8x8xf32> to vector<8x8xf32>
    %432 = vector.extract_strided_slice %425 {offsets = [3, 0, 0], sizes = [1, 8, 8], strides = [1, 1, 1]} : vector<4x8x8xf32> to vector<1x8x8xf32>
    %433 = vector.shape_cast %432 : vector<1x8x8xf32> to vector<8x8xf32>
    %434 = tpu.concatenate %427, %429, %431, %433 in 1 : vector<8x8xf32>, vector<8x8xf32>, vector<8x8xf32>, vector<8x8xf32> -> vector<8x32xf32>
    %435 = arith.truncf %434 : vector<8x32xf32> to vector<8x32xbf16>
    %436 = arith.truncf %377 : vector<32x32xf32> to vector<32x32xbf16>
    %cst_112 = arith.constant dense<0.000000e+00> : vector<8x32xf32>
    %437 = tpu.matmul %435, %436, %cst_112 {dimension_numbers = #tpu.dot_dimension_numbers<[1], [0], [0], [1], [0, 0, 1, 1], [], []>} : vector<8x32xbf16>, vector<32x32xbf16>, vector<8x32xf32> -> vector<8x32xf32>
    %438 = vector.broadcast %378 : vector<1x32xf32> to vector<8x32xf32>
    %439 = arith.addf %437, %438 : vector<8x32xf32>
    %440 = vector.shape_cast %439 : vector<8x32xf32> to vector<1x8x32xf32>
    %441 = arith.addf %348, %440 : vector<1x8x32xf32>
    %c23_113 = arith.constant 23 : index
    %c0_114 = arith.constant 0 : index
    %442 = vector.load %arg7[%c23_113, %c0_114] : memref<47x128xf32, #tpu.memory_space<vmem>>, vector<1x32xf32>
    %c24_115 = arith.constant 24 : index
    %c0_116 = arith.constant 0 : index
    %443 = vector.load %arg7[%c24_115, %c0_116] : memref<47x128xf32, #tpu.memory_space<vmem>>, vector<1x32xf32>
    %cst_117 = arith.constant dense<0.000000e+00> : vector<1x8xf32>
    %444 = vector.multi_reduction <add>, %441, %cst_117 [2] : vector<1x8x32xf32> to vector<1x8xf32>
    %445 = vector.shape_cast %444 : vector<1x8xf32> to vector<1x8x1xf32>
    %cst_118 = arith.constant 3.200000e+01 : f32
    %446 = vector.broadcast %cst_118 : f32 to vector<1x8x1xf32>
    %447 = arith.divf %445, %446 : vector<1x8x1xf32>
    %448 = vector.broadcast %447 : vector<1x8x1xf32> to vector<1x8x32xf32>
    %449 = arith.subf %441, %448 : vector<1x8x32xf32>
    %450 = arith.mulf %449, %449 : vector<1x8x32xf32>
    %cst_119 = arith.constant dense<0.000000e+00> : vector<1x8xf32>
    %451 = vector.multi_reduction <add>, %450, %cst_119 [2] : vector<1x8x32xf32> to vector<1x8xf32>
    %452 = vector.shape_cast %451 : vector<1x8xf32> to vector<1x8x1xf32>
    %cst_120 = arith.constant 3.200000e+01 : f32
    %453 = vector.broadcast %cst_120 : f32 to vector<1x8x1xf32>
    %454 = arith.divf %452, %453 : vector<1x8x1xf32>
    %455 = vector.broadcast %447 : vector<1x8x1xf32> to vector<1x8x32xf32>
    %456 = arith.subf %441, %455 : vector<1x8x32xf32>
    %cst_121 = arith.constant 9.99999974E-6 : f32
    %457 = vector.broadcast %cst_121 : f32 to vector<1x8x1xf32>
    %458 = arith.addf %454, %457 : vector<1x8x1xf32>
    %459 = math.rsqrt %458 : vector<1x8x1xf32>
    %460 = vector.broadcast %459 : vector<1x8x1xf32> to vector<1x8x32xf32>
    %461 = arith.mulf %456, %460 : vector<1x8x32xf32>
    %462 = vector.shape_cast %442 : vector<1x32xf32> to vector<1x1x32xf32>
    %463 = vector.broadcast %462 : vector<1x1x32xf32> to vector<1x8x32xf32>
    %464 = arith.mulf %461, %463 : vector<1x8x32xf32>
    %465 = vector.shape_cast %443 : vector<1x32xf32> to vector<1x1x32xf32>
    %466 = vector.broadcast %465 : vector<1x1x32xf32> to vector<1x8x32xf32>
    %467 = arith.addf %464, %466 : vector<1x8x32xf32>
    %c384 = arith.constant 384 : index
    %c0_122 = arith.constant 0 : index
    %468 = vector.load %arg6[%c384, %c0_122] : memref<864x128xf32, #tpu.memory_space<vmem>>, vector<32x32xf32>
    %c20 = arith.constant 20 : index
    %c0_123 = arith.constant 0 : index
    %469 = vector.load %arg7[%c20, %c0_123] : memref<47x128xf32, #tpu.memory_space<vmem>>, vector<1x32xf32>
    %c416 = arith.constant 416 : index
    %c0_124 = arith.constant 0 : index
    %470 = vector.load %arg6[%c416, %c0_124] : memref<864x128xf32, #tpu.memory_space<vmem>>, vector<32x64xf32>
    %c21 = arith.constant 21 : index
    %c0_125 = arith.constant 0 : index
    %471 = vector.load %arg7[%c21, %c0_125] : memref<47x128xf32, #tpu.memory_space<vmem>>, vector<1x64xf32>
    %c448 = arith.constant 448 : index
    %c0_126 = arith.constant 0 : index
    %472 = vector.load %arg6[%c448, %c0_126] : memref<864x128xf32, #tpu.memory_space<vmem>>, vector<32x32xf32>
    %c22 = arith.constant 22 : index
    %c0_127 = arith.constant 0 : index
    %473 = vector.load %arg7[%c22, %c0_127] : memref<47x128xf32, #tpu.memory_space<vmem>>, vector<1x32xf32>
    %474 = vector.shape_cast %467 : vector<1x8x32xf32> to vector<8x32xf32>
    %475 = arith.truncf %474 : vector<8x32xf32> to vector<8x32xbf16>
    %476 = arith.truncf %468 : vector<32x32xf32> to vector<32x32xbf16>
    %cst_128 = arith.constant dense<0.000000e+00> : vector<8x32xf32>
    %477 = tpu.matmul %475, %476, %cst_128 {dimension_numbers = #tpu.dot_dimension_numbers<[1], [0], [0], [1], [0, 0, 1, 1], [], []>} : vector<8x32xbf16>, vector<32x32xbf16>, vector<8x32xf32> -> vector<8x32xf32>
    %478 = vector.broadcast %469 : vector<1x32xf32> to vector<8x32xf32>
    %479 = arith.addf %477, %478 : vector<8x32xf32>
    %480 = vector.shape_cast %479 : vector<8x32xf32> to vector<1x8x32xf32>
    %481 = vector.shape_cast %334 : vector<1x8x32xf32> to vector<8x32xf32>
    %482 = arith.truncf %481 : vector<8x32xf32> to vector<8x32xbf16>
    %483 = arith.truncf %470 : vector<32x64xf32> to vector<32x64xbf16>
    %cst_129 = arith.constant dense<0.000000e+00> : vector<8x64xf32>
    %484 = tpu.matmul %482, %483, %cst_129 {dimension_numbers = #tpu.dot_dimension_numbers<[1], [0], [0], [1], [0, 0, 1, 1], [], []>} : vector<8x32xbf16>, vector<32x64xbf16>, vector<8x64xf32> -> vector<8x64xf32>
    %485 = vector.broadcast %471 : vector<1x64xf32> to vector<8x64xf32>
    %486 = arith.addf %484, %485 : vector<8x64xf32>
    %487 = vector.shape_cast %486 : vector<8x64xf32> to vector<1x8x64xf32>
    %488 = vector.extract_strided_slice %487 {offsets = [0, 0, 0], sizes = [1, 8, 32], strides = [1, 1, 1]} : vector<1x8x64xf32> to vector<1x8x32xf32>
    %489 = vector.extract_strided_slice %487 {offsets = [0, 0, 32], sizes = [1, 8, 32], strides = [1, 1, 1]} : vector<1x8x64xf32> to vector<1x8x32xf32>
    %490 = vector.extract_strided_slice %480 {offsets = [0, 0, 0], sizes = [1, 8, 8], strides = [1, 1, 1]} : vector<1x8x32xf32> to vector<1x8x8xf32>
    %491 = vector.extract_strided_slice %480 {offsets = [0, 0, 8], sizes = [1, 8, 8], strides = [1, 1, 1]} : vector<1x8x32xf32> to vector<1x8x8xf32>
    %492 = vector.extract_strided_slice %480 {offsets = [0, 0, 16], sizes = [1, 8, 8], strides = [1, 1, 1]} : vector<1x8x32xf32> to vector<1x8x8xf32>
    %493 = vector.extract_strided_slice %480 {offsets = [0, 0, 24], sizes = [1, 8, 8], strides = [1, 1, 1]} : vector<1x8x32xf32> to vector<1x8x8xf32>
    %494 = tpu.concatenate %490, %491, %492, %493 in 0 : vector<1x8x8xf32>, vector<1x8x8xf32>, vector<1x8x8xf32>, vector<1x8x8xf32> -> vector<4x8x8xf32>
    %495 = arith.truncf %494 : vector<4x8x8xf32> to vector<4x8x8xbf16>
    %496 = vector.extract_strided_slice %488 {offsets = [0, 0, 0], sizes = [1, 8, 8], strides = [1, 1, 1]} : vector<1x8x32xf32> to vector<1x8x8xf32>
    %497 = vector.extract_strided_slice %488 {offsets = [0, 0, 8], sizes = [1, 8, 8], strides = [1, 1, 1]} : vector<1x8x32xf32> to vector<1x8x8xf32>
    %498 = vector.extract_strided_slice %488 {offsets = [0, 0, 16], sizes = [1, 8, 8], strides = [1, 1, 1]} : vector<1x8x32xf32> to vector<1x8x8xf32>
    %499 = vector.extract_strided_slice %488 {offsets = [0, 0, 24], sizes = [1, 8, 8], strides = [1, 1, 1]} : vector<1x8x32xf32> to vector<1x8x8xf32>
    %500 = tpu.concatenate %496, %497, %498, %499 in 0 : vector<1x8x8xf32>, vector<1x8x8xf32>, vector<1x8x8xf32>, vector<1x8x8xf32> -> vector<4x8x8xf32>
    %501 = arith.truncf %500 : vector<4x8x8xf32> to vector<4x8x8xbf16>
    %502 = vector.extract_strided_slice %489 {offsets = [0, 0, 0], sizes = [1, 8, 8], strides = [1, 1, 1]} : vector<1x8x32xf32> to vector<1x8x8xf32>
    %503 = vector.extract_strided_slice %489 {offsets = [0, 0, 8], sizes = [1, 8, 8], strides = [1, 1, 1]} : vector<1x8x32xf32> to vector<1x8x8xf32>
    %504 = vector.extract_strided_slice %489 {offsets = [0, 0, 16], sizes = [1, 8, 8], strides = [1, 1, 1]} : vector<1x8x32xf32> to vector<1x8x8xf32>
    %505 = vector.extract_strided_slice %489 {offsets = [0, 0, 24], sizes = [1, 8, 8], strides = [1, 1, 1]} : vector<1x8x32xf32> to vector<1x8x8xf32>
    %506 = tpu.concatenate %502, %503, %504, %505 in 0 : vector<1x8x8xf32>, vector<1x8x8xf32>, vector<1x8x8xf32>, vector<1x8x8xf32> -> vector<4x8x8xf32>
    %507 = arith.truncf %506 : vector<4x8x8xf32> to vector<4x8x8xbf16>
    "tpu.trace_start"() <{level = 10 : i32, message = "hqd,hkd->hqk"}> : () -> ()
    %cst_130 = arith.constant dense<0.000000e+00> : vector<4x8x8xf32>
    %508 = tpu.matmul %495, %501, %cst_130 {dimension_numbers = #tpu.dot_dimension_numbers<[2], [2], [1], [1], [0, 0, 0, 1, 1, 1], [0], [0]>} : vector<4x8x8xbf16>, vector<4x8x8xbf16>, vector<4x8x8xf32> -> vector<4x8x8xf32>
    "tpu.trace_stop"() : () -> ()
    %cst_131 = arith.constant 0.353553385 : f32
    %509 = vector.broadcast %cst_131 : f32 to vector<4x8x8xf32>
    %510 = arith.mulf %508, %509 : vector<4x8x8xf32>
    %cst_132 = arith.constant -1.000000e+09 : f32
    %511 = vector.shape_cast %6 : vector<1x1x8xi1> to vector<1x1x8xi1>
    %512 = vector.broadcast %511 : vector<1x1x8xi1> to vector<4x8x8xi1>
    %513 = vector.broadcast %cst_132 : f32 to vector<4x8x8xf32>
    %514 = arith.select %512, %510, %513 : vector<4x8x8xi1>, vector<4x8x8xf32>
    %cst_133 = arith.constant dense<0xFF800000> : vector<4x8xf32>
    %515 = vector.multi_reduction <maximumf>, %514, %cst_133 [2] : vector<4x8x8xf32> to vector<4x8xf32>
    %516 = vector.shape_cast %515 : vector<4x8xf32> to vector<4x8x1xf32>
    %517 = vector.broadcast %516 : vector<4x8x1xf32> to vector<4x8x8xf32>
    %518 = arith.subf %514, %517 : vector<4x8x8xf32>
    %519 = math.exp %518 : vector<4x8x8xf32>
    %cst_134 = arith.constant dense<0.000000e+00> : vector<4x8xf32>
    %520 = vector.multi_reduction <add>, %519, %cst_134 [2] : vector<4x8x8xf32> to vector<4x8xf32>
    %521 = vector.shape_cast %520 : vector<4x8xf32> to vector<4x8x1xf32>
    %522 = tpu.reciprocal %521 {approx = true} : vector<4x8x1xf32> -> vector<4x8x1xf32>
    %523 = vector.broadcast %522 : vector<4x8x1xf32> to vector<4x8x8xf32>
    %524 = arith.mulf %519, %523 : vector<4x8x8xf32>
    %525 = arith.truncf %524 : vector<4x8x8xf32> to vector<4x8x8xbf16>
    "tpu.trace_start"() <{level = 10 : i32, message = "hqk,hkd->hqd"}> : () -> ()
    %cst_135 = arith.constant dense<0.000000e+00> : vector<4x8x8xf32>
    %526 = tpu.matmul %525, %507, %cst_135 {dimension_numbers = #tpu.dot_dimension_numbers<[2], [1], [1], [2], [0, 0, 0, 1, 1, 2], [0], [0]>} : vector<4x8x8xbf16>, vector<4x8x8xbf16>, vector<4x8x8xf32> -> vector<4x8x8xf32>
    "tpu.trace_stop"() : () -> ()
    %527 = vector.extract_strided_slice %526 {offsets = [0, 0, 0], sizes = [1, 8, 8], strides = [1, 1, 1]} : vector<4x8x8xf32> to vector<1x8x8xf32>
    %528 = vector.shape_cast %527 : vector<1x8x8xf32> to vector<8x8xf32>
    %529 = vector.extract_strided_slice %526 {offsets = [1, 0, 0], sizes = [1, 8, 8], strides = [1, 1, 1]} : vector<4x8x8xf32> to vector<1x8x8xf32>
    %530 = vector.shape_cast %529 : vector<1x8x8xf32> to vector<8x8xf32>
    %531 = vector.extract_strided_slice %526 {offsets = [2, 0, 0], sizes = [1, 8, 8], strides = [1, 1, 1]} : vector<4x8x8xf32> to vector<1x8x8xf32>
    %532 = vector.shape_cast %531 : vector<1x8x8xf32> to vector<8x8xf32>
    %533 = vector.extract_strided_slice %526 {offsets = [3, 0, 0], sizes = [1, 8, 8], strides = [1, 1, 1]} : vector<4x8x8xf32> to vector<1x8x8xf32>
    %534 = vector.shape_cast %533 : vector<1x8x8xf32> to vector<8x8xf32>
    %535 = tpu.concatenate %528, %530, %532, %534 in 1 : vector<8x8xf32>, vector<8x8xf32>, vector<8x8xf32>, vector<8x8xf32> -> vector<8x32xf32>
    %536 = arith.truncf %535 : vector<8x32xf32> to vector<8x32xbf16>
    %537 = arith.truncf %472 : vector<32x32xf32> to vector<32x32xbf16>
    %cst_136 = arith.constant dense<0.000000e+00> : vector<8x32xf32>
    %538 = tpu.matmul %536, %537, %cst_136 {dimension_numbers = #tpu.dot_dimension_numbers<[1], [0], [0], [1], [0, 0, 1, 1], [], []>} : vector<8x32xbf16>, vector<32x32xbf16>, vector<8x32xf32> -> vector<8x32xf32>
    %539 = vector.broadcast %473 : vector<1x32xf32> to vector<8x32xf32>
    %540 = arith.addf %538, %539 : vector<8x32xf32>
    %541 = vector.shape_cast %540 : vector<8x32xf32> to vector<1x8x32xf32>
    %542 = arith.addf %541, %467 : vector<1x8x32xf32>
    %c25 = arith.constant 25 : index
    %c0_137 = arith.constant 0 : index
    %543 = vector.load %arg7[%c25, %c0_137] : memref<47x128xf32, #tpu.memory_space<vmem>>, vector<1x32xf32>
    %c26 = arith.constant 26 : index
    %c0_138 = arith.constant 0 : index
    %544 = vector.load %arg7[%c26, %c0_138] : memref<47x128xf32, #tpu.memory_space<vmem>>, vector<1x32xf32>
    %cst_139 = arith.constant dense<0.000000e+00> : vector<1x8xf32>
    %545 = vector.multi_reduction <add>, %542, %cst_139 [2] : vector<1x8x32xf32> to vector<1x8xf32>
    %546 = vector.shape_cast %545 : vector<1x8xf32> to vector<1x8x1xf32>
    %cst_140 = arith.constant 3.200000e+01 : f32
    %547 = vector.broadcast %cst_140 : f32 to vector<1x8x1xf32>
    %548 = arith.divf %546, %547 : vector<1x8x1xf32>
    %549 = vector.broadcast %548 : vector<1x8x1xf32> to vector<1x8x32xf32>
    %550 = arith.subf %542, %549 : vector<1x8x32xf32>
    %551 = arith.mulf %550, %550 : vector<1x8x32xf32>
    %cst_141 = arith.constant dense<0.000000e+00> : vector<1x8xf32>
    %552 = vector.multi_reduction <add>, %551, %cst_141 [2] : vector<1x8x32xf32> to vector<1x8xf32>
    %553 = vector.shape_cast %552 : vector<1x8xf32> to vector<1x8x1xf32>
    %cst_142 = arith.constant 3.200000e+01 : f32
    %554 = vector.broadcast %cst_142 : f32 to vector<1x8x1xf32>
    %555 = arith.divf %553, %554 : vector<1x8x1xf32>
    %556 = vector.broadcast %548 : vector<1x8x1xf32> to vector<1x8x32xf32>
    %557 = arith.subf %542, %556 : vector<1x8x32xf32>
    %cst_143 = arith.constant 9.99999974E-6 : f32
    %558 = vector.broadcast %cst_143 : f32 to vector<1x8x1xf32>
    %559 = arith.addf %555, %558 : vector<1x8x1xf32>
    %560 = math.rsqrt %559 : vector<1x8x1xf32>
    %561 = vector.broadcast %560 : vector<1x8x1xf32> to vector<1x8x32xf32>
    %562 = arith.mulf %557, %561 : vector<1x8x32xf32>
    %563 = vector.shape_cast %543 : vector<1x32xf32> to vector<1x1x32xf32>
    %564 = vector.broadcast %563 : vector<1x1x32xf32> to vector<1x8x32xf32>
    %565 = arith.mulf %562, %564 : vector<1x8x32xf32>
    %566 = vector.shape_cast %544 : vector<1x32xf32> to vector<1x1x32xf32>
    %567 = vector.broadcast %566 : vector<1x1x32xf32> to vector<1x8x32xf32>
    %568 = arith.addf %565, %567 : vector<1x8x32xf32>
    %569 = arith.addf %568, %467 : vector<1x8x32xf32>
    %c480 = arith.constant 480 : index
    %c0_144 = arith.constant 0 : index
    %570 = vector.load %arg6[%c480, %c0_144] : memref<864x128xf32, #tpu.memory_space<vmem>>, vector<32x64xf32>
    %c29 = arith.constant 29 : index
    %c0_145 = arith.constant 0 : index
    %571 = vector.load %arg7[%c29, %c0_145] : memref<47x128xf32, #tpu.memory_space<vmem>>, vector<1x64xf32>
    %c512 = arith.constant 512 : index
    %c0_146 = arith.constant 0 : index
    %572 = vector.load %arg6[%c512, %c0_146] : memref<864x128xf32, #tpu.memory_space<vmem>>, vector<64x32xf32>
    %c30 = arith.constant 30 : index
    %c0_147 = arith.constant 0 : index
    %573 = vector.load %arg7[%c30, %c0_147] : memref<47x128xf32, #tpu.memory_space<vmem>>, vector<1x32xf32>
    %574 = vector.shape_cast %569 : vector<1x8x32xf32> to vector<8x32xf32>
    %575 = arith.truncf %574 : vector<8x32xf32> to vector<8x32xbf16>
    %576 = arith.truncf %570 : vector<32x64xf32> to vector<32x64xbf16>
    %cst_148 = arith.constant dense<0.000000e+00> : vector<8x64xf32>
    %577 = tpu.matmul %575, %576, %cst_148 {dimension_numbers = #tpu.dot_dimension_numbers<[1], [0], [0], [1], [0, 0, 1, 1], [], []>} : vector<8x32xbf16>, vector<32x64xbf16>, vector<8x64xf32> -> vector<8x64xf32>
    %578 = vector.broadcast %571 : vector<1x64xf32> to vector<8x64xf32>
    %579 = arith.addf %577, %578 : vector<8x64xf32>
    %580 = vector.shape_cast %579 : vector<8x64xf32> to vector<1x8x64xf32>
    %cst_149 = arith.constant 0.000000e+00 : f32
    %581 = vector.broadcast %cst_149 : f32 to vector<1x8x64xf32>
    %582 = arith.maximumf %580, %581 : vector<1x8x64xf32>
    %583 = vector.shape_cast %582 : vector<1x8x64xf32> to vector<8x64xf32>
    %584 = arith.truncf %583 : vector<8x64xf32> to vector<8x64xbf16>
    %585 = arith.truncf %572 : vector<64x32xf32> to vector<64x32xbf16>
    %cst_150 = arith.constant dense<0.000000e+00> : vector<8x32xf32>
    %586 = tpu.matmul %584, %585, %cst_150 {dimension_numbers = #tpu.dot_dimension_numbers<[1], [0], [0], [1], [0, 0, 1, 1], [], []>} : vector<8x64xbf16>, vector<64x32xbf16>, vector<8x32xf32> -> vector<8x32xf32>
    %587 = vector.broadcast %573 : vector<1x32xf32> to vector<8x32xf32>
    %588 = arith.addf %586, %587 : vector<8x32xf32>
    %589 = vector.shape_cast %588 : vector<8x32xf32> to vector<1x8x32xf32>
    %c27 = arith.constant 27 : index
    %c0_151 = arith.constant 0 : index
    %590 = vector.load %arg7[%c27, %c0_151] : memref<47x128xf32, #tpu.memory_space<vmem>>, vector<1x32xf32>
    %c28 = arith.constant 28 : index
    %c0_152 = arith.constant 0 : index
    %591 = vector.load %arg7[%c28, %c0_152] : memref<47x128xf32, #tpu.memory_space<vmem>>, vector<1x32xf32>
    %cst_153 = arith.constant dense<0.000000e+00> : vector<1x8xf32>
    %592 = vector.multi_reduction <add>, %589, %cst_153 [2] : vector<1x8x32xf32> to vector<1x8xf32>
    %593 = vector.shape_cast %592 : vector<1x8xf32> to vector<1x8x1xf32>
    %cst_154 = arith.constant 3.200000e+01 : f32
    %594 = vector.broadcast %cst_154 : f32 to vector<1x8x1xf32>
    %595 = arith.divf %593, %594 : vector<1x8x1xf32>
    %596 = vector.broadcast %595 : vector<1x8x1xf32> to vector<1x8x32xf32>
    %597 = arith.subf %589, %596 : vector<1x8x32xf32>
    %598 = arith.mulf %597, %597 : vector<1x8x32xf32>
    %cst_155 = arith.constant dense<0.000000e+00> : vector<1x8xf32>
    %599 = vector.multi_reduction <add>, %598, %cst_155 [2] : vector<1x8x32xf32> to vector<1x8xf32>
    %600 = vector.shape_cast %599 : vector<1x8xf32> to vector<1x8x1xf32>
    %cst_156 = arith.constant 3.200000e+01 : f32
    %601 = vector.broadcast %cst_156 : f32 to vector<1x8x1xf32>
    %602 = arith.divf %600, %601 : vector<1x8x1xf32>
    %603 = vector.broadcast %595 : vector<1x8x1xf32> to vector<1x8x32xf32>
    %604 = arith.subf %589, %603 : vector<1x8x32xf32>
    %cst_157 = arith.constant 9.99999974E-6 : f32
    %605 = vector.broadcast %cst_157 : f32 to vector<1x8x1xf32>
    %606 = arith.addf %602, %605 : vector<1x8x1xf32>
    %607 = math.rsqrt %606 : vector<1x8x1xf32>
    %608 = vector.broadcast %607 : vector<1x8x1xf32> to vector<1x8x32xf32>
    %609 = arith.mulf %604, %608 : vector<1x8x32xf32>
    %610 = vector.shape_cast %590 : vector<1x32xf32> to vector<1x1x32xf32>
    %611 = vector.broadcast %610 : vector<1x1x32xf32> to vector<1x8x32xf32>
    %612 = arith.mulf %609, %611 : vector<1x8x32xf32>
    %613 = vector.shape_cast %591 : vector<1x32xf32> to vector<1x1x32xf32>
    %614 = vector.broadcast %613 : vector<1x1x32xf32> to vector<1x8x32xf32>
    %615 = arith.addf %612, %614 : vector<1x8x32xf32>
    %616 = arith.addf %615, %569 : vector<1x8x32xf32>
    %c36 = arith.constant 36 : index
    %c0_158 = arith.constant 0 : index
    %617 = vector.load %arg7[%c36, %c0_158] : memref<47x128xf32, #tpu.memory_space<vmem>>, vector<1x32xf32>
    %c37 = arith.constant 37 : index
    %c0_159 = arith.constant 0 : index
    %618 = vector.load %arg7[%c37, %c0_159] : memref<47x128xf32, #tpu.memory_space<vmem>>, vector<1x32xf32>
    %cst_160 = arith.constant dense<0.000000e+00> : vector<1x8xf32>
    %619 = vector.multi_reduction <add>, %616, %cst_160 [2] : vector<1x8x32xf32> to vector<1x8xf32>
    %620 = vector.shape_cast %619 : vector<1x8xf32> to vector<1x8x1xf32>
    %cst_161 = arith.constant 3.200000e+01 : f32
    %621 = vector.broadcast %cst_161 : f32 to vector<1x8x1xf32>
    %622 = arith.divf %620, %621 : vector<1x8x1xf32>
    %623 = vector.broadcast %622 : vector<1x8x1xf32> to vector<1x8x32xf32>
    %624 = arith.subf %616, %623 : vector<1x8x32xf32>
    %625 = arith.mulf %624, %624 : vector<1x8x32xf32>
    %cst_162 = arith.constant dense<0.000000e+00> : vector<1x8xf32>
    %626 = vector.multi_reduction <add>, %625, %cst_162 [2] : vector<1x8x32xf32> to vector<1x8xf32>
    %627 = vector.shape_cast %626 : vector<1x8xf32> to vector<1x8x1xf32>
    %cst_163 = arith.constant 3.200000e+01 : f32
    %628 = vector.broadcast %cst_163 : f32 to vector<1x8x1xf32>
    %629 = arith.divf %627, %628 : vector<1x8x1xf32>
    %630 = vector.broadcast %622 : vector<1x8x1xf32> to vector<1x8x32xf32>
    %631 = arith.subf %616, %630 : vector<1x8x32xf32>
    %cst_164 = arith.constant 9.99999974E-6 : f32
    %632 = vector.broadcast %cst_164 : f32 to vector<1x8x1xf32>
    %633 = arith.addf %629, %632 : vector<1x8x1xf32>
    %634 = math.rsqrt %633 : vector<1x8x1xf32>
    %635 = vector.broadcast %634 : vector<1x8x1xf32> to vector<1x8x32xf32>
    %636 = arith.mulf %631, %635 : vector<1x8x32xf32>
    %637 = vector.shape_cast %617 : vector<1x32xf32> to vector<1x1x32xf32>
    %638 = vector.broadcast %637 : vector<1x1x32xf32> to vector<1x8x32xf32>
    %639 = arith.mulf %636, %638 : vector<1x8x32xf32>
    %640 = vector.shape_cast %618 : vector<1x32xf32> to vector<1x1x32xf32>
    %641 = vector.broadcast %640 : vector<1x1x32xf32> to vector<1x8x32xf32>
    %642 = arith.addf %639, %641 : vector<1x8x32xf32>
    %c576 = arith.constant 576 : index
    %c0_165 = arith.constant 0 : index
    %643 = vector.load %arg6[%c576, %c0_165] : memref<864x128xf32, #tpu.memory_space<vmem>>, vector<32x96xf32>
    %c31 = arith.constant 31 : index
    %c0_166 = arith.constant 0 : index
    %644 = vector.load %arg7[%c31, %c0_166] : memref<47x128xf32, #tpu.memory_space<vmem>>, vector<1x96xf32>
    %c608 = arith.constant 608 : index
    %c0_167 = arith.constant 0 : index
    %645 = vector.load %arg6[%c608, %c0_167] : memref<864x128xf32, #tpu.memory_space<vmem>>, vector<32x32xf32>
    %c32_168 = arith.constant 32 : index
    %c0_169 = arith.constant 0 : index
    %646 = vector.load %arg7[%c32_168, %c0_169] : memref<47x128xf32, #tpu.memory_space<vmem>>, vector<1x32xf32>
    %647 = vector.shape_cast %642 : vector<1x8x32xf32> to vector<8x32xf32>
    %648 = arith.truncf %647 : vector<8x32xf32> to vector<8x32xbf16>
    %649 = arith.truncf %643 : vector<32x96xf32> to vector<32x96xbf16>
    %cst_170 = arith.constant dense<0.000000e+00> : vector<8x96xf32>
    %650 = tpu.matmul %648, %649, %cst_170 {dimension_numbers = #tpu.dot_dimension_numbers<[1], [0], [0], [1], [0, 0, 1, 1], [], []>} : vector<8x32xbf16>, vector<32x96xbf16>, vector<8x96xf32> -> vector<8x96xf32>
    %651 = vector.broadcast %644 : vector<1x96xf32> to vector<8x96xf32>
    %652 = arith.addf %650, %651 : vector<8x96xf32>
    %653 = vector.shape_cast %652 : vector<8x96xf32> to vector<1x8x96xf32>
    %654 = vector.extract_strided_slice %653 {offsets = [0, 0, 0], sizes = [1, 8, 32], strides = [1, 1, 1]} : vector<1x8x96xf32> to vector<1x8x32xf32>
    %655 = vector.extract_strided_slice %653 {offsets = [0, 0, 32], sizes = [1, 8, 32], strides = [1, 1, 1]} : vector<1x8x96xf32> to vector<1x8x32xf32>
    %656 = vector.extract_strided_slice %653 {offsets = [0, 0, 64], sizes = [1, 8, 32], strides = [1, 1, 1]} : vector<1x8x96xf32> to vector<1x8x32xf32>
    %657 = vector.extract_strided_slice %654 {offsets = [0, 0, 0], sizes = [1, 8, 8], strides = [1, 1, 1]} : vector<1x8x32xf32> to vector<1x8x8xf32>
    %658 = vector.extract_strided_slice %654 {offsets = [0, 0, 8], sizes = [1, 8, 8], strides = [1, 1, 1]} : vector<1x8x32xf32> to vector<1x8x8xf32>
    %659 = vector.extract_strided_slice %654 {offsets = [0, 0, 16], sizes = [1, 8, 8], strides = [1, 1, 1]} : vector<1x8x32xf32> to vector<1x8x8xf32>
    %660 = vector.extract_strided_slice %654 {offsets = [0, 0, 24], sizes = [1, 8, 8], strides = [1, 1, 1]} : vector<1x8x32xf32> to vector<1x8x8xf32>
    %661 = tpu.concatenate %657, %658, %659, %660 in 0 : vector<1x8x8xf32>, vector<1x8x8xf32>, vector<1x8x8xf32>, vector<1x8x8xf32> -> vector<4x8x8xf32>
    %662 = arith.truncf %661 : vector<4x8x8xf32> to vector<4x8x8xbf16>
    %663 = vector.extract_strided_slice %655 {offsets = [0, 0, 0], sizes = [1, 8, 8], strides = [1, 1, 1]} : vector<1x8x32xf32> to vector<1x8x8xf32>
    %664 = vector.extract_strided_slice %655 {offsets = [0, 0, 8], sizes = [1, 8, 8], strides = [1, 1, 1]} : vector<1x8x32xf32> to vector<1x8x8xf32>
    %665 = vector.extract_strided_slice %655 {offsets = [0, 0, 16], sizes = [1, 8, 8], strides = [1, 1, 1]} : vector<1x8x32xf32> to vector<1x8x8xf32>
    %666 = vector.extract_strided_slice %655 {offsets = [0, 0, 24], sizes = [1, 8, 8], strides = [1, 1, 1]} : vector<1x8x32xf32> to vector<1x8x8xf32>
    %667 = tpu.concatenate %663, %664, %665, %666 in 0 : vector<1x8x8xf32>, vector<1x8x8xf32>, vector<1x8x8xf32>, vector<1x8x8xf32> -> vector<4x8x8xf32>
    %668 = arith.truncf %667 : vector<4x8x8xf32> to vector<4x8x8xbf16>
    %669 = vector.extract_strided_slice %656 {offsets = [0, 0, 0], sizes = [1, 8, 8], strides = [1, 1, 1]} : vector<1x8x32xf32> to vector<1x8x8xf32>
    %670 = vector.extract_strided_slice %656 {offsets = [0, 0, 8], sizes = [1, 8, 8], strides = [1, 1, 1]} : vector<1x8x32xf32> to vector<1x8x8xf32>
    %671 = vector.extract_strided_slice %656 {offsets = [0, 0, 16], sizes = [1, 8, 8], strides = [1, 1, 1]} : vector<1x8x32xf32> to vector<1x8x8xf32>
    %672 = vector.extract_strided_slice %656 {offsets = [0, 0, 24], sizes = [1, 8, 8], strides = [1, 1, 1]} : vector<1x8x32xf32> to vector<1x8x8xf32>
    %673 = tpu.concatenate %669, %670, %671, %672 in 0 : vector<1x8x8xf32>, vector<1x8x8xf32>, vector<1x8x8xf32>, vector<1x8x8xf32> -> vector<4x8x8xf32>
    %674 = arith.truncf %673 : vector<4x8x8xf32> to vector<4x8x8xbf16>
    "tpu.trace_start"() <{level = 10 : i32, message = "hqd,hkd->hqk"}> : () -> ()
    %cst_171 = arith.constant dense<0.000000e+00> : vector<4x8x8xf32>
    %675 = tpu.matmul %662, %668, %cst_171 {dimension_numbers = #tpu.dot_dimension_numbers<[2], [2], [1], [1], [0, 0, 0, 1, 1, 1], [0], [0]>} : vector<4x8x8xbf16>, vector<4x8x8xbf16>, vector<4x8x8xf32> -> vector<4x8x8xf32>
    "tpu.trace_stop"() : () -> ()
    %cst_172 = arith.constant 0.353553385 : f32
    %676 = vector.broadcast %cst_172 : f32 to vector<4x8x8xf32>
    %677 = arith.mulf %675, %676 : vector<4x8x8xf32>
    %cst_173 = arith.constant -1.000000e+09 : f32
    %678 = vector.shape_cast %14 : vector<1x8x8xi1> to vector<1x8x8xi1>
    %679 = vector.broadcast %678 : vector<1x8x8xi1> to vector<4x8x8xi1>
    %680 = vector.broadcast %cst_173 : f32 to vector<4x8x8xf32>
    %681 = arith.select %679, %677, %680 : vector<4x8x8xi1>, vector<4x8x8xf32>
    %cst_174 = arith.constant dense<0xFF800000> : vector<4x8xf32>
    %682 = vector.multi_reduction <maximumf>, %681, %cst_174 [2] : vector<4x8x8xf32> to vector<4x8xf32>
    %683 = vector.shape_cast %682 : vector<4x8xf32> to vector<4x8x1xf32>
    %684 = vector.broadcast %683 : vector<4x8x1xf32> to vector<4x8x8xf32>
    %685 = arith.subf %681, %684 : vector<4x8x8xf32>
    %686 = math.exp %685 : vector<4x8x8xf32>
    %cst_175 = arith.constant dense<0.000000e+00> : vector<4x8xf32>
    %687 = vector.multi_reduction <add>, %686, %cst_175 [2] : vector<4x8x8xf32> to vector<4x8xf32>
    %688 = vector.shape_cast %687 : vector<4x8xf32> to vector<4x8x1xf32>
    %689 = tpu.reciprocal %688 {approx = true} : vector<4x8x1xf32> -> vector<4x8x1xf32>
    %690 = vector.broadcast %689 : vector<4x8x1xf32> to vector<4x8x8xf32>
    %691 = arith.mulf %686, %690 : vector<4x8x8xf32>
    %692 = arith.truncf %691 : vector<4x8x8xf32> to vector<4x8x8xbf16>
    "tpu.trace_start"() <{level = 10 : i32, message = "hqk,hkd->hqd"}> : () -> ()
    %cst_176 = arith.constant dense<0.000000e+00> : vector<4x8x8xf32>
    %693 = tpu.matmul %692, %674, %cst_176 {dimension_numbers = #tpu.dot_dimension_numbers<[2], [1], [1], [2], [0, 0, 0, 1, 1, 2], [0], [0]>} : vector<4x8x8xbf16>, vector<4x8x8xbf16>, vector<4x8x8xf32> -> vector<4x8x8xf32>
    "tpu.trace_stop"() : () -> ()
    %694 = vector.extract_strided_slice %693 {offsets = [0, 0, 0], sizes = [1, 8, 8], strides = [1, 1, 1]} : vector<4x8x8xf32> to vector<1x8x8xf32>
    %695 = vector.shape_cast %694 : vector<1x8x8xf32> to vector<8x8xf32>
    %696 = vector.extract_strided_slice %693 {offsets = [1, 0, 0], sizes = [1, 8, 8], strides = [1, 1, 1]} : vector<4x8x8xf32> to vector<1x8x8xf32>
    %697 = vector.shape_cast %696 : vector<1x8x8xf32> to vector<8x8xf32>
    %698 = vector.extract_strided_slice %693 {offsets = [2, 0, 0], sizes = [1, 8, 8], strides = [1, 1, 1]} : vector<4x8x8xf32> to vector<1x8x8xf32>
    %699 = vector.shape_cast %698 : vector<1x8x8xf32> to vector<8x8xf32>
    %700 = vector.extract_strided_slice %693 {offsets = [3, 0, 0], sizes = [1, 8, 8], strides = [1, 1, 1]} : vector<4x8x8xf32> to vector<1x8x8xf32>
    %701 = vector.shape_cast %700 : vector<1x8x8xf32> to vector<8x8xf32>
    %702 = tpu.concatenate %695, %697, %699, %701 in 1 : vector<8x8xf32>, vector<8x8xf32>, vector<8x8xf32>, vector<8x8xf32> -> vector<8x32xf32>
    %703 = arith.truncf %702 : vector<8x32xf32> to vector<8x32xbf16>
    %704 = arith.truncf %645 : vector<32x32xf32> to vector<32x32xbf16>
    %cst_177 = arith.constant dense<0.000000e+00> : vector<8x32xf32>
    %705 = tpu.matmul %703, %704, %cst_177 {dimension_numbers = #tpu.dot_dimension_numbers<[1], [0], [0], [1], [0, 0, 1, 1], [], []>} : vector<8x32xbf16>, vector<32x32xbf16>, vector<8x32xf32> -> vector<8x32xf32>
    %706 = vector.broadcast %646 : vector<1x32xf32> to vector<8x32xf32>
    %707 = arith.addf %705, %706 : vector<8x32xf32>
    %708 = vector.shape_cast %707 : vector<8x32xf32> to vector<1x8x32xf32>
    %709 = arith.addf %616, %708 : vector<1x8x32xf32>
    %c36_178 = arith.constant 36 : index
    %c0_179 = arith.constant 0 : index
    %710 = vector.load %arg7[%c36_178, %c0_179] : memref<47x128xf32, #tpu.memory_space<vmem>>, vector<1x32xf32>
    %c37_180 = arith.constant 37 : index
    %c0_181 = arith.constant 0 : index
    %711 = vector.load %arg7[%c37_180, %c0_181] : memref<47x128xf32, #tpu.memory_space<vmem>>, vector<1x32xf32>
    %cst_182 = arith.constant dense<0.000000e+00> : vector<1x8xf32>
    %712 = vector.multi_reduction <add>, %709, %cst_182 [2] : vector<1x8x32xf32> to vector<1x8xf32>
    %713 = vector.shape_cast %712 : vector<1x8xf32> to vector<1x8x1xf32>
    %cst_183 = arith.constant 3.200000e+01 : f32
    %714 = vector.broadcast %cst_183 : f32 to vector<1x8x1xf32>
    %715 = arith.divf %713, %714 : vector<1x8x1xf32>
    %716 = vector.broadcast %715 : vector<1x8x1xf32> to vector<1x8x32xf32>
    %717 = arith.subf %709, %716 : vector<1x8x32xf32>
    %718 = arith.mulf %717, %717 : vector<1x8x32xf32>
    %cst_184 = arith.constant dense<0.000000e+00> : vector<1x8xf32>
    %719 = vector.multi_reduction <add>, %718, %cst_184 [2] : vector<1x8x32xf32> to vector<1x8xf32>
    %720 = vector.shape_cast %719 : vector<1x8xf32> to vector<1x8x1xf32>
    %cst_185 = arith.constant 3.200000e+01 : f32
    %721 = vector.broadcast %cst_185 : f32 to vector<1x8x1xf32>
    %722 = arith.divf %720, %721 : vector<1x8x1xf32>
    %723 = vector.broadcast %715 : vector<1x8x1xf32> to vector<1x8x32xf32>
    %724 = arith.subf %709, %723 : vector<1x8x32xf32>
    %cst_186 = arith.constant 9.99999974E-6 : f32
    %725 = vector.broadcast %cst_186 : f32 to vector<1x8x1xf32>
    %726 = arith.addf %722, %725 : vector<1x8x1xf32>
    %727 = math.rsqrt %726 : vector<1x8x1xf32>
    %728 = vector.broadcast %727 : vector<1x8x1xf32> to vector<1x8x32xf32>
    %729 = arith.mulf %724, %728 : vector<1x8x32xf32>
    %730 = vector.shape_cast %710 : vector<1x32xf32> to vector<1x1x32xf32>
    %731 = vector.broadcast %730 : vector<1x1x32xf32> to vector<1x8x32xf32>
    %732 = arith.mulf %729, %731 : vector<1x8x32xf32>
    %733 = vector.shape_cast %711 : vector<1x32xf32> to vector<1x1x32xf32>
    %734 = vector.broadcast %733 : vector<1x1x32xf32> to vector<1x8x32xf32>
    %735 = arith.addf %732, %734 : vector<1x8x32xf32>
    %c640 = arith.constant 640 : index
    %c0_187 = arith.constant 0 : index
    %736 = vector.load %arg6[%c640, %c0_187] : memref<864x128xf32, #tpu.memory_space<vmem>>, vector<32x32xf32>
    %c33 = arith.constant 33 : index
    %c0_188 = arith.constant 0 : index
    %737 = vector.load %arg7[%c33, %c0_188] : memref<47x128xf32, #tpu.memory_space<vmem>>, vector<1x32xf32>
    %c672 = arith.constant 672 : index
    %c0_189 = arith.constant 0 : index
    %738 = vector.load %arg6[%c672, %c0_189] : memref<864x128xf32, #tpu.memory_space<vmem>>, vector<32x64xf32>
    %c34 = arith.constant 34 : index
    %c0_190 = arith.constant 0 : index
    %739 = vector.load %arg7[%c34, %c0_190] : memref<47x128xf32, #tpu.memory_space<vmem>>, vector<1x64xf32>
    %c704 = arith.constant 704 : index
    %c0_191 = arith.constant 0 : index
    %740 = vector.load %arg6[%c704, %c0_191] : memref<864x128xf32, #tpu.memory_space<vmem>>, vector<32x32xf32>
    %c35 = arith.constant 35 : index
    %c0_192 = arith.constant 0 : index
    %741 = vector.load %arg7[%c35, %c0_192] : memref<47x128xf32, #tpu.memory_space<vmem>>, vector<1x32xf32>
    %742 = vector.shape_cast %735 : vector<1x8x32xf32> to vector<8x32xf32>
    %743 = arith.truncf %742 : vector<8x32xf32> to vector<8x32xbf16>
    %744 = arith.truncf %736 : vector<32x32xf32> to vector<32x32xbf16>
    %cst_193 = arith.constant dense<0.000000e+00> : vector<8x32xf32>
    %745 = tpu.matmul %743, %744, %cst_193 {dimension_numbers = #tpu.dot_dimension_numbers<[1], [0], [0], [1], [0, 0, 1, 1], [], []>} : vector<8x32xbf16>, vector<32x32xbf16>, vector<8x32xf32> -> vector<8x32xf32>
    %746 = vector.broadcast %737 : vector<1x32xf32> to vector<8x32xf32>
    %747 = arith.addf %745, %746 : vector<8x32xf32>
    %748 = vector.shape_cast %747 : vector<8x32xf32> to vector<1x8x32xf32>
    %749 = vector.shape_cast %334 : vector<1x8x32xf32> to vector<8x32xf32>
    %750 = arith.truncf %749 : vector<8x32xf32> to vector<8x32xbf16>
    %751 = arith.truncf %738 : vector<32x64xf32> to vector<32x64xbf16>
    %cst_194 = arith.constant dense<0.000000e+00> : vector<8x64xf32>
    %752 = tpu.matmul %750, %751, %cst_194 {dimension_numbers = #tpu.dot_dimension_numbers<[1], [0], [0], [1], [0, 0, 1, 1], [], []>} : vector<8x32xbf16>, vector<32x64xbf16>, vector<8x64xf32> -> vector<8x64xf32>
    %753 = vector.broadcast %739 : vector<1x64xf32> to vector<8x64xf32>
    %754 = arith.addf %752, %753 : vector<8x64xf32>
    %755 = vector.shape_cast %754 : vector<8x64xf32> to vector<1x8x64xf32>
    %756 = vector.extract_strided_slice %755 {offsets = [0, 0, 0], sizes = [1, 8, 32], strides = [1, 1, 1]} : vector<1x8x64xf32> to vector<1x8x32xf32>
    %757 = vector.extract_strided_slice %755 {offsets = [0, 0, 32], sizes = [1, 8, 32], strides = [1, 1, 1]} : vector<1x8x64xf32> to vector<1x8x32xf32>
    %758 = vector.extract_strided_slice %748 {offsets = [0, 0, 0], sizes = [1, 8, 8], strides = [1, 1, 1]} : vector<1x8x32xf32> to vector<1x8x8xf32>
    %759 = vector.extract_strided_slice %748 {offsets = [0, 0, 8], sizes = [1, 8, 8], strides = [1, 1, 1]} : vector<1x8x32xf32> to vector<1x8x8xf32>
    %760 = vector.extract_strided_slice %748 {offsets = [0, 0, 16], sizes = [1, 8, 8], strides = [1, 1, 1]} : vector<1x8x32xf32> to vector<1x8x8xf32>
    %761 = vector.extract_strided_slice %748 {offsets = [0, 0, 24], sizes = [1, 8, 8], strides = [1, 1, 1]} : vector<1x8x32xf32> to vector<1x8x8xf32>
    %762 = tpu.concatenate %758, %759, %760, %761 in 0 : vector<1x8x8xf32>, vector<1x8x8xf32>, vector<1x8x8xf32>, vector<1x8x8xf32> -> vector<4x8x8xf32>
    %763 = arith.truncf %762 : vector<4x8x8xf32> to vector<4x8x8xbf16>
    %764 = vector.extract_strided_slice %756 {offsets = [0, 0, 0], sizes = [1, 8, 8], strides = [1, 1, 1]} : vector<1x8x32xf32> to vector<1x8x8xf32>
    %765 = vector.extract_strided_slice %756 {offsets = [0, 0, 8], sizes = [1, 8, 8], strides = [1, 1, 1]} : vector<1x8x32xf32> to vector<1x8x8xf32>
    %766 = vector.extract_strided_slice %756 {offsets = [0, 0, 16], sizes = [1, 8, 8], strides = [1, 1, 1]} : vector<1x8x32xf32> to vector<1x8x8xf32>
    %767 = vector.extract_strided_slice %756 {offsets = [0, 0, 24], sizes = [1, 8, 8], strides = [1, 1, 1]} : vector<1x8x32xf32> to vector<1x8x8xf32>
    %768 = tpu.concatenate %764, %765, %766, %767 in 0 : vector<1x8x8xf32>, vector<1x8x8xf32>, vector<1x8x8xf32>, vector<1x8x8xf32> -> vector<4x8x8xf32>
    %769 = arith.truncf %768 : vector<4x8x8xf32> to vector<4x8x8xbf16>
    %770 = vector.extract_strided_slice %757 {offsets = [0, 0, 0], sizes = [1, 8, 8], strides = [1, 1, 1]} : vector<1x8x32xf32> to vector<1x8x8xf32>
    %771 = vector.extract_strided_slice %757 {offsets = [0, 0, 8], sizes = [1, 8, 8], strides = [1, 1, 1]} : vector<1x8x32xf32> to vector<1x8x8xf32>
    %772 = vector.extract_strided_slice %757 {offsets = [0, 0, 16], sizes = [1, 8, 8], strides = [1, 1, 1]} : vector<1x8x32xf32> to vector<1x8x8xf32>
    %773 = vector.extract_strided_slice %757 {offsets = [0, 0, 24], sizes = [1, 8, 8], strides = [1, 1, 1]} : vector<1x8x32xf32> to vector<1x8x8xf32>
    %774 = tpu.concatenate %770, %771, %772, %773 in 0 : vector<1x8x8xf32>, vector<1x8x8xf32>, vector<1x8x8xf32>, vector<1x8x8xf32> -> vector<4x8x8xf32>
    %775 = arith.truncf %774 : vector<4x8x8xf32> to vector<4x8x8xbf16>
    "tpu.trace_start"() <{level = 10 : i32, message = "hqd,hkd->hqk"}> : () -> ()
    %cst_195 = arith.constant dense<0.000000e+00> : vector<4x8x8xf32>
    %776 = tpu.matmul %763, %769, %cst_195 {dimension_numbers = #tpu.dot_dimension_numbers<[2], [2], [1], [1], [0, 0, 0, 1, 1, 1], [0], [0]>} : vector<4x8x8xbf16>, vector<4x8x8xbf16>, vector<4x8x8xf32> -> vector<4x8x8xf32>
    "tpu.trace_stop"() : () -> ()
    %cst_196 = arith.constant 0.353553385 : f32
    %777 = vector.broadcast %cst_196 : f32 to vector<4x8x8xf32>
    %778 = arith.mulf %776, %777 : vector<4x8x8xf32>
    %cst_197 = arith.constant -1.000000e+09 : f32
    %779 = vector.shape_cast %6 : vector<1x1x8xi1> to vector<1x1x8xi1>
    %780 = vector.broadcast %779 : vector<1x1x8xi1> to vector<4x8x8xi1>
    %781 = vector.broadcast %cst_197 : f32 to vector<4x8x8xf32>
    %782 = arith.select %780, %778, %781 : vector<4x8x8xi1>, vector<4x8x8xf32>
    %cst_198 = arith.constant dense<0xFF800000> : vector<4x8xf32>
    %783 = vector.multi_reduction <maximumf>, %782, %cst_198 [2] : vector<4x8x8xf32> to vector<4x8xf32>
    %784 = vector.shape_cast %783 : vector<4x8xf32> to vector<4x8x1xf32>
    %785 = vector.broadcast %784 : vector<4x8x1xf32> to vector<4x8x8xf32>
    %786 = arith.subf %782, %785 : vector<4x8x8xf32>
    %787 = math.exp %786 : vector<4x8x8xf32>
    %cst_199 = arith.constant dense<0.000000e+00> : vector<4x8xf32>
    %788 = vector.multi_reduction <add>, %787, %cst_199 [2] : vector<4x8x8xf32> to vector<4x8xf32>
    %789 = vector.shape_cast %788 : vector<4x8xf32> to vector<4x8x1xf32>
    %790 = tpu.reciprocal %789 {approx = true} : vector<4x8x1xf32> -> vector<4x8x1xf32>
    %791 = vector.broadcast %790 : vector<4x8x1xf32> to vector<4x8x8xf32>
    %792 = arith.mulf %787, %791 : vector<4x8x8xf32>
    %793 = arith.truncf %792 : vector<4x8x8xf32> to vector<4x8x8xbf16>
    "tpu.trace_start"() <{level = 10 : i32, message = "hqk,hkd->hqd"}> : () -> ()
    %cst_200 = arith.constant dense<0.000000e+00> : vector<4x8x8xf32>
    %794 = tpu.matmul %793, %775, %cst_200 {dimension_numbers = #tpu.dot_dimension_numbers<[2], [1], [1], [2], [0, 0, 0, 1, 1, 2], [0], [0]>} : vector<4x8x8xbf16>, vector<4x8x8xbf16>, vector<4x8x8xf32> -> vector<4x8x8xf32>
    "tpu.trace_stop"() : () -> ()
    %795 = vector.extract_strided_slice %794 {offsets = [0, 0, 0], sizes = [1, 8, 8], strides = [1, 1, 1]} : vector<4x8x8xf32> to vector<1x8x8xf32>
    %796 = vector.shape_cast %795 : vector<1x8x8xf32> to vector<8x8xf32>
    %797 = vector.extract_strided_slice %794 {offsets = [1, 0, 0], sizes = [1, 8, 8], strides = [1, 1, 1]} : vector<4x8x8xf32> to vector<1x8x8xf32>
    %798 = vector.shape_cast %797 : vector<1x8x8xf32> to vector<8x8xf32>
    %799 = vector.extract_strided_slice %794 {offsets = [2, 0, 0], sizes = [1, 8, 8], strides = [1, 1, 1]} : vector<4x8x8xf32> to vector<1x8x8xf32>
    %800 = vector.shape_cast %799 : vector<1x8x8xf32> to vector<8x8xf32>
    %801 = vector.extract_strided_slice %794 {offsets = [3, 0, 0], sizes = [1, 8, 8], strides = [1, 1, 1]} : vector<4x8x8xf32> to vector<1x8x8xf32>
    %802 = vector.shape_cast %801 : vector<1x8x8xf32> to vector<8x8xf32>
    %803 = tpu.concatenate %796, %798, %800, %802 in 1 : vector<8x8xf32>, vector<8x8xf32>, vector<8x8xf32>, vector<8x8xf32> -> vector<8x32xf32>
    %804 = arith.truncf %803 : vector<8x32xf32> to vector<8x32xbf16>
    %805 = arith.truncf %740 : vector<32x32xf32> to vector<32x32xbf16>
    %cst_201 = arith.constant dense<0.000000e+00> : vector<8x32xf32>
    %806 = tpu.matmul %804, %805, %cst_201 {dimension_numbers = #tpu.dot_dimension_numbers<[1], [0], [0], [1], [0, 0, 1, 1], [], []>} : vector<8x32xbf16>, vector<32x32xbf16>, vector<8x32xf32> -> vector<8x32xf32>
    %807 = vector.broadcast %741 : vector<1x32xf32> to vector<8x32xf32>
    %808 = arith.addf %806, %807 : vector<8x32xf32>
    %809 = vector.shape_cast %808 : vector<8x32xf32> to vector<1x8x32xf32>
    %810 = arith.addf %809, %735 : vector<1x8x32xf32>
    %c38 = arith.constant 38 : index
    %c0_202 = arith.constant 0 : index
    %811 = vector.load %arg7[%c38, %c0_202] : memref<47x128xf32, #tpu.memory_space<vmem>>, vector<1x32xf32>
    %c39 = arith.constant 39 : index
    %c0_203 = arith.constant 0 : index
    %812 = vector.load %arg7[%c39, %c0_203] : memref<47x128xf32, #tpu.memory_space<vmem>>, vector<1x32xf32>
    %cst_204 = arith.constant dense<0.000000e+00> : vector<1x8xf32>
    %813 = vector.multi_reduction <add>, %810, %cst_204 [2] : vector<1x8x32xf32> to vector<1x8xf32>
    %814 = vector.shape_cast %813 : vector<1x8xf32> to vector<1x8x1xf32>
    %cst_205 = arith.constant 3.200000e+01 : f32
    %815 = vector.broadcast %cst_205 : f32 to vector<1x8x1xf32>
    %816 = arith.divf %814, %815 : vector<1x8x1xf32>
    %817 = vector.broadcast %816 : vector<1x8x1xf32> to vector<1x8x32xf32>
    %818 = arith.subf %810, %817 : vector<1x8x32xf32>
    %819 = arith.mulf %818, %818 : vector<1x8x32xf32>
    %cst_206 = arith.constant dense<0.000000e+00> : vector<1x8xf32>
    %820 = vector.multi_reduction <add>, %819, %cst_206 [2] : vector<1x8x32xf32> to vector<1x8xf32>
    %821 = vector.shape_cast %820 : vector<1x8xf32> to vector<1x8x1xf32>
    %cst_207 = arith.constant 3.200000e+01 : f32
    %822 = vector.broadcast %cst_207 : f32 to vector<1x8x1xf32>
    %823 = arith.divf %821, %822 : vector<1x8x1xf32>
    %824 = vector.broadcast %816 : vector<1x8x1xf32> to vector<1x8x32xf32>
    %825 = arith.subf %810, %824 : vector<1x8x32xf32>
    %cst_208 = arith.constant 9.99999974E-6 : f32
    %826 = vector.broadcast %cst_208 : f32 to vector<1x8x1xf32>
    %827 = arith.addf %823, %826 : vector<1x8x1xf32>
    %828 = math.rsqrt %827 : vector<1x8x1xf32>
    %829 = vector.broadcast %828 : vector<1x8x1xf32> to vector<1x8x32xf32>
    %830 = arith.mulf %825, %829 : vector<1x8x32xf32>
    %831 = vector.shape_cast %811 : vector<1x32xf32> to vector<1x1x32xf32>
    %832 = vector.broadcast %831 : vector<1x1x32xf32> to vector<1x8x32xf32>
    %833 = arith.mulf %830, %832 : vector<1x8x32xf32>
    %834 = vector.shape_cast %812 : vector<1x32xf32> to vector<1x1x32xf32>
    %835 = vector.broadcast %834 : vector<1x1x32xf32> to vector<1x8x32xf32>
    %836 = arith.addf %833, %835 : vector<1x8x32xf32>
    %837 = arith.addf %836, %735 : vector<1x8x32xf32>
    %c736 = arith.constant 736 : index
    %c0_209 = arith.constant 0 : index
    %838 = vector.load %arg6[%c736, %c0_209] : memref<864x128xf32, #tpu.memory_space<vmem>>, vector<32x64xf32>
    %c42 = arith.constant 42 : index
    %c0_210 = arith.constant 0 : index
    %839 = vector.load %arg7[%c42, %c0_210] : memref<47x128xf32, #tpu.memory_space<vmem>>, vector<1x64xf32>
    %c768 = arith.constant 768 : index
    %c0_211 = arith.constant 0 : index
    %840 = vector.load %arg6[%c768, %c0_211] : memref<864x128xf32, #tpu.memory_space<vmem>>, vector<64x32xf32>
    %c43 = arith.constant 43 : index
    %c0_212 = arith.constant 0 : index
    %841 = vector.load %arg7[%c43, %c0_212] : memref<47x128xf32, #tpu.memory_space<vmem>>, vector<1x32xf32>
    %842 = vector.shape_cast %837 : vector<1x8x32xf32> to vector<8x32xf32>
    %843 = arith.truncf %842 : vector<8x32xf32> to vector<8x32xbf16>
    %844 = arith.truncf %838 : vector<32x64xf32> to vector<32x64xbf16>
    %cst_213 = arith.constant dense<0.000000e+00> : vector<8x64xf32>
    %845 = tpu.matmul %843, %844, %cst_213 {dimension_numbers = #tpu.dot_dimension_numbers<[1], [0], [0], [1], [0, 0, 1, 1], [], []>} : vector<8x32xbf16>, vector<32x64xbf16>, vector<8x64xf32> -> vector<8x64xf32>
    %846 = vector.broadcast %839 : vector<1x64xf32> to vector<8x64xf32>
    %847 = arith.addf %845, %846 : vector<8x64xf32>
    %848 = vector.shape_cast %847 : vector<8x64xf32> to vector<1x8x64xf32>
    %cst_214 = arith.constant 0.000000e+00 : f32
    %849 = vector.broadcast %cst_214 : f32 to vector<1x8x64xf32>
    %850 = arith.maximumf %848, %849 : vector<1x8x64xf32>
    %851 = vector.shape_cast %850 : vector<1x8x64xf32> to vector<8x64xf32>
    %852 = arith.truncf %851 : vector<8x64xf32> to vector<8x64xbf16>
    %853 = arith.truncf %840 : vector<64x32xf32> to vector<64x32xbf16>
    %cst_215 = arith.constant dense<0.000000e+00> : vector<8x32xf32>
    %854 = tpu.matmul %852, %853, %cst_215 {dimension_numbers = #tpu.dot_dimension_numbers<[1], [0], [0], [1], [0, 0, 1, 1], [], []>} : vector<8x64xbf16>, vector<64x32xbf16>, vector<8x32xf32> -> vector<8x32xf32>
    %855 = vector.broadcast %841 : vector<1x32xf32> to vector<8x32xf32>
    %856 = arith.addf %854, %855 : vector<8x32xf32>
    %857 = vector.shape_cast %856 : vector<8x32xf32> to vector<1x8x32xf32>
    %c40 = arith.constant 40 : index
    %c0_216 = arith.constant 0 : index
    %858 = vector.load %arg7[%c40, %c0_216] : memref<47x128xf32, #tpu.memory_space<vmem>>, vector<1x32xf32>
    %c41 = arith.constant 41 : index
    %c0_217 = arith.constant 0 : index
    %859 = vector.load %arg7[%c41, %c0_217] : memref<47x128xf32, #tpu.memory_space<vmem>>, vector<1x32xf32>
    %cst_218 = arith.constant dense<0.000000e+00> : vector<1x8xf32>
    %860 = vector.multi_reduction <add>, %857, %cst_218 [2] : vector<1x8x32xf32> to vector<1x8xf32>
    %861 = vector.shape_cast %860 : vector<1x8xf32> to vector<1x8x1xf32>
    %cst_219 = arith.constant 3.200000e+01 : f32
    %862 = vector.broadcast %cst_219 : f32 to vector<1x8x1xf32>
    %863 = arith.divf %861, %862 : vector<1x8x1xf32>
    %864 = vector.broadcast %863 : vector<1x8x1xf32> to vector<1x8x32xf32>
    %865 = arith.subf %857, %864 : vector<1x8x32xf32>
    %866 = arith.mulf %865, %865 : vector<1x8x32xf32>
    %cst_220 = arith.constant dense<0.000000e+00> : vector<1x8xf32>
    %867 = vector.multi_reduction <add>, %866, %cst_220 [2] : vector<1x8x32xf32> to vector<1x8xf32>
    %868 = vector.shape_cast %867 : vector<1x8xf32> to vector<1x8x1xf32>
    %cst_221 = arith.constant 3.200000e+01 : f32
    %869 = vector.broadcast %cst_221 : f32 to vector<1x8x1xf32>
    %870 = arith.divf %868, %869 : vector<1x8x1xf32>
    %871 = vector.broadcast %863 : vector<1x8x1xf32> to vector<1x8x32xf32>
    %872 = arith.subf %857, %871 : vector<1x8x32xf32>
    %cst_222 = arith.constant 9.99999974E-6 : f32
    %873 = vector.broadcast %cst_222 : f32 to vector<1x8x1xf32>
    %874 = arith.addf %870, %873 : vector<1x8x1xf32>
    %875 = math.rsqrt %874 : vector<1x8x1xf32>
    %876 = vector.broadcast %875 : vector<1x8x1xf32> to vector<1x8x32xf32>
    %877 = arith.mulf %872, %876 : vector<1x8x32xf32>
    %878 = vector.shape_cast %858 : vector<1x32xf32> to vector<1x1x32xf32>
    %879 = vector.broadcast %878 : vector<1x1x32xf32> to vector<1x8x32xf32>
    %880 = arith.mulf %877, %879 : vector<1x8x32xf32>
    %881 = vector.shape_cast %859 : vector<1x32xf32> to vector<1x1x32xf32>
    %882 = vector.broadcast %881 : vector<1x1x32xf32> to vector<1x8x32xf32>
    %883 = arith.addf %880, %882 : vector<1x8x32xf32>
    %884 = arith.addf %883, %837 : vector<1x8x32xf32>
    %c44 = arith.constant 44 : index
    %c0_223 = arith.constant 0 : index
    %885 = vector.load %arg7[%c44, %c0_223] : memref<47x128xf32, #tpu.memory_space<vmem>>, vector<1x32xf32>
    %c45 = arith.constant 45 : index
    %c0_224 = arith.constant 0 : index
    %886 = vector.load %arg7[%c45, %c0_224] : memref<47x128xf32, #tpu.memory_space<vmem>>, vector<1x32xf32>
    %cst_225 = arith.constant dense<0.000000e+00> : vector<1x8xf32>
    %887 = vector.multi_reduction <add>, %884, %cst_225 [2] : vector<1x8x32xf32> to vector<1x8xf32>
    %888 = vector.shape_cast %887 : vector<1x8xf32> to vector<1x8x1xf32>
    %cst_226 = arith.constant 3.200000e+01 : f32
    %889 = vector.broadcast %cst_226 : f32 to vector<1x8x1xf32>
    %890 = arith.divf %888, %889 : vector<1x8x1xf32>
    %891 = vector.broadcast %890 : vector<1x8x1xf32> to vector<1x8x32xf32>
    %892 = arith.subf %884, %891 : vector<1x8x32xf32>
    %893 = arith.mulf %892, %892 : vector<1x8x32xf32>
    %cst_227 = arith.constant dense<0.000000e+00> : vector<1x8xf32>
    %894 = vector.multi_reduction <add>, %893, %cst_227 [2] : vector<1x8x32xf32> to vector<1x8xf32>
    %895 = vector.shape_cast %894 : vector<1x8xf32> to vector<1x8x1xf32>
    %cst_228 = arith.constant 3.200000e+01 : f32
    %896 = vector.broadcast %cst_228 : f32 to vector<1x8x1xf32>
    %897 = arith.divf %895, %896 : vector<1x8x1xf32>
    %898 = vector.broadcast %890 : vector<1x8x1xf32> to vector<1x8x32xf32>
    %899 = arith.subf %884, %898 : vector<1x8x32xf32>
    %cst_229 = arith.constant 9.99999974E-6 : f32
    %900 = vector.broadcast %cst_229 : f32 to vector<1x8x1xf32>
    %901 = arith.addf %897, %900 : vector<1x8x1xf32>
    %902 = math.rsqrt %901 : vector<1x8x1xf32>
    %903 = vector.broadcast %902 : vector<1x8x1xf32> to vector<1x8x32xf32>
    %904 = arith.mulf %899, %903 : vector<1x8x32xf32>
    %905 = vector.shape_cast %885 : vector<1x32xf32> to vector<1x1x32xf32>
    %906 = vector.broadcast %905 : vector<1x1x32xf32> to vector<1x8x32xf32>
    %907 = arith.mulf %904, %906 : vector<1x8x32xf32>
    %908 = vector.shape_cast %886 : vector<1x32xf32> to vector<1x1x32xf32>
    %909 = vector.broadcast %908 : vector<1x1x32xf32> to vector<1x8x32xf32>
    %910 = arith.addf %907, %909 : vector<1x8x32xf32>
    %911 = vector.shape_cast %910 : vector<1x8x32xf32> to vector<8x32xf32>
    %912 = arith.truncf %911 : vector<8x32xf32> to vector<8x32xbf16>
    %c832 = arith.constant 832 : index
    %c0_230 = arith.constant 0 : index
    %913 = vector.load %arg6[%c832, %c0_230] : memref<864x128xf32, #tpu.memory_space<vmem>>, vector<32x128xf32>
    %914 = arith.truncf %913 : vector<32x128xf32> to vector<32x128xbf16>
    %cst_231 = arith.constant dense<0.000000e+00> : vector<8x128xf32>
    %915 = tpu.matmul %912, %914, %cst_231 {dimension_numbers = #tpu.dot_dimension_numbers<[1], [0], [0], [1], [0, 0, 1, 1], [], []>} : vector<8x32xbf16>, vector<32x128xbf16>, vector<8x128xf32> -> vector<8x128xf32>
    %c46 = arith.constant 46 : index
    %c0_232 = arith.constant 0 : index
    %916 = vector.load %arg7[%c46, %c0_232] : memref<47x128xf32, #tpu.memory_space<vmem>>, vector<1x128xf32>
    %917 = vector.broadcast %916 : vector<1x128xf32> to vector<8x128xf32>
    %918 = arith.addf %915, %917 : vector<8x128xf32>
    %c0_233 = arith.constant 0 : index
    %c0_234 = arith.constant 0 : index
    %c0_235 = arith.constant 0 : index
    %919 = vector.load %arg8[%c0_233, %c0_234, %c0_235] : memref<1x8x128xf32, #tpu.memory_space<vmem>>, vector<1x8x128xf32>
    %920 = vector.shape_cast %919 : vector<1x8x128xf32> to vector<8x128xf32>
    %921 = vector.shape_cast %918 : vector<8x128xf32> to vector<1x8x128xf32>
    tpu.vector_store %arg8[%c0_233, %c0_234, %c0_235], %921 {strides = array<i32>} : memref<1x8x128xf32, #tpu.memory_space<vmem>>, vector<1x8x128xf32>,
    return
  }
  func.func @transform_0(%arg0: i32) -> (i32, i32, i32) {
    %c0_i32 = arith.constant 0 : i32
    %c0_i32_0 = arith.constant 0 : i32
    %c0_i32_1 = arith.constant 0 : i32
    return %arg0, %c0_i32, %c0_i32_0 : i32, i32, i32
  }
  func.func @transform_1(%arg0: i32) -> (i32, i32, i32) {
    %c0_i32 = arith.constant 0 : i32
    %c0_i32_0 = arith.constant 0 : i32
    %c0_i32_1 = arith.constant 0 : i32
    return %arg0, %c0_i32, %c0_i32_0 : i32, i32, i32
  }
  func.func @transform_2(%arg0: i32) -> (i32, i32, i32) {
    %c0_i32 = arith.constant 0 : i32
    %c0_i32_0 = arith.constant 0 : i32
    %c0_i32_1 = arith.constant 0 : i32
    return %arg0, %c0_i32, %c0_i32_0 : i32, i32, i32
  }
  func.func @transform_3(%arg0: i32) -> (i32, i32, i32) {
    %c0_i32 = arith.constant 0 : i32
    %c0_i32_0 = arith.constant 0 : i32
    %c0_i32_1 = arith.constant 0 : i32
    return %arg0, %c0_i32, %c0_i32_0 : i32, i32, i32
  }
  func.func @transform_4(%arg0: i32) -> (i32, i32) {
    %c0_i32 = arith.constant 0 : i32
    %c0_i32_0 = arith.constant 0 : i32
    %c0_i32_1 = arith.constant 0 : i32
    return %c0_i32, %c0_i32_0 : i32, i32
  }
  func.func @transform_5(%arg0: i32) -> (i32, i32) {
    %c0_i32 = arith.constant 0 : i32
    %c0_i32_0 = arith.constant 0 : i32
    %c0_i32_1 = arith.constant 0 : i32
    return %c0_i32, %c0_i32_0 : i32, i32
  }
  func.func @transform_6(%arg0: i32) -> (i32, i32) {
    %c0_i32 = arith.constant 0 : i32
    %c0_i32_0 = arith.constant 0 : i32
    %c0_i32_1 = arith.constant 0 : i32
    return %c0_i32, %c0_i32_0 : i32, i32
  }
  func.func @transform_7(%arg0: i32) -> (i32, i32, i32) {
    %c0_i32 = arith.constant 0 : i32
    %c0_i32_0 = arith.constant 0 : i32
    %c0_i32_1 = arith.constant 0 : i32
    return %arg0, %c0_i32, %c0_i32_0 : i32, i32, i32
  }
}

</mosaic_0001>

<bundles_post_ra>
// kernel: transformer_forward.1
= control target key start
LH: loop header
LB: loop body
LE: loop exit
PB: predicated region body
PF: predicated region fallthrough
CT: control target
= control target key end

     0   :  { %12 = vsyncpa [#allocation3], 0  ;;  %s7367_s0 = inlined_call_operand.vmem [shape: s32[2,1,8], index: 0, kind: input, shape index: {}]   ;;  %s7368_s1 = inlined_call_operand.vmem [shape: s32[2,1,8], index: 1, kind: input, shape index: {}]   ;;  %s7369_s2 = inlined_call_operand.vmem [shape: s32[2,8,1], index: 2, kind: input, shape index: {}]   ;;  %s7370_s3 = inlined_call_operand.vmem [shape: s32[2,8,1], index: 3, kind: input, shape index: {}]   ;;  %s7371_s4 = inlined_call_operand.vmem [shape: f32[96,32], index: 4, kind: input, shape index: {}]   ;;  %s7372_s5 = inlined_call_operand.hbm [shape: f32[864,128], index: 5, kind: input, shape index: {}]   ;;  %s7373_s6 = inlined_call_operand.vmem [shape: f32[47,128], index: 6, kind: input, shape index: {}]   ;;  %s7374_s7 = inlined_call_operand.hbm [shape: f32[2,8,128], index: 7, kind: output, shape index: {}]  }
   0x1   :  { %13 = vsyncpa [#allocation4], 0 }
   0x2   :  { %15 = vsyncpa [#allocation4 + $0x1], 0  ;;  %s6260_s24 = smov 0   ;;  %s6262_s25 = smov 0  }
   0x3   :  { %s6264_s26 = smov 0   ;;  %s6266_s27 = smov 0  }
   0x4 LB: > { %s6281_s28 = sadd.s32 4294967295, %s6203_s27   ;;  %s5099_s29 = sadd.s32 4294967294, %s6203_s27   ;;  %s6203_s27 = sphi %s6266_s27, %s7406_s27   ;;  %s6199_s26 = sphi %s6264_s26, %s7405_s26   ;;  %s6195_s25 = sphi %s6262_s25, %s7404_s25   ;;  %s6191_s24 = sphi %s6260_s24, %s7403_s24  }
   0x5   : > { %s6285_s30 = sadd.s32 1, %s6203_s27   ;;  %s195_s8 = sadd.s32 1, %s6199_s26 }
   0x6   : > { %s192_s9 = ssub.s32 %s6203_s27, %s6285_s30  ;;  %p205_p0 = scmp.ne.s32.totalorder %s6199_s26, %s6195_s25 }
   0x7   : > { %p193_p1 = scmp.eq.s32.totalorder %s192_s9, 0  ;;  %p206_p2 = scmp.eq.s32.totalorder %s6281_s28, 1 }
   0x8   : > { %p211_p3 = scmp.ne.s32.totalorder %s6195_s25, %s6191_s24  ;;  %p212_p4 = scmp.eq.s32.totalorder %s5099_s29, 1 }
   0x9   : > { %s6296_s10 = scalar_select %p193_p1, %s6199_s26, %s195_s8  }
   0xa   : > { %p6298_p5 = por %p206_p2, %p205_p0  ;;  %p6302_p6 = por %p212_p4, %p211_p3 }
   0xb   : > { %p5100_p7 = scmp.ge.s32.totalorder %s6203_s27, 1  ;;  %p219_p8 = scmp.lt.s32.totalorder %s6203_s27, 3 }
   0xc   : > { %s7387_s11 = scalar_select %p6298_p5, 1, 0 }
   0xd   : > { %s7388_s12 = scalar_select %p6302_p6, 1, 0 }
   0xe   : > { %p7375_p9 = scmp.eq.s32.totalorder %s6281_s28, 0  ;;  %p6309_p10 = pnand %p5100_p7, %p219_p8 }
   0xf   : > { %s6205_s14 = smov [#allocation2]   ;;  %s6109_s19 = scalar_lea.hbm %s7372_s5, 13824 }
  0x10   : > { %s7389_s13 = scalar_select %p6309_p10, 1, 0 }
  0x11   : > { %s234_s15 = sshll.u32 %s6205_s14, 4  ;;  %p5927_p11 = pneg %p6309_p10  ;;  %s235_s15 = int_to_ptr.vmem [resolvable:$true] %s234_s15 }
  0x12   : > { %p6110_p13 = scmp.ne.s32.totalorder %s7372_s5, %s6109_s19  ;;  %p6116_p3 = scmp.lt.u32.totalorder %s6109_s19, %s7372_s5 }
  0x13   : > { %p6317_p12 = pnand %p7375_p9, %p5927_p11 }
  0x15   : > { %p6111_p0 = pneg %p6317_p12 }
  0x17   : > { %p6112_p1 = pnand %p6111_p0, %p6110_p13 }
  0x19   : > { %p6113_p2 = pneg %p6112_p1 }
  0x1b   : > { %p6118_p4 = pnand %p6116_p3, %p6113_p2 }
  0x1d   : > { %6121 = shalt.err (!%p6118_p4)
}
  0x1e   : > { %s6122_s29 = scalar_lea.vmem %s235_s15, 13824  ;;  %p6130_p9 = scmp.lt.s32.totalorder %s235_s15, %s235_s15 }
  0x1f   : > { %p6123_p7 = scmp.ne.s32.totalorder %s235_s15, %s6122_s29  ;;  %p6131_p6 = scmp.lt.s32.totalorder %s6122_s29, %s6122_s29 }
  0x21   : > { %p6125_p8 = pnand %p6123_p7, %p6111_p0  ;;  %p6132_p5 = por %p6131_p6, %p6130_p9 }
  0x23   : > { %p6126_p11 = pneg %p6125_p8 }
  0x25   : > { %p6133_p10 = pnand %p6132_p5, %p6126_p11 }
  0x27   : > { %6136 = shalt.err (!%p6133_p10)
}
  0x28   : > { %s6206_s8 = smov 128   ;;  %s6207_s9 = smov 8  }
  0x29   : > { %5930 = dma.hbm_to_vmem [thread:$0]  (!%p6317_p12), %s7372_s5, 13824, %s235_s15, [#allocation3], %s6206_s8, %s6206_s8, %s6207_s9  }
  0x2a   : > { %p7391_p13 = scmp.ne.s32.totalorder %s7389_s13, 0 }
  0x2b   : > { %p7392_p1 = scmp.eq.s32.totalorder (!%p7391_p13), %s6281_s28, 0 }
  0x2c   : > { %279 = sbr.rel (%p7391_p13) target bundleno = 15249 (0x3b91), region = 48 }
  0x33   : > { %6182 = dma.done.wait (%p7392_p1), [#allocation3], 13824   ;;  %p7393_p0 = pmov %p7392_p1 }
  0x34   : > { %p320_p5 = scmp.lt.s32.totalorder %s6281_s28, 1  ;;  %v338_v0 = vlaneseq  ;;  %v6208_v1 = vmov 0   ;;  %v6209_v2 = vmov 0.0   ;;  %v359_v8 = vld [vmem:[%s7371_s4] sm:$0xff]  ;;  %v360_v9 = vld [vmem:[%s7371_s4 + $0x8] sm:$0xff]  ;;  %v361_v11 = vld [vmem:[%s7371_s4 + $0x10] sm:$0xff] }
  0x35   : > { %6184 = vsyncadd (%p7393_p0), [#allocation3], 4294953472  ;;  %5984 = vset.pattern.permute.xlu0 %v6208_v1  ;;  %5417 = vmatprep.subr.bf16.mxu0 %v6209_v2  ;;  %v363_v14 = vpack.c.bf16 %v360_v9, %v359_v8  ;;  %v362_v15 = vld [vmem:[%s7371_s4 + $0x18] sm:$0xff]  ;;  %vm6210_vm3 = vmmov 0   ;;  %vm366_vm7 = vcmask 261120   ;;  %v365_v23 = vld [vmem:[%s7371_s4 + $0x20] sm:$0xff] }
  0x36   : > { %s6346_s16 = scalar_select %p320_p5, %s6281_s28, 1  ;;  %v339_v3 = vshrl.u32 %v338_v0, 7  ;;  %5425 = vmatprep.subr.bf16.mxu1 %v6209_v2  ;;  %v6369_v10 = vand.u32 127, %v338_v0  ;;  %v364_v18 = vpack.c.bf16 %v362_v15, %v361_v11  ;;  %5421 = vmatprep.mubr.msk.bf16.mxu0 %vm6210_vm3, %v6209_v2  ;;  %v436_v35 = vld [vmem:[#allocation2] sm:$0xff]  ;;  %v437_v36 = vld [vmem:[#allocation2 + $0x8] sm:$0xff]  ;;  %v438_v37 = vld [vmem:[#allocation2 + $0x10] sm:$0xff] }
  0x37   : > { %5418 = vmatpush3.bf16.msra.mxu0 %v363_v14  ;;  %5429 = vmatprep.mubr.msk.bf16.mxu1 %vm6210_vm3, %v6209_v2  ;;  %v447_v38 = vpack.c.bf16 %v437_v36, %v436_v35  ;;  %v439_v39 = vld [vmem:[#allocation2 + $0x18] sm:$0xff]  ;;  %v5110_v45 = vld [vmem:[%s7373_s6 + $0x2] ss:$0 sm:$0xff]  ;;  %v5111_v47 = vld [vmem:[%s7373_s6 + $0x3] ss:$0 sm:$0xff]  ;;  %s6211_s15 = smov 120  }
  0x38   : > { %s322_s18 = scalar_lea.vmem %s7367_s0, %s6346_s16  ;;  %s325_s21 = scalar_lea.vmem %s7368_s1, %s6346_s16  ;;  %v347_v4 = vsub.s32 0, %v339_v3  ;;  %vm342_vm2 = vcmp.le.s32.totalorder %v6369_v10, %v339_v3  ;;  %5419 = vmatprep.subr.bf16.mxu0 %v6209_v2  ;;  %v448_v40 = vpack.c.bf16 %v439_v39, %v438_v37  ;;  %v5112_v51 = vld [vmem:[%s7373_s6] ss:$0 sm:$0xff]  ;;  %vm513_vm8 = vcmask 64512  }
  0x39   : > { %s7378_s22 = sshll.u32 %s6346_s16, 3  ;;  %v335_v5 = vld [vmem:[%s322_s18] sm:$0x1]  ;;  %5426 = vmatpush3.bf16.msra.mxu1 %v447_v38  ;;  %s6212_s19 = smov 112   ;;  %vm774_vm10 = vcmask 1043456   ;;  %vm975_vm11 = vcmask 130048  }
  0x3a   : > { %s329_s8 = scalar_lea.vmem %s7369_s2, %s7378_s22  ;;  %v336_v6 = vld [vmem:[%s325_s21] sm:$0x1]  ;;  %vm337_vm0 = vcmp.ne.s32.totalorder %v335_v5, 0  ;;  %5427 = vmatprep.subr.bf16.mxu1 %v6209_v2  ;;  %s6213_s18 = smov 104   ;;  %vm977_vm12 = vcmask 195584   ;;  %vm1129_vm13 = vcmask 523264  }
  0x3b   : > { %v351_v7 = vld [vmem:[%s329_s8] sm:$0xff]  ;;  %vm343_vm1 = vcmp.ne.s32.totalorder %v336_v6, 0  ;;  %v711_v13 = vsel %vm337_vm0, 1, %v6208_v1  ;;  %5420 = vmatpush3.bf16.msra.mxu0 %v364_v18  ;;  %s6214_s20 = smov 96   ;;  %s7385_s21 = smov 64  }
  0x3c   : > { %353 = vperm.xlu0 %5984, %v351_v7   ;;  %v344_v12 = vsel %vm343_vm1, 1, %v6208_v1  ;;  %v6377_v17 = vrot.slane %v711_v13, %v347_v4  ;;  %5433 = vmatprep.subr.bf16.mxu0 %v6209_v2  ;;  %s7383_s23 = smov 8   ;;  %s7381_s29 = smov 16  }
  0x3d   : > { %v348_v16 = vrot.slane %v344_v12, %v347_v4  ;;  %5428 = vmatpush3.bf16.msra.mxu1 %v448_v40  ;;  %s7379_s8 = smov 24   ;;  %s7396_s22 = smov 24  }
  0x3e   : > { %5439 = vmatprep.subr.bf16.mxu1 %v6209_v2  ;;  %vm716_vm9 = vcmp.eq.s32.totalorder %v6377_v17, 1  ;;  %s7397_s13 = sshll.u32 %s6346_s16, 3  ;;  %s7400_s9 = smov 16  }
  0x3f   : > { %vm349_vm4 = vcmp.eq.s32.totalorder %v348_v16, 1  ;;  %p7401_p9 = scmp.ne.s32.totalorder %s7387_s11, 0 }
  0x40   : > { %vm6385_vm5 = vmand %vm342_vm2, %vm349_vm4 }
  0xbb   : > { %v354_v20 = vpop.permute.xlu0 %353 }
  0xbc   : > { %vm355_vm6 = vcmp.eq.s32.totalorder %v354_v20, %v6369_v10 }
  0xbd   : > { %v5108_v21 = vsel %vm355_vm6, 1.0, %v6209_v2 }
  0xbe   : > { %v358_v22 = vpack.c.bf16 %v5108_v21, %v5108_v21 }
  0xc0   : > { %5422 = vmatmul.mubr.msk.bf16.vlgmr.msra.gmra.mrb[0].mxu0 %vm366_vm7, %v358_v22 }
  0xc1   : > { %5435 = vmatprep.mubr.msk.bf16.mxu0 %vm6210_vm3, %v6209_v2 }
 0x193   : > { %v404_v24 = vpop.f32.mrb[0].mxu0 }
 0x194   : > { %v6398_v25 = vadd.f32 %v404_v24, %v365_v23  ;;  %v5423_v26 = vpop.f32.mrb[1].mxu0 }
 0x195   : > { %v407_v27 = vpop.f32.mrb[2].mxu0 }
 0x196   : > { %v5424_v28 = vpop.f32.mrb[3].mxu0  ;;  %v412_v29 = vsel %vm366_vm7, %v6398_v25, 0.0 }
 0x197   : > { %413 = vadd.xlane.f32.xlu0 %v412_v29 }
 0x224   : > { %v414_v30 = vpop.xlane.xlu0 %413 }
 0x225   : > { %v416_v31 = vmul.f32 0.03125, %v414_v30 }
 0x227   : > { %v417_v32 = vsub.f32 %v6398_v25, %v416_v31 }
 0x229   : > { %v418_v33 = vmul.f32 %v417_v32, %v417_v32 }
 0x22b   : > { %v419_v34 = vsel %vm366_vm7, %v418_v33, 0.0 }
 0x22c   : > { %420 = vadd.xlane.f32.xlu1 %v419_v34 }
 0x2b9   : > { %v421_v41 = vpop.xlane.xlu1 %420 }
 0x2ba   : > { %v422_v42 = vmul.f32 0.03125, %v421_v41 }
 0x2bc   : > { %v423_v43 = vadd.f32 1e-05, %v422_v42 }
 0x2be   : > { %5985 = vrsqrt.f32 %v423_v43 }
 0x2c8   : > { %v5986_v44 = vpop.eup %5985 }
 0x2c9   : > { %v425_v46 = vmul.f32 %v5986_v44, %v417_v32 }
 0x2cb   : > { %v430_v48 = vmul.f32 %v5110_v45, %v425_v46 }
 0x2cd   : > { %v435_v49 = vadd.f32 %v5111_v47, %v430_v48 }
 0x2cf   : > { %v446_v50 = vpack.c.bf16 %v435_v49, %v435_v49 }
 0x2d1   : > { %5430 = vmatmul.mubr.msk.bf16.vlgmr.msra.gmra.mrb[0].mxu1 %vm366_vm7, %v446_v50 }
 0x2d2   : > { %5441 = vmatprep.mubr.msk.bf16.mxu1 %vm6210_vm3, %v6209_v2 }
 0x3a4   : > { %v490_v52 = vpop.f32.mrb[0].mxu1 }
 0x3a5   : > { %v491_v53 = vadd.f32 %v5112_v51, %v490_v52  ;;  %v5431_v54 = vpop.f32.mrb[1].mxu1 }
 0x3a6   : > { %v493_v55 = vpop.f32.mrb[2].mxu1 }
 0x3a7   : > { %497 = vrot.lane.b32.xlu1 %v491_v53, %s6211_s15  ;;  %v5432_v56 = vpop.f32.mrb[3].mxu1  ;;  %v6421_v57 = vpack.c.bf16 %v491_v53, %v491_v53 }
 0x3ab   : > { %500 = vrot.lane.b32.xlu1 %v491_v53, %s6212_s19 }
 0x3af   : > { %503 = vrot.lane.b32.xlu1 %v491_v53, %s6213_s18 }
 0x3b3   : > { %511 = vrot.lane.b32.xlu1 %v6421_v57, %s6214_s20 }
 0x419   : > { %v498_v58 = vpop.permute.xlu1 %497 }
 0x41a   : > { %v6425_v59 = vpack.c.bf16 %v498_v58, %v498_v58 }
 0x41c   : > { %561 = vrot.lane.b32.xlu1 %v6425_v59, %s6214_s20 }
 0x41d   : > { %v501_v60 = vpop.permute.xlu1 %500 }
 0x41e   : > { %v6429_v61 = vpack.c.bf16 %v501_v60, %v501_v60 }
 0x420   : > { %610 = vrot.lane.b32.xlu0 %v6429_v61, %s6214_s20 }
 0x421   : > { %v504_v62 = vpop.permute.xlu1 %503 }
 0x422   : > { %v6433_v63 = vpack.c.bf16 %v504_v62, %v504_v62 }
 0x424   : > { %659 = vrot.lane.b32.xlu1 %v6433_v63, %s6214_s20 }
 0x425   : > { %v512_v0 = vpop.permute.xlu1 %511 }
 0x426   : > { %v518_v1 = vsel %vm513_vm8, %v512_v0, 0 }
 0x427   : > { %5434 = vmatpush3.bf16.xpose.msra.mxu0 %v518_v1 }
 0x428   : > { %5445 = vmatprep.subr.bf16.mxu0 %v6209_v2 }
 0x42e   : > { %5436 = vmatmul.mubr.msk.bf16.vlgmr.msra.gmra.mrb[4].mxu0 %vm513_vm8, %v6421_v57 }
 0x42f   : > { %5447 = vmatprep.mubr.msk.bf16.mxu0 %vm6210_vm3, %v6209_v2 }
 0x48e   : > { %v562_v3 = vpop.permute.xlu1 %561 }
 0x48f   : > { %v567_v4 = vsel %vm513_vm8, %v562_v3, 0 }
 0x490   : > { %5440 = vmatpush3.bf16.xpose.msra.mxu1 %v567_v4 }
 0x491   : > { %5451 = vmatprep.subr.bf16.mxu1 %v6209_v2 }
 0x492   : > { %v611_v5 = vpop.permute.xlu0 %610 }
 0x493   : > { %v616_v6 = vsel %vm513_vm8, %v611_v5, 0 }
 0x494   : > { %5446 = vmatpush3.bf16.xpose.msra.mxu0 %v616_v6 }
 0x495   : > { %5457 = vmatprep.subr.bf16.mxu0 %v6209_v2 }
 0x496   : > { %v660_v7 = vpop.permute.xlu1 %659 }
 0x497   : > { %v665_v8 = vsel %vm513_vm8, %v660_v7, 0  ;;  %5442 = vmatmul.mubr.msk.bf16.vlgmr.msra.gmra.mrb[4].mxu1 %vm513_vm8, %v6425_v59 }
 0x498   : > { %5452 = vmatpush3.bf16.xpose.msra.mxu1 %v665_v8  ;;  %5453 = vmatprep.mubr.msk.bf16.mxu1 %vm6210_vm3, %v6209_v2 }
 0x499   : > { %5463 = vmatprep.subr.bf16.mxu1 %v6209_v2 }
 0x49b   : > { %5448 = vmatmul.mubr.msk.bf16.vlgmr.msra.gmra.mrb[8].mxu0 %vm513_vm8, %v6429_v61 }
 0x49c   : > { %5459 = vmatprep.mubr.msk.bf16.mxu0 %vm6210_vm3, %v6209_v2 }
 0x49f   : > { %5454 = vmatmul.mubr.msk.bf16.vlgmr.msra.gmra.mrb[8].mxu1 %vm513_vm8, %v6433_v63 }
 0x4a0   : > { %5465 = vmatprep.mubr.msk.bf16.mxu1 %vm6210_vm3, %v6209_v2 }
 0x501   : > { %v554_v9 = vpop.f32.mrb[4].mxu0 }
 0x502   : > { %v707_v11 = vmul.f32 0.35355338, %v554_v9  ;;  %v5437_v12 = vpop.f32.mrb[5].mxu0 }
 0x503   : > { %v557_v13 = vpop.f32.mrb[6].mxu0 }
 0x504   : > { %v5438_v14 = vpop.f32.mrb[7].mxu0  ;;  %v717_v15 = vsel %vm716_vm9, %v707_v11, -1e+09 }
 0x505   : > { %v721_v16 = vsel %vm513_vm8, %v717_v15, -inf }
 0x506   : > { %722 = vmax.xlane.f32.xlu1 %v721_v16 }
 0x56a   : > { %v603_v18 = vpop.f32.mrb[4].mxu1 }
 0x56b   : > { %v708_v20 = vmul.f32 0.35355338, %v603_v18  ;;  %v5443_v21 = vpop.f32.mrb[5].mxu1 }
 0x56c   : > { %v606_v22 = vpop.f32.mrb[6].mxu1 }
 0x56d   : > { %v5444_v23 = vpop.f32.mrb[7].mxu1  ;;  %v718_v24 = vsel %vm716_vm9, %v708_v20, -1e+09 }
 0x56e   : > { %v652_v26 = vpop.f32.mrb[8].mxu0  ;;  %v724_v27 = vsel %vm513_vm8, %v718_v24, -inf }
 0x56f   : > { %v709_v28 = vmul.f32 0.35355338, %v652_v26  ;;  %v5449_v29 = vpop.f32.mrb[9].mxu0  ;;  %725 = vmax.xlane.f32.xlu0 %v724_v27 }
 0x570   : > { %v655_v30 = vpop.f32.mrb[10].mxu0 }
 0x571   : > { %v5450_v31 = vpop.f32.mrb[11].mxu0  ;;  %v719_v32 = vsel %vm716_vm9, %v709_v28, -1e+09  ;;  %v441_v30 = vld [vmem:[#allocation2 + $0x20] sm:$0xff] }
 0x572   : > { %v701_v33 = vpop.f32.mrb[8].mxu1  ;;  %v727_v34 = vsel %vm513_vm8, %v719_v32, -inf  ;;  %v442_v31 = vld [vmem:[#allocation2 + $0x28] sm:$0xff] }
 0x573   : > { %v710_v35 = vmul.f32 0.35355338, %v701_v33  ;;  %v5455_v36 = vpop.f32.mrb[9].mxu1  ;;  %728 = vmax.xlane.f32.xlu1 %v727_v34  ;;  %v443_v33 = vld [vmem:[#allocation2 + $0x30] sm:$0xff]  ;;  %v444_v34 = vld [vmem:[#allocation2 + $0x38] sm:$0xff] }
 0x574   : > { %v704_v37 = vpop.f32.mrb[10].mxu1 }
 0x575   : > { %v5456_v38 = vpop.f32.mrb[11].mxu1  ;;  %v720_v39 = vsel %vm716_vm9, %v710_v35, -1e+09  ;;  %v981_v35 = vpack.c.bf16 %v444_v34, %v443_v33  ;;  %v1066_v33 = vld [vmem:[#allocation2 + $0x90] sm:$0xff]  ;;  %v1067_v34 = vld [vmem:[#allocation2 + $0x98] sm:$0xff] }
 0x576   : > { %v730_v40 = vsel %vm513_vm8, %v720_v39, -inf }
 0x577   : > { %731 = vmax.xlane.f32.xlu1 %v730_v40 }
 0x588   : > { %769 = vrot.lane.b32.xlu1 %v6421_v57, %s7385_s21 }
 0x593   : > { %v723_v41 = vpop.xlane.xlu1 %722 }
 0x594   : > { %v733_v42 = vsub.f32 %v717_v15, %v723_v41 }
 0x596   : > { %v737_v43 = vmul.f32 1.442695, %v733_v42 }
 0x598   : > { %5987 = vpow2.f32 %v737_v43 }
 0x5a2   : > { %v5988_v44 = vpop.eup %5987 }
 0x5a3   : > { %v745_v45 = vsel %vm513_vm8, %v5988_v44, 0.0 }
 0x5ac   : > { %746 = vadd.xlane.f32.xlu1 %v745_v45 }
 0x5fc   : > { %v726_v46 = vpop.xlane.xlu0 %725 }
 0x5fd   : > { %v734_v47 = vsub.f32 %v718_v24, %v726_v46 }
 0x5ff   : > { %v739_v48 = vmul.f32 1.442695, %v734_v47 }
 0x600   : > { %v729_v49 = vpop.xlane.xlu1 %728 }
 0x601   : > { %5989 = vpow2.f32 %v739_v48  ;;  %v735_v50 = vsub.f32 %v719_v32, %v729_v49  ;;  %v980_v32 = vpack.c.bf16 %v442_v31, %v441_v30  ;;  %v1064_v30 = vld [vmem:[#allocation2 + $0x80] sm:$0xff]  ;;  %v1065_v31 = vld [vmem:[#allocation2 + $0x88] sm:$0xff] }
 0x603   : > { %v741_v51 = vmul.f32 1.442695, %v735_v50 }
 0x604   : > { %v732_v52 = vpop.xlane.xlu1 %731 }
 0x605   : > { %5991 = vpow2.f32 %v741_v51  ;;  %v736_v53 = vsub.f32 %v720_v39, %v732_v52 }
 0x607   : > { %v743_v54 = vmul.f32 1.442695, %v736_v53 }
 0x608   : > { %v770_v55 = vpop.permute.xlu1 %769 }
 0x609   : > { %5993 = vpow2.f32 %v743_v54  ;;  %v776_v56 = vsel %vm774_vm10, %v770_v55, 0  ;;  %v5122_v55 = vld [vmem:[%s7373_s6 + $0x1] ss:$0 sm:$0xff] }
 0x60a   : > { %5458 = vmatpush3.bf16.msra.mxu0 %v776_v56 }
 0x60b   : > { %v5990_v57 = vpop.eup %5989  ;;  %5469 = vmatprep.subr.bf16.mxu0 %v6209_v2 }
 0x60c   : > { %v748_v58 = vsel %vm513_vm8, %v5990_v57, 0.0 }
 0x60d   : > { %749 = vadd.xlane.f32.xlu0 %v748_v58 }
 0x60f   : > { %v5992_v60 = vpop.eup %5991 }
 0x610   : > { %v751_v62 = vsel %vm513_vm8, %v5992_v60, 0.0 }
 0x611   : > { %752 = vadd.xlane.f32.xlu1 %v751_v62 }
 0x613   : > { %v5994_v0 = vpop.eup %5993 }
 0x614   : > { %v754_v1 = vsel %vm513_vm8, %v5994_v0, 0.0 }
 0x615   : > { %755 = vadd.xlane.f32.xlu0 %v754_v1 }
 0x622   : > { %866 = vrot.lane.b32.xlu1 %v6429_v61, %s7385_s21 }
 0x626   : > { %914 = vrot.lane.b32.xlu1 %v6433_v63, %s7385_s21 }
 0x62b   : > { %818 = vrot.lane.b32.xlu0 %v6425_v59, %s7385_s21 }
 0x639   : > { %v747_v3 = vpop.xlane.xlu1 %746 }
 0x63a   : > { %5995 = vrcp.f32 %v747_v3 }
 0x644   : > { %v5996_v4 = vpop.eup %5995 }
 0x645   : > { %v761_v5 = vmul.f32 %v5996_v4, %v5988_v44 }
 0x647   : > { %v765_v6 = vpack.c.bf16 %v761_v5, %v761_v5 }
 0x649   : > { %5460 = vmatmul.mubr.msk.bf16.vlgmr.msra.gmra.mrb[12].mxu0 %vm513_vm8, %v765_v6 }
 0x64a   : > { %5471 = vmatprep.mubr.msk.bf16.mxu0 %vm6210_vm3, %v6209_v2 }
 0x69a   : > { %v750_v7 = vpop.xlane.xlu0 %749 }
 0x69b   : > { %5997 = vrcp.f32 %v750_v7 }
 0x69e   : > { %v753_v8 = vpop.xlane.xlu1 %752 }
 0x69f   : > { %5999 = vrcp.f32 %v753_v8  ;;  %v1055_v8 = vld [vmem:[#allocation2 + $0x40] sm:$0xff] }
 0x6a2   : > { %v756_v61 = vpop.xlane.xlu0 %755  ;;  %v867_v9 = vpop.permute.xlu1 %866 }
 0x6a3   : > { %6001 = vrcp.f32 %v756_v61  ;;  %v872_v63 = vsel %vm774_vm10, %v867_v9, 0  ;;  %v1056_v61 = vld [vmem:[#allocation2 + $0x48] sm:$0xff] }
 0x6a4   : > { %5470 = vmatpush3.bf16.msra.mxu0 %v872_v63  ;;  %v1070_v9 = vpack.c.bf16 %v1056_v61, %v1055_v8  ;;  %v1057_v63 = vld [vmem:[#allocation2 + $0x50] sm:$0xff]  ;;  %v5131_v61 = vld [vmem:[%s7373_s6 + $0xb] ss:$0 sm:$0xff] }
 0x6a5   : > { %v5998_v59 = vpop.eup %5997  ;;  %5481 = vmatprep.subr.bf16.mxu0 %v6209_v2 }
 0x6a6   : > { %v819_v11 = vpop.permute.xlu0 %818  ;;  %v762_v12 = vmul.f32 %v5998_v59, %v5990_v57  ;;  %v915_v14 = vpop.permute.xlu1 %914  ;;  %v1058_v59 = vld [vmem:[#allocation2 + $0x58] sm:$0xff] }
 0x6a7   : > { %v824_v13 = vsel %vm774_vm10, %v819_v11, 0  ;;  %v920_v20 = vsel %vm774_vm10, %v915_v14, 0  ;;  %v1060_v11 = vld [vmem:[#allocation2 + $0x60] sm:$0xff] }
 0x6a8   : > { %5464 = vmatpush3.bf16.msra.mxu1 %v824_v13  ;;  %v766_v15 = vpack.c.bf16 %v762_v12, %v762_v12  ;;  %v1061_v12 = vld [vmem:[#allocation2 + $0x68] sm:$0xff]  ;;  %v1062_v13 = vld [vmem:[#allocation2 + $0x70] sm:$0xff] }
 0x6a9   : > { %v6000_v16 = vpop.eup %5999  ;;  %5475 = vmatprep.subr.bf16.mxu1 %v6209_v2  ;;  %v1121_v14 = vpack.c.bf16 %v1061_v12, %v1060_v11 }
 0x6aa   : > { %v763_v18 = vmul.f32 %v6000_v16, %v5992_v60 }
 0x6ab   : > { %5466 = vmatmul.mubr.msk.bf16.vlgmr.msra.gmra.mrb[12].mxu1 %vm513_vm8, %v766_v15  ;;  %v1063_v15 = vld [vmem:[#allocation2 + $0x78] sm:$0xff] }
 0x6ac   : > { %5476 = vmatpush3.bf16.msra.mxu1 %v920_v20  ;;  %v767_v21 = vpack.c.bf16 %v763_v18, %v763_v18  ;;  %5477 = vmatprep.mubr.msk.bf16.mxu1 %vm6210_vm3, %v6209_v2  ;;  %v1122_v16 = vpack.c.bf16 %v1063_v15, %v1062_v13 }
 0x6ad   : > { %v6002_v22 = vpop.eup %6001  ;;  %5489 = vmatprep.subr.bf16.mxu1 %v6209_v2 }
 0x6ae   : > { %5472 = vmatmul.mubr.msk.bf16.vlgmr.msra.gmra.mrb[16].mxu0 %vm513_vm8, %v767_v21  ;;  %v764_v23 = vmul.f32 %v6002_v22, %v5994_v0 }
 0x6af   : > { %5485 = vmatprep.mubr.msk.bf16.mxu0 %vm6210_vm3, %v6209_v2  ;;  %5482 = vmatpush3.bf16.msra.mxu0 %v980_v32  ;;  %v1123_v32 = vpack.c.bf16 %v1065_v31, %v1064_v30 }
 0x6b0   : > { %v768_v24 = vpack.c.bf16 %v764_v23, %v764_v23  ;;  %5483 = vmatprep.subr.bf16.mxu0 %v6209_v2  ;;  %v5124_v23 = vld [vmem:[%s7373_s6 + $0x4] ss:$0 sm:$0xff] }
 0x6b3   : > { %5478 = vmatmul.mubr.msk.bf16.vlgmr.msra.gmra.mrb[16].mxu1 %vm513_vm8, %v768_v24  ;;  %5484 = vmatpush3.bf16.msra.mxu0 %v981_v35  ;;  %v1124_v35 = vpack.c.bf16 %v1067_v34, %v1066_v33 }
 0x6b4   : > { %5493 = vmatprep.mubr.msk.bf16.mxu1 %vm6210_vm3, %v6209_v2  ;;  %5497 = vmatprep.subr.bf16.mxu0 %v6209_v2 }
 0x6b5   : > { %5490 = vmatpush3.bf16.msra.mxu1 %v1070_v9 }
 0x6b6   : > { %5491 = vmatprep.subr.bf16.mxu1 %v6209_v2 }
 0x71c   : > { %v812_v26 = vpop.f32.mrb[12].mxu0 }
 0x71d   : > { %v5461_v27 = vpop.f32.mrb[13].mxu0 }
 0x71e   : > { %v815_v28 = vpop.f32.mrb[14].mxu0 }
 0x71f   : > { %v5462_v29 = vpop.f32.mrb[15].mxu0 }
 0x77e   : > { %v860_v36 = vpop.f32.mrb[12].mxu1 }
 0x77f   : > { %963 = vrot.lane.b32.xlu0 %v860_v36, %s7383_s23  ;;  %v5467_v37 = vpop.f32.mrb[13].mxu1  ;;  %v5126_v36 = vld [vmem:[%s7373_s6 + $0x6] ss:$0 sm:$0xff] }
 0x780   : > { %v863_v38 = vpop.f32.mrb[14].mxu1 }
 0x781   : > { %v5468_v39 = vpop.f32.mrb[15].mxu1  ;;  %v908_v40 = vpop.f32.mrb[16].mxu0 }
 0x782   : > { %967 = vrot.lane.b32.xlu1 %v908_v40, %s7381_s29  ;;  %v5473_v41 = vpop.f32.mrb[17].mxu0 }
 0x783   : > { %v911_v42 = vpop.f32.mrb[18].mxu0 }
 0x784   : > { %v5474_v43 = vpop.f32.mrb[19].mxu0 }
 0x786   : > { %v956_v44 = vpop.f32.mrb[16].mxu1 }
 0x787   : > { %971 = vrot.lane.b32.xlu0 %v956_v44, %s7379_s8  ;;  %v5479_v45 = vpop.f32.mrb[17].mxu1  ;;  %v5128_v44 = vld [vmem:[%s7373_s6 + $0x7] ss:$0 sm:$0xff]  ;;  %s333_s8 = scalar_lea.vmem %s7370_s3, %s7397_s13 }
 0x788   : > { %v959_v46 = vpop.f32.mrb[18].mxu1 }
 0x789   : > { %v5480_v47 = vpop.f32.mrb[19].mxu1 }
 0x7f1   : > { %v964_v48 = vpop.permute.xlu0 %963 }
 0x7f2   : > { %v974_v50 = vsel %vm513_vm8, %v812_v26, %v964_v48  ;;  %v5125_v26 = vld [vmem:[%s7373_s6 + $0x5] ss:$0 sm:$0xff] }
 0x7f4   : > { %v968_v49 = vpop.permute.xlu1 %967 }
 0x7f5   : > { %v976_v51 = vsel %vm975_vm11, %v974_v50, %v968_v49 }
 0x7f9   : > { %v972_v52 = vpop.permute.xlu0 %971 }
 0x7fa   : > { %v978_v53 = vsel %vm977_vm12, %v976_v51, %v972_v52 }
 0x7fb   : > { %v979_v54 = vpack.c.bf16 %v978_v53, %v978_v53 }
 0x7fd   : > { %5486 = vmatmul.mubr.msk.bf16.vlgmr.msra.gmra.mrb[20].mxu0 %vm366_vm7, %v979_v54 }
 0x7fe   : > { %5505 = vmatprep.mubr.msk.bf16.mxu0 %vm6210_vm3, %v6209_v2  ;;  %5498 = vmatpush3.bf16.msra.mxu0 %v1121_v14 }
 0x7ff   : > { %5499 = vmatprep.subr.bf16.mxu0 %v6209_v2 }
 0x802   : > { %5500 = vmatpush3.bf16.msra.mxu0 %v1122_v16 }
 0x803   : > { %5501 = vmatprep.subr.bf16.mxu0 %v6209_v2 }
 0x806   : > { %5502 = vmatpush3.bf16.msra.mxu0 %v1123_v32 }
 0x807   : > { %5503 = vmatprep.subr.bf16.mxu0 %v6209_v2 }
 0x80a   : > { %5504 = vmatpush3.bf16.msra.mxu0 %v1124_v35 }
 0x80b   : > { %5523 = vmatprep.subr.bf16.mxu0 %v6209_v2 }
 0x8d0   : > { %v1023_v56 = vpop.f32.mrb[20].mxu0 }
 0x8d1   : > { %v1024_v57 = vadd.f32 %v5122_v55, %v1023_v56  ;;  %v5487_v58 = vpop.f32.mrb[21].mxu0 }
 0x8d2   : > { %v1026_v60 = vpop.f32.mrb[22].mxu0  ;;  %v1200_v58 = vld [vmem:[#allocation2 + $0xa8] sm:$0xff] }
 0x8d3   : > { %v6521_v62 = vadd.f32 %v1024_v57, %v6398_v25  ;;  %v5488_v0 = vpop.f32.mrb[23].mxu0  ;;  %v1071_v25 = vpack.c.bf16 %v1058_v59, %v1057_v63  ;;  %v1199_v57 = vld [vmem:[#allocation2 + $0xa0] sm:$0xff] }
 0x8d4   : > { %v1210_v60 = vpack.c.bf16 %v1200_v58, %v1199_v57  ;;  %v1201_v0 = vld [vmem:[#allocation2 + $0xb0] sm:$0xff] }
 0x8d5   : > { %v1032_v1 = vsel %vm366_vm7, %v6521_v62, 0.0  ;;  %5492 = vmatpush3.bf16.msra.mxu1 %v1071_v25  ;;  %v5132_v25 = vld [vmem:[%s7373_s6 + $0x8] ss:$0 sm:$0xff] }
 0x8d6   : > { %1033 = vadd.xlane.f32.xlu1 %v1032_v1  ;;  %5509 = vmatprep.subr.bf16.mxu1 %v6209_v2  ;;  %v1202_v1 = vld [vmem:[#allocation2 + $0xb8] sm:$0xff] }
 0x963   : > { %v1034_v3 = vpop.xlane.xlu1 %1033 }
 0x964   : > { %v1035_v4 = vmul.f32 0.03125, %v1034_v3 }
 0x966   : > { %v1036_v5 = vsub.f32 %v6521_v62, %v1035_v4 }
 0x968   : > { %v1037_v6 = vmul.f32 %v1036_v5, %v1036_v5 }
 0x96a   : > { %v1038_v7 = vsel %vm366_vm7, %v1037_v6, 0.0 }
 0x96b   : > { %1039 = vadd.xlane.f32.xlu0 %v1038_v7  ;;  %v5130_v7 = vld [vmem:[%s7373_s6 + $0xa] ss:$0 sm:$0xff] }
 0x9f8   : > { %v1040_v18 = vpop.xlane.xlu0 %1039 }
 0x9f9   : > { %v1041_v20 = vmul.f32 0.03125, %v1040_v18 }
 0x9fb   : > { %v1042_v21 = vadd.f32 1e-05, %v1041_v20 }
 0x9fd   : > { %6003 = vrsqrt.f32 %v1042_v21 }
 0xa07   : > { %v6004_v22 = vpop.eup %6003 }
 0xa08   : > { %v1044_v24 = vmul.f32 %v6004_v22, %v1036_v5 }
 0xa0a   : > { %v1049_v27 = vmul.f32 %v5124_v23, %v1044_v24 }
 0xa0c   : > { %v1054_v28 = vadd.f32 %v5125_v26, %v1049_v27 }
 0xa0e   : > { %v1069_v29 = vpack.c.bf16 %v1054_v28, %v1054_v28 }
 0xa10   : > { %5494 = vmatmul.mubr.msk.bf16.vlgmr.msra.gmra.mrb[20].mxu1 %vm366_vm7, %v1069_v29 }
 0xa11   : > { %5513 = vmatprep.mubr.msk.bf16.mxu1 %vm6210_vm3, %v6209_v2  ;;  %5510 = vmatpush3.bf16.msra.mxu1 %v1210_v60 }
 0xa12   : > { %5511 = vmatprep.subr.bf16.mxu1 %v6209_v2 }
 0xae3   : > { %v1113_v37 = vpop.f32.mrb[20].mxu1 }
 0xae4   : > { %v1114_v38 = vadd.f32 %v5126_v36, %v1113_v37  ;;  %v5495_v39 = vpop.f32.mrb[21].mxu1 }
 0xae5   : > { %v1116_v40 = vpop.f32.mrb[22].mxu1 }
 0xae6   : > { %v1119_v41 = vmax.f32 %v1114_v38, 0.0  ;;  %v5496_v42 = vpop.f32.mrb[23].mxu1 }
 0xae8   : > { %v1120_v43 = vpack.c.bf16 %v1119_v41, %v1119_v41 }
 0xaea   : > { %5506 = vmatmul.mubr.msk.bf16.vlgmr.msra.gmra.mrb[24].mxu0 %vm1129_vm13, %v1120_v43 }
 0xaeb   : > { %5525 = vmatprep.mubr.msk.bf16.mxu0 %vm6210_vm3, %v6209_v2 }
 0xbbd   : > { %v1167_v45 = vpop.f32.mrb[24].mxu0 }
 0xbbe   : > { %v1168_v46 = vadd.f32 %v5128_v44, %v1167_v45  ;;  %v5507_v47 = vpop.f32.mrb[25].mxu0 }
 0xbbf   : > { %v1170_v48 = vpop.f32.mrb[26].mxu0 }
 0xbc0   : > { %v6552_v49 = vadd.f32 %v1168_v46, %v6521_v62  ;;  %v5508_v50 = vpop.f32.mrb[27].mxu0  ;;  %v1211_v62 = vpack.c.bf16 %v1202_v1, %v1201_v0 }
 0xbc2   : > { %v1176_v51 = vsel %vm366_vm7, %v6552_v49, 0.0  ;;  %5512 = vmatpush3.bf16.msra.mxu1 %v1211_v62 }
 0xbc3   : > { %1177 = vadd.xlane.f32.xlu0 %v1176_v51  ;;  %5517 = vmatprep.subr.bf16.mxu1 %v6209_v2 }
 0xc50   : > { %v1178_v52 = vpop.xlane.xlu0 %1177 }
 0xc51   : > { %v1179_v53 = vmul.f32 0.03125, %v1178_v52 }
 0xc53   : > { %v1180_v54 = vsub.f32 %v6552_v49, %v1179_v53 }
 0xc55   : > { %v1181_v55 = vmul.f32 %v1180_v54, %v1180_v54 }
 0xc57   : > { %v1182_v56 = vsel %vm366_vm7, %v1181_v55, 0.0 }
 0xc58   : > { %1183 = vadd.xlane.f32.xlu1 %v1182_v56 }
 0xce5   : > { %v1184_v3 = vpop.xlane.xlu1 %1183 }
 0xce6   : > { %v1185_v4 = vmul.f32 0.03125, %v1184_v3 }
 0xce8   : > { %v1186_v5 = vadd.f32 1e-05, %v1185_v4 }
 0xcea   : > { %6005 = vrsqrt.f32 %v1186_v5 }
 0xcf4   : > { %v6006_v6 = vpop.eup %6005 }
 0xcf5   : > { %v1188_v8 = vmul.f32 %v6006_v6, %v1180_v54 }
 0xcf7   : > { %v1193_v9 = vmul.f32 %v5130_v7, %v1188_v8 }
 0xcf9   : > { %v1198_v63 = vadd.f32 %v5131_v61, %v1193_v9 }
 0xcfb   : > { %v1209_v59 = vpack.c.bf16 %v1198_v63, %v1198_v63 }
 0xcfd   : > { %5514 = vmatmul.mubr.msk.bf16.vlgmr.msra.gmra.mrb[24].mxu1 %vm366_vm7, %v1209_v59 }
 0xcfe   : > { %5519 = vmatprep.mubr.msk.bf16.mxu1 %vm6210_vm3, %v6209_v2 }
 0xdd0   : > { %v1253_v11 = vpop.f32.mrb[24].mxu1 }
 0xdd1   : > { %v1254_v12 = vadd.f32 %v5132_v25, %v1253_v11  ;;  %v5515_v13 = vpop.f32.mrb[25].mxu1 }
 0xdd2   : > { %v1256_v14 = vpop.f32.mrb[26].mxu1 }
 0xdd3   : > { %1263 = vrot.lane.b32.xlu1 %v1254_v12, %s6212_s19  ;;  %1260 = vrot.lane.b32.xlu0 %v1254_v12, %s6211_s15  ;;  %v5516_v15 = vpop.f32.mrb[27].mxu1  ;;  %v6574_v16 = vpack.c.bf16 %v1254_v12, %v1254_v12 }
 0xdd7   : > { %1266 = vrot.lane.b32.xlu1 %v1254_v12, %s6213_s18  ;;  %1274 = vrot.lane.b32.xlu0 %v6574_v16, %s6214_s20 }
 0xe45   : > { %v1264_v18 = vpop.permute.xlu1 %1263  ;;  %v1261_v20 = vpop.permute.xlu0 %1260 }
 0xe46   : > { %v6579_v21 = vpack.c.bf16 %v1264_v18, %v1264_v18  ;;  %v6581_v22 = vpack.c.bf16 %v1261_v20, %v1261_v20 }
 0xe48   : > { %1323 = vrot.lane.b32.xlu1 %v6581_v22, %s6214_s20  ;;  %1372 = vrot.lane.b32.xlu0 %v6579_v21, %s6214_s20 }
 0xe49   : > { %v1267_v23 = vpop.permute.xlu1 %1266  ;;  %v1275_v24 = vpop.permute.xlu0 %1274 }
 0xe4a   : > { %v6587_v26 = vpack.c.bf16 %v1267_v23, %v1267_v23  ;;  %v1280_v27 = vsel %vm513_vm8, %v1275_v24, 0 }
 0xe4b   : > { %5518 = vmatpush3.bf16.xpose.msra.mxu1 %v1280_v27 }
 0xe4c   : > { %1421 = vrot.lane.b32.xlu1 %v6587_v26, %s6214_s20  ;;  %5529 = vmatprep.subr.bf16.mxu1 %v6209_v2 }
 0xe52   : > { %5520 = vmatmul.mubr.msk.bf16.vlgmr.msra.gmra.mrb[28].mxu1 %vm513_vm8, %v6574_v16 }
 0xe53   : > { %5531 = vmatprep.mubr.msk.bf16.mxu1 %vm6210_vm3, %v6209_v2 }
 0xeba   : > { %v1324_v28 = vpop.permute.xlu1 %1323  ;;  %v1373_v29 = vpop.permute.xlu0 %1372 }
 0xebb   : > { %v1329_v30 = vsel %vm513_vm8, %v1324_v28, 0  ;;  %v1378_v31 = vsel %vm513_vm8, %v1373_v29, 0 }
 0xebc   : > { %5524 = vmatpush3.bf16.xpose.msra.mxu0 %v1329_v30  ;;  %5530 = vmatpush3.bf16.xpose.msra.mxu1 %v1378_v31 }
 0xebd   : > { %5535 = vmatprep.subr.bf16.mxu0 %v6209_v2  ;;  %5541 = vmatprep.subr.bf16.mxu1 %v6209_v2 }
 0xebe   : > { %v1422_v32 = vpop.permute.xlu1 %1421 }
 0xebf   : > { %v1427_v33 = vsel %vm513_vm8, %v1422_v32, 0 }
 0xec3   : > { %5526 = vmatmul.mubr.msk.bf16.vlgmr.msra.gmra.mrb[28].mxu0 %vm513_vm8, %v6581_v22  ;;  %5532 = vmatmul.mubr.msk.bf16.vlgmr.msra.gmra.mrb[32].mxu1 %vm513_vm8, %v6579_v21 }
 0xec4   : > { %5536 = vmatpush3.bf16.xpose.msra.mxu0 %v1427_v33  ;;  %5537 = vmatprep.mubr.msk.bf16.mxu0 %vm6210_vm3, %v6209_v2 }
 0xec5   : > { %5543 = vmatprep.mubr.msk.bf16.mxu1 %vm6210_vm3, %v6209_v2  ;;  %5547 = vmatprep.subr.bf16.mxu0 %v6209_v2 }
 0xecb   : > { %5538 = vmatmul.mubr.msk.bf16.vlgmr.msra.gmra.mrb[32].mxu0 %vm513_vm8, %v6587_v26 }
 0xecc   : > { %5549 = vmatprep.mubr.msk.bf16.mxu0 %vm6210_vm3, %v6209_v2 }
 0xf25   : > { %v1316_v34 = vpop.f32.mrb[28].mxu1 }
 0xf26   : > { %v1469_v35 = vmul.f32 0.35355338, %v1316_v34  ;;  %v5521_v36 = vpop.f32.mrb[29].mxu1 }
 0xf27   : > { %v1319_v37 = vpop.f32.mrb[30].mxu1 }
 0xf28   : > { %v5522_v38 = vpop.f32.mrb[31].mxu1  ;;  %v1473_v39 = vsel %vm716_vm9, %v1469_v35, -1e+09 }
 0xf29   : > { %v1477_v40 = vsel %vm513_vm8, %v1473_v39, -inf }
 0xf2a   : > { %1478 = vmax.xlane.f32.xlu0 %v1477_v40 }
 0xf96   : > { %v1365_v41 = vpop.f32.mrb[28].mxu0  ;;  %v1414_v42 = vpop.f32.mrb[32].mxu1 }
 0xf97   : > { %v1470_v43 = vmul.f32 0.35355338, %v1365_v41  ;;  %v1471_v44 = vmul.f32 0.35355338, %v1414_v42  ;;  %v5527_v45 = vpop.f32.mrb[29].mxu0  ;;  %v5533_v46 = vpop.f32.mrb[33].mxu1 }
 0xf98   : > { %v1368_v47 = vpop.f32.mrb[30].mxu0  ;;  %v1417_v48 = vpop.f32.mrb[34].mxu1 }
 0xf99   : > { %v5528_v50 = vpop.f32.mrb[31].mxu0  ;;  %v5534_v51 = vpop.f32.mrb[35].mxu1  ;;  %v1475_v52 = vsel %vm716_vm9, %v1471_v44, -1e+09  ;;  %v1474_v53 = vsel %vm716_vm9, %v1470_v43, -1e+09 }
 0xf9a   : > { %v1483_v54 = vsel %vm513_vm8, %v1475_v52, -inf  ;;  %v1480_v55 = vsel %vm513_vm8, %v1474_v53, -inf }
 0xf9b   : > { %1484 = vmax.xlane.f32.xlu0 %v1483_v54  ;;  %1481 = vmax.xlane.f32.xlu1 %v1480_v55  ;;  %v1206_v55 = vld [vmem:[#allocation2 + $0xd0] sm:$0xff] }
 0xf9e   : > { %v1463_v56 = vpop.f32.mrb[32].mxu0 }
 0xf9f   : > { %v1472_v57 = vmul.f32 0.35355338, %v1463_v56  ;;  %v5539_v58 = vpop.f32.mrb[33].mxu0  ;;  %v1207_v56 = vld [vmem:[#allocation2 + $0xd8] sm:$0xff] }
 0xfa0   : > { %v1466_v60 = vpop.f32.mrb[34].mxu0 }
 0xfa1   : > { %v5540_v0 = vpop.f32.mrb[35].mxu0  ;;  %v1476_v1 = vsel %vm716_vm9, %v1472_v57, -1e+09  ;;  %v1734_v57 = vpack.c.bf16 %v1207_v56, %v1206_v55 }
 0xfa2   : > { %v1486_v62 = vsel %vm513_vm8, %v1476_v1, -inf }
 0xfa3   : > { %1487 = vmax.xlane.f32.xlu0 %v1486_v62 }
 0xfac   : > { %1525 = vrot.lane.b32.xlu1 %v6574_v16, %s7385_s21 }
 0xfb7   : > { %v1479_v3 = vpop.xlane.xlu0 %1478 }
 0xfb8   : > { %v1489_v4 = vsub.f32 %v1473_v39, %v1479_v3 }
 0xfba   : > { %v1493_v5 = vmul.f32 1.442695, %v1489_v4 }
 0xfbc   : > { %6007 = vpow2.f32 %v1493_v5 }
 0xfc6   : > { %v6008_v6 = vpop.eup %6007 }
 0xfc7   : > { %v1501_v7 = vsel %vm513_vm8, %v6008_v6, 0.0 }
 0xfd0   : > { %1502 = vadd.xlane.f32.xlu1 %v1501_v7 }
0x1028   : > { %v1485_v8 = vpop.xlane.xlu0 %1484  ;;  %v1482_v61 = vpop.xlane.xlu1 %1481 }
0x1029   : > { %v1491_v9 = vsub.f32 %v1475_v52, %v1485_v8  ;;  %v1490_v63 = vsub.f32 %v1474_v53, %v1482_v61  ;;  %v1204_v52 = vld [vmem:[#allocation2 + $0xc0] sm:$0xff]  ;;  %v1205_v53 = vld [vmem:[#allocation2 + $0xc8] sm:$0xff] }
0x102a   : > { %v1733_v54 = vpack.c.bf16 %v1205_v53, %v1204_v52  ;;  %v1960_v52 = vld [vmem:[%s7371_s4 + $0x38] sm:$0xff] }
0x102b   : > { %v1497_v59 = vmul.f32 1.442695, %v1491_v9  ;;  %v1495_v25 = vmul.f32 1.442695, %v1490_v63 }
0x102c   : > { %v1526_v11 = vpop.permute.xlu1 %1525 }
0x102d   : > { %6009 = vpow2.f32 %v1497_v59  ;;  %v1531_v12 = vsel %vm774_vm10, %v1526_v11, 0 }
0x102e   : > { %6011 = vpow2.f32 %v1495_v25  ;;  %5542 = vmatpush3.bf16.msra.mxu1 %v1531_v12 }
0x102f   : > { %5553 = vmatprep.subr.bf16.mxu1 %v6209_v2 }
0x1030   : > { %v1488_v13 = vpop.xlane.xlu0 %1487 }
0x1031   : > { %v1492_v14 = vsub.f32 %v1476_v1, %v1488_v13 }
0x1033   : > { %v1499_v15 = vmul.f32 1.442695, %v1492_v14  ;;  %v5142_v14 = vld [vmem:[%s7373_s6 + $0x9] ss:$0 sm:$0xff] }
0x1035   : > { %6013 = vpow2.f32 %v1499_v15 }
0x1037   : > { %v6010_v16 = vpop.eup %6009 }
0x1038   : > { %v6012_v18 = vpop.eup %6011  ;;  %v1507_v20 = vsel %vm513_vm8, %v6010_v16, 0.0 }
0x1039   : > { %1508 = vadd.xlane.f32.xlu1 %v1507_v20  ;;  %v1504_v23 = vsel %vm513_vm8, %v6012_v18, 0.0 }
0x103a   : > { %1505 = vadd.xlane.f32.xlu0 %v1504_v23 }
0x103f   : > { %v6014_v24 = vpop.eup %6013 }
0x1040   : > { %v1510_v27 = vsel %vm513_vm8, %v6014_v24, 0.0 }
0x1041   : > { %1511 = vadd.xlane.f32.xlu0 %v1510_v27 }
0x104a   : > { %1621 = vrot.lane.b32.xlu1 %v6579_v21, %s7385_s21 }
0x104e   : > { %1669 = vrot.lane.b32.xlu1 %v6587_v26, %s7385_s21 }
0x1057   : > { %1573 = vrot.lane.b32.xlu0 %v6581_v22, %s7385_s21 }
0x105d   : > { %v1503_v28 = vpop.xlane.xlu1 %1502 }
0x105e   : > { %6015 = vrcp.f32 %v1503_v28 }
0x1068   : > { %v6016_v29 = vpop.eup %6015 }
0x1069   : > { %v1517_v30 = vmul.f32 %v6016_v29, %v6008_v6 }
0x106b   : > { %v1521_v31 = vpack.c.bf16 %v1517_v30, %v1517_v30 }
0x106d   : > { %5544 = vmatmul.mubr.msk.bf16.vlgmr.msra.gmra.mrb[36].mxu1 %vm513_vm8, %v1521_v31 }
0x106e   : > { %5555 = vmatprep.mubr.msk.bf16.mxu1 %vm6210_vm3, %v6209_v2 }
0x10c6   : > { %v1509_v32 = vpop.xlane.xlu1 %1508 }
0x10c7   : > { %6017 = vrcp.f32 %v1509_v32  ;;  %v1506_v33 = vpop.xlane.xlu0 %1505 }
0x10c8   : > { %6019 = vrcp.f32 %v1506_v33  ;;  %v1808_v33 = vld [vmem:[#allocation2 + $0xe0] sm:$0xff] }
0x10ca   : > { %v1622_v21 = vpop.permute.xlu1 %1621 }
0x10cb   : > { %v1627_v26 = vsel %vm774_vm10, %v1622_v21, 0  ;;  %v1809_v21 = vld [vmem:[#allocation2 + $0xe8] sm:$0xff] }
0x10cc   : > { %5554 = vmatpush3.bf16.msra.mxu1 %v1627_v26  ;;  %v1823_v26 = vpack.c.bf16 %v1809_v21, %v1808_v33  ;;  %v2036_v33 = vld [vmem:[#allocation2 + $0x150] sm:$0xff]  ;;  %v2037_v21 = vld [vmem:[#allocation2 + $0x158] sm:$0xff] }
0x10cd   : > { %5565 = vmatprep.subr.bf16.mxu1 %v6209_v2 }
0x10ce   : > { %v1512_v22 = vpop.xlane.xlu0 %1511  ;;  %v1670_v40 = vpop.permute.xlu1 %1669 }
0x10cf   : > { %6021 = vrcp.f32 %v1512_v22  ;;  %v1675_v43 = vsel %vm774_vm10, %v1670_v40, 0  ;;  %v1810_v22 = vld [vmem:[#allocation2 + $0xf0] sm:$0xff]  ;;  %v1816_v40 = vld [vmem:[#allocation2 + $0x118] sm:$0xff] }
0x10d1   : > { %v6018_v34 = vpop.eup %6017 }
0x10d2   : > { %v6020_v35 = vpop.eup %6019  ;;  %v1574_v36 = vpop.permute.xlu0 %1573  ;;  %v1519_v37 = vmul.f32 %v6018_v34, %v6010_v16  ;;  %v1811_v34 = vld [vmem:[#allocation2 + $0xf8] sm:$0xff] }
0x10d3   : > { %v1579_v38 = vsel %vm774_vm10, %v1574_v36, 0  ;;  %v1518_v39 = vmul.f32 %v6020_v35, %v6012_v18  ;;  %v1824_v35 = vpack.c.bf16 %v1811_v34, %v1810_v22  ;;  %v1813_v36 = vld [vmem:[#allocation2 + $0x100] sm:$0xff] }
0x10d4   : > { %5548 = vmatpush3.bf16.msra.mxu0 %v1579_v38  ;;  %v1523_v41 = vpack.c.bf16 %v1519_v37, %v1519_v37  ;;  %v1814_v37 = vld [vmem:[#allocation2 + $0x108] sm:$0xff]  ;;  %v1815_v38 = vld [vmem:[#allocation2 + $0x110] sm:$0xff] }
0x10d5   : > { %v1522_v42 = vpack.c.bf16 %v1518_v39, %v1518_v39  ;;  %5559 = vmatprep.subr.bf16.mxu0 %v6209_v2  ;;  %v1874_v39 = vpack.c.bf16 %v1814_v37, %v1813_v36 }
0x10d6   : > { %5556 = vmatmul.mubr.msk.bf16.vlgmr.msra.gmra.mrb[40].mxu1 %vm513_vm8, %v1523_v41  ;;  %v1875_v41 = vpack.c.bf16 %v1816_v40, %v1815_v38 }
0x10d7   : > { %5550 = vmatmul.mubr.msk.bf16.vlgmr.msra.gmra.mrb[36].mxu0 %vm513_vm8, %v1522_v42  ;;  %5569 = vmatprep.mubr.msk.bf16.mxu1 %vm6210_vm3, %v6209_v2 }
0x10d8   : > { %5560 = vmatpush3.bf16.msra.mxu0 %v1675_v43  ;;  %5561 = vmatprep.mubr.msk.bf16.mxu0 %vm6210_vm3, %v6209_v2 }
0x10d9   : > { %v6022_v44 = vpop.eup %6021  ;;  %5573 = vmatprep.subr.bf16.mxu0 %v6209_v2  ;;  %5566 = vmatpush3.bf16.msra.mxu1 %v1733_v54 }
0x10da   : > { %v1520_v45 = vmul.f32 %v6022_v44, %v6014_v24  ;;  %5567 = vmatprep.subr.bf16.mxu1 %v6209_v2 }
0x10dc   : > { %v1524_v46 = vpack.c.bf16 %v1520_v45, %v1520_v45 }
0x10dd   : > { %5568 = vmatpush3.bf16.msra.mxu1 %v1734_v57  ;;  %v1961_v57 = vld [vmem:[%s7371_s4 + $0x40] sm:$0xff] }
0x10de   : > { %5581 = vmatprep.subr.bf16.mxu1 %v6209_v2 }
0x10df   : > { %5562 = vmatmul.mubr.msk.bf16.vlgmr.msra.gmra.mrb[40].mxu0 %vm513_vm8, %v1524_v46  ;;  %v5144_v46 = vld [vmem:[%s7373_s6 + $0xc] ss:$0 sm:$0xff] }
0x10e0   : > { %5577 = vmatprep.mubr.msk.bf16.mxu0 %vm6210_vm3, %v6209_v2  ;;  %5574 = vmatpush3.bf16.msra.mxu0 %v1823_v26  ;;  %v2046_v26 = vpack.c.bf16 %v2037_v21, %v2036_v33 }
0x10e1   : > { %5575 = vmatprep.subr.bf16.mxu0 %v6209_v2 }
0x10e4   : > { %5576 = vmatpush3.bf16.msra.mxu0 %v1824_v35 }
0x10e5   : > { %5593 = vmatprep.subr.bf16.mxu0 %v6209_v2 }
0x1140   : > { %v1567_v47 = vpop.f32.mrb[36].mxu1 }
0x1141   : > { %v5545_v48 = vpop.f32.mrb[37].mxu1 }
0x1142   : > { %v1570_v50 = vpop.f32.mrb[38].mxu1  ;;  %v5145_v48 = vld [vmem:[%s7373_s6 + $0xd] ss:$0 sm:$0xff] }
0x1143   : > { %v5546_v51 = vpop.f32.mrb[39].mxu1 }
0x1144   : > { %v1959_v51 = vld [vmem:[%s7371_s4 + $0x30] sm:$0xff] }
0x1145   : > { %v1963_v55 = vpack.c.bf16 %v1960_v52, %v1959_v51 }
0x11a9   : > { %v1663_v58 = vpop.f32.mrb[40].mxu1 }
0x11aa   : > { %1722 = vrot.lane.b32.xlu1 %v1663_v58, %s7381_s29  ;;  %v1615_v60 = vpop.f32.mrb[36].mxu0  ;;  %v5557_v0 = vpop.f32.mrb[41].mxu1  ;;  %v1962_v58 = vld [vmem:[%s7371_s4 + $0x48] sm:$0xff]  ;;  %s7399_s29 = smov 8  }
0x11ab   : > { %v1666_v1 = vpop.f32.mrb[42].mxu1  ;;  %1718 = vrot.lane.b32.xlu0 %v1615_v60, %s7383_s23  ;;  %v5551_v62 = vpop.f32.mrb[37].mxu0  ;;  %v1964_v60 = vpack.c.bf16 %v1962_v58, %v1961_v57  ;;  %s7398_s23 = smov 64  }
0x11ac   : > { %v1618_v3 = vpop.f32.mrb[38].mxu0  ;;  %v5558_v4 = vpop.f32.mrb[43].mxu1  ;;  %v1818_v62 = vld [vmem:[#allocation2 + $0x128] sm:$0xff] }
0x11ad   : > { %v5552_v5 = vpop.f32.mrb[39].mxu0  ;;  %v1819_v4 = vld [vmem:[#allocation2 + $0x130] sm:$0xff] }
0x11ae   : > { %v1820_v5 = vld [vmem:[#allocation2 + $0x138] sm:$0xff] }
0x11b2   : > { %v1711_v6 = vpop.f32.mrb[40].mxu0 }
0x11b3   : > { %1726 = vrot.lane.b32.xlu0 %v1711_v6, %s7396_s22  ;;  %v5563_v7 = vpop.f32.mrb[41].mxu0  ;;  %v1877_v6 = vpack.c.bf16 %v1820_v5, %v1819_v4 }
0x11b4   : > { %v1714_v8 = vpop.f32.mrb[42].mxu0  ;;  %v5146_v7 = vld [vmem:[%s7373_s6 + $0xe] ss:$0 sm:$0xff] }
0x11b5   : > { %v5564_v61 = vpop.f32.mrb[43].mxu0 }
0x121c   : > { %v1723_v59 = vpop.permute.xlu1 %1722 }
0x121d   : > { %v1719_v9 = vpop.permute.xlu0 %1718 }
0x121e   : > { %v1729_v63 = vsel %vm513_vm8, %v1567_v47, %v1719_v9 }
0x121f   : > { %v1730_v25 = vsel %vm975_vm11, %v1729_v63, %v1723_v59 }
0x1225   : > { %v1727_v11 = vpop.permute.xlu0 %1726 }
0x1226   : > { %v1731_v12 = vsel %vm977_vm12, %v1730_v25, %v1727_v11 }
0x1227   : > { %v1732_v13 = vpack.c.bf16 %v1731_v12, %v1731_v12  ;;  %v1965_v12 = vld [vmem:[%s7371_s4 + $0x50] sm:$0xff] }
0x1229   : > { %5570 = vmatmul.mubr.msk.bf16.vlgmr.msra.gmra.mrb[44].mxu1 %vm366_vm7, %v1732_v13 }
0x122a   : > { %5589 = vmatprep.mubr.msk.bf16.mxu1 %vm6210_vm3, %v6209_v2  ;;  %5582 = vmatpush3.bf16.msra.mxu1 %v1874_v39 }
0x122b   : > { %5583 = vmatprep.subr.bf16.mxu1 %v6209_v2 }
0x122e   : > { %5584 = vmatpush3.bf16.msra.mxu1 %v1875_v41  ;;  %v6741_v41 = vld [vmem:[%s7373_s6 + $0x17] ss:$0 sm:$0xff] }
0x122f   : > { %5585 = vmatprep.subr.bf16.mxu1 %v6209_v2 }
0x12fc   : > { %v1776_v15 = vpop.f32.mrb[44].mxu1 }
0x12fd   : > { %v1777_v16 = vadd.f32 %v5142_v14, %v1776_v15  ;;  %v5571_v18 = vpop.f32.mrb[45].mxu1 }
0x12fe   : > { %v1779_v20 = vpop.f32.mrb[46].mxu1 }
0x12ff   : > { %v6674_v23 = vadd.f32 %v1777_v16, %v6552_v49  ;;  %v5572_v24 = vpop.f32.mrb[47].mxu1  ;;  %v1951_v49 = vld [vmem:[%s333_s8] sm:$0xff] }
0x1301   : > { %v1785_v27 = vsel %vm366_vm7, %v6674_v23, 0.0 }
0x1302   : > { %1786 = vadd.xlane.f32.xlu1 %v1785_v27 }
0x138f   : > { %v1787_v28 = vpop.xlane.xlu1 %1786 }
0x1390   : > { %v1788_v29 = vmul.f32 0.03125, %v1787_v28 }
0x1392   : > { %v1789_v30 = vsub.f32 %v6674_v23, %v1788_v29 }
0x1394   : > { %v1790_v31 = vmul.f32 %v1789_v30, %v1789_v30 }
0x1396   : > { %v1791_v32 = vsel %vm366_vm7, %v1790_v31, 0.0  ;;  %v2034_v31 = vld [vmem:[#allocation2 + $0x140] sm:$0xff] }
0x1397   : > { %1792 = vadd.xlane.f32.xlu0 %v1791_v32  ;;  %v2035_v32 = vld [vmem:[#allocation2 + $0x148] sm:$0xff] }
0x13ad   : > { %1953 = vperm.xlu0 %5984, %v1951_v49   ;;  %v2045_v49 = vpack.c.bf16 %v2035_v32, %v2034_v31 }
0x1424   : > { %v1793_v42 = vpop.xlane.xlu0 %1792 }
0x1425   : > { %v1794_v43 = vmul.f32 0.03125, %v1793_v42 }
0x1427   : > { %v1795_v44 = vadd.f32 1e-05, %v1794_v43  ;;  %v6746_v43 = vld [vmem:[%s7373_s6 + $0x18] ss:$0 sm:$0xff] }
0x1429   : > { %6023 = vrsqrt.f32 %v1795_v44 }
0x142c   : > { %v1954_v54 = vpop.permute.xlu0 %1953 }
0x142d   : > { %vm1955_vm14 = vcmp.eq.s32.totalorder %v1954_v54, %v6369_v10  ;;  %v1817_v10 = vld [vmem:[#allocation2 + $0x120] sm:$0xff] }
0x142e   : > { %v5152_v0 = vsel %vm1955_vm14, 1.0, %v6209_v2  ;;  %v1876_v3 = vpack.c.bf16 %v1818_v62, %v1817_v10 }
0x142f   : > { %v1958_v1 = vpack.c.bf16 %v5152_v0, %v5152_v0 }
0x1430   : > { %5586 = vmatpush3.bf16.msra.mxu1 %v1876_v3 }
0x1431   : > { %5587 = vmatprep.subr.bf16.mxu1 %v6209_v2 }
0x1433   : > { %v6024_v45 = vpop.eup %6023 }
0x1434   : > { %v1797_v47 = vmul.f32 %v6024_v45, %v1789_v30  ;;  %5588 = vmatpush3.bf16.msra.mxu1 %v1877_v6 }
0x1435   : > { %5609 = vmatprep.subr.bf16.mxu1 %v6209_v2 }
0x1436   : > { %v1802_v50 = vmul.f32 %v5144_v46, %v1797_v47  ;;  %v5156_v47 = vld [vmem:[%s7373_s6 + $0x12] ss:$0 sm:$0xff] }
0x1438   : > { %v1807_v53 = vadd.f32 %v5145_v48, %v1802_v50 }
0x143a   : > { %v1822_v56 = vpack.c.bf16 %v1807_v53, %v1807_v53 }
0x143c   : > { %5578 = vmatmul.mubr.msk.bf16.vlgmr.msra.gmra.mrb[44].mxu0 %vm366_vm7, %v1822_v56 }
0x143d   : > { %5594 = vmatpush3.bf16.msra.mxu0 %v1963_v55  ;;  %5597 = vmatprep.mubr.msk.bf16.mxu0 %vm6210_vm3, %v6209_v2 }
0x143e   : > { %5595 = vmatprep.subr.bf16.mxu0 %v6209_v2 }
0x1441   : > { %5596 = vmatpush3.bf16.msra.mxu0 %v1964_v60 }
0x1442   : > { %5601 = vmatprep.subr.bf16.mxu0 %v6209_v2 }
0x1444   : > { %5598 = vmatmul.mubr.msk.bf16.vlgmr.msra.gmra.mrb[48].mxu0 %vm366_vm7, %v1958_v1 }
0x1445   : > { %5605 = vmatprep.mubr.msk.bf16.mxu0 %vm6210_vm3, %v6209_v2  ;;  %5602 = vmatpush3.bf16.msra.mxu0 %v2045_v49 }
0x1446   : > { %5603 = vmatprep.subr.bf16.mxu0 %v6209_v2 }
0x1449   : > { %5604 = vmatpush3.bf16.msra.mxu0 %v2046_v26 }
0x144a   : > { %5615 = vmatprep.subr.bf16.mxu0 %v6209_v2 }
0x150f   : > { %v1866_v8 = vpop.f32.mrb[44].mxu0 }
0x1510   : > { %v1867_v61 = vadd.f32 %v5146_v7, %v1866_v8  ;;  %v5579_v9 = vpop.f32.mrb[45].mxu0 }
0x1511   : > { %v1869_v63 = vpop.f32.mrb[46].mxu0 }
0x1512   : > { %v1872_v59 = vmax.f32 %v1867_v61, 0.0  ;;  %v5580_v25 = vpop.f32.mrb[47].mxu0 }
0x1514   : > { %v1873_v11 = vpack.c.bf16 %v1872_v59, %v1872_v59 }
0x1516   : > { %5590 = vmatmul.mubr.msk.bf16.vlgmr.msra.gmra.mrb[48].mxu1 %vm1129_vm13, %v1873_v11 }
0x1517   : > { %v2003_v13 = vpop.f32.mrb[48].mxu0  ;;  %5611 = vmatprep.mubr.msk.bf16.mxu1 %vm6210_vm3, %v6209_v2 }
0x1518   : > { %v6728_v14 = vadd.f32 %v2003_v13, %v1965_v12  ;;  %v5599_v15 = vpop.f32.mrb[49].mxu0 }
0x1519   : > { %v2006_v16 = vpop.f32.mrb[50].mxu0 }
0x151a   : > { %v5600_v18 = vpop.f32.mrb[51].mxu0  ;;  %v2011_v20 = vsel %vm366_vm7, %v6728_v14, 0.0 }
0x151b   : > { %2012 = vadd.xlane.f32.xlu1 %v2011_v20 }
0x15a8   : > { %v2013_v24 = vpop.xlane.xlu1 %2012 }
0x15a9   : > { %v2014_v27 = vmul.f32 0.03125, %v2013_v24 }
0x15ab   : > { %v2015_v28 = vsub.f32 %v6728_v14, %v2014_v27 }
0x15ad   : > { %v2016_v29 = vmul.f32 %v2015_v28, %v2015_v28 }
0x15af   : > { %v2017_v30 = vsel %vm366_vm7, %v2016_v29, 0.0 }
0x15b0   : > { %2018 = vadd.xlane.f32.xlu1 %v2017_v30 }
0x15e9   : > { %v6736_v22 = vpop.f32.mrb[48].mxu1 }
0x15ea   : > { %v5591_v34 = vpop.f32.mrb[49].mxu1 }
0x15eb   : > { %v1922_v35 = vpop.f32.mrb[50].mxu1 }
0x15ec   : > { %v5592_v36 = vpop.f32.mrb[51].mxu1 }
0x163d   : > { %v2019_v37 = vpop.xlane.xlu1 %2018 }
0x163e   : > { %v2020_v38 = vmul.f32 0.03125, %v2019_v37 }
0x1640   : > { %v2021_v39 = vadd.f32 1e-05, %v2020_v38 }
0x1642   : > { %6025 = vrsqrt.f32 %v2021_v39 }
0x164c   : > { %v6026_v40 = vpop.eup %6025 }
0x164d   : > { %v2023_v42 = vmul.f32 %v6026_v40, %v2015_v28 }
0x164f   : > { %v2028_v44 = vmul.f32 %v6741_v41, %v2023_v42 }
0x1651   : > { %v2033_v45 = vadd.f32 %v6746_v43, %v2028_v44 }
0x1653   : > { %v2044_v46 = vpack.c.bf16 %v2033_v45, %v2033_v45 }
0x1655   : > { %5606 = vmatmul.mubr.msk.bf16.vlgmr.msra.gmra.mrb[52].mxu0 %vm366_vm7, %v2044_v46 }
0x1656   : > { %5617 = vmatprep.mubr.msk.bf16.mxu0 %vm6210_vm3, %v6209_v2 }
0x1728   : > { %v2088_v48 = vpop.f32.mrb[52].mxu0 }
0x1729   : > { %v2089_v50 = vadd.f32 %v5156_v47, %v2088_v48  ;;  %v5607_v51 = vpop.f32.mrb[53].mxu0 }
0x172a   : > { %v2091_v52 = vpop.f32.mrb[54].mxu0 }
0x172b   : > { %2098 = vrot.lane.b32.xlu0 %v2089_v50, %s6212_s19  ;;  %2095 = vrot.lane.b32.xlu1 %v2089_v50, %s6211_s15  ;;  %v5608_v53 = vpop.f32.mrb[55].mxu0  ;;  %v6758_v54 = vpack.c.bf16 %v2089_v50, %v2089_v50 }
0x172f   : > { %2101 = vrot.lane.b32.xlu0 %v2089_v50, %s6213_s18  ;;  %2109 = vrot.lane.b32.xlu1 %v6758_v54, %s6214_s20 }
0x179d   : > { %v2099_v55 = vpop.permute.xlu0 %2098  ;;  %v2096_v56 = vpop.permute.xlu1 %2095 }
0x179e   : > { %v6763_v57 = vpack.c.bf16 %v2099_v55, %v2099_v55  ;;  %v2105_v58 = vpack.c.bf16 %v2096_v56, %v2096_v56 }
0x17a0   : > { %2158 = vrot.lane.b32.xlu0 %v2105_v58, %s6214_s20  ;;  %2207 = vrot.lane.b32.xlu1 %v6763_v57, %s6214_s20 }
0x17a1   : > { %v2102_v60 = vpop.permute.xlu0 %2101  ;;  %v2110_v0 = vpop.permute.xlu1 %2109 }
0x17a2   : > { %v6768_v1 = vpack.c.bf16 %v2102_v60, %v2102_v60  ;;  %v2115_v10 = vsel %vm513_vm8, %v2110_v0, 0 }
0x17a3   : > { %5610 = vmatpush3.bf16.xpose.msra.mxu1 %v2115_v10 }
0x17a4   : > { %2256 = vrot.lane.b32.xlu0 %v6768_v1, %s6214_s20  ;;  %5621 = vmatprep.subr.bf16.mxu1 %v6209_v2 }
0x17aa   : > { %5612 = vmatmul.mubr.msk.bf16.vlgmr.msra.gmra.mrb[52].mxu1 %vm513_vm8, %v6758_v54 }
0x17ab   : > { %5623 = vmatprep.mubr.msk.bf16.mxu1 %vm6210_vm3, %v6209_v2 }
0x1812   : > { %v2159_v62 = vpop.permute.xlu0 %2158  ;;  %v2208_v3 = vpop.permute.xlu1 %2207 }
0x1813   : > { %v2164_v4 = vsel %vm513_vm8, %v2159_v62, 0  ;;  %v2213_v5 = vsel %vm513_vm8, %v2208_v3, 0 }
0x1814   : > { %5616 = vmatpush3.bf16.xpose.msra.mxu0 %v2164_v4  ;;  %5622 = vmatpush3.bf16.xpose.msra.mxu1 %v2213_v5 }
0x1815   : > { %5627 = vmatprep.subr.bf16.mxu0 %v6209_v2  ;;  %5633 = vmatprep.subr.bf16.mxu1 %v6209_v2 }
0x1816   : > { %v2257_v6 = vpop.permute.xlu0 %2256 }
0x1817   : > { %v2262_v7 = vsel %vm513_vm8, %v2257_v6, 0 }
0x181b   : > { %5618 = vmatmul.mubr.msk.bf16.vlgmr.msra.gmra.mrb[56].mxu0 %vm513_vm8, %v2105_v58  ;;  %5624 = vmatmul.mubr.msk.bf16.vlgmr.msra.gmra.mrb[56].mxu1 %vm513_vm8, %v6763_v57 }
0x181c   : > { %5628 = vmatpush3.bf16.xpose.msra.mxu0 %v2262_v7  ;;  %5629 = vmatprep.mubr.msk.bf16.mxu0 %vm6210_vm3, %v6209_v2 }
0x181d   : > { %5639 = vmatprep.subr.bf16.mxu0 %v6209_v2  ;;  %5635 = vmatprep.mubr.msk.bf16.mxu1 %vm6210_vm3, %v6209_v2 }
0x1823   : > { %5630 = vmatmul.mubr.msk.bf16.vlgmr.msra.gmra.mrb[60].mxu0 %vm513_vm8, %v6768_v1 }
0x1824   : > { %5641 = vmatprep.mubr.msk.bf16.mxu0 %vm6210_vm3, %v6209_v2 }
0x187d   : > { %v2151_v8 = vpop.f32.mrb[52].mxu1 }
0x187e   : > { %v2304_v61 = vmul.f32 0.35355338, %v2151_v8  ;;  %v5613_v9 = vpop.f32.mrb[53].mxu1 }
0x187f   : > { %v2154_v63 = vpop.f32.mrb[54].mxu1 }
0x1880   : > { %v5614_v59 = vpop.f32.mrb[55].mxu1  ;;  %v2310_v25 = vsel %vm6385_vm5, %v2304_v61, -1e+09 }
0x1881   : > { %v2314_v11 = vsel %vm513_vm8, %v2310_v25, -inf }
0x1882   : > { %2315 = vmax.xlane.f32.xlu1 %v2314_v11 }
0x18ee   : > { %v2200_v12 = vpop.f32.mrb[56].mxu0  ;;  %v2249_v13 = vpop.f32.mrb[56].mxu1 }
0x18ef   : > { %v2305_v15 = vmul.f32 0.35355338, %v2200_v12  ;;  %v2306_v16 = vmul.f32 0.35355338, %v2249_v13  ;;  %v5619_v18 = vpop.f32.mrb[57].mxu0  ;;  %v5625_v20 = vpop.f32.mrb[57].mxu1 }
0x18f0   : > { %v2203_v24 = vpop.f32.mrb[58].mxu0  ;;  %v2252_v27 = vpop.f32.mrb[58].mxu1 }
0x18f1   : > { %v5620_v28 = vpop.f32.mrb[59].mxu0  ;;  %v5626_v29 = vpop.f32.mrb[59].mxu1  ;;  %v2311_v30 = vsel %vm6385_vm5, %v2305_v15, -1e+09  ;;  %v2312_v32 = vsel %vm6385_vm5, %v2306_v16, -1e+09 }
0x18f2   : > { %v2317_v31 = vsel %vm513_vm8, %v2311_v30, -inf  ;;  %v2320_v33 = vsel %vm513_vm8, %v2312_v32, -inf }
0x18f3   : > { %2318 = vmax.xlane.f32.xlu0 %v2317_v31 }
0x18f6   : > { %v2298_v49 = vpop.f32.mrb[60].mxu0 }
0x18f7   : > { %v2307_v21 = vmul.f32 0.35355338, %v2298_v49  ;;  %2321 = vmax.xlane.f32.xlu0 %v2320_v33  ;;  %v5631_v26 = vpop.f32.mrb[61].mxu0  ;;  %v2039_v49 = vld [vmem:[#allocation2 + $0x160] sm:$0xff]  ;;  %v2040_v33 = vld [vmem:[#allocation2 + $0x168] sm:$0xff] }
0x18f8   : > { %v2301_v34 = vpop.f32.mrb[62].mxu0  ;;  %v2041_v26 = vld [vmem:[#allocation2 + $0x170] sm:$0xff] }
0x18f9   : > { %v5632_v35 = vpop.f32.mrb[63].mxu0  ;;  %v2313_v36 = vsel %vm6385_vm5, %v2307_v21, -1e+09  ;;  %v2570_v21 = vpack.c.bf16 %v2040_v33, %v2039_v49  ;;  %v2042_v34 = vld [vmem:[#allocation2 + $0x178] sm:$0xff] }
0x18fa   : > { %v2323_v37 = vsel %vm513_vm8, %v2313_v36, -inf  ;;  %v2571_v35 = vpack.c.bf16 %v2042_v34, %v2041_v26  ;;  %v2645_v34 = vld [vmem:[#allocation2 + $0x180] sm:$0xff] }
0x18fb   : > { %2324 = vmax.xlane.f32.xlu1 %v2323_v37 }
0x190c   : > { %2410 = vrot.lane.b32.xlu1 %v2105_v58, %s7398_s23 }
0x190d   : > { %2362 = vrot.lane.b32.xlu0 %v6758_v54, %s7398_s23 }
0x190f   : > { %v2316_v38 = vpop.xlane.xlu1 %2315 }
0x1910   : > { %v2326_v39 = vsub.f32 %v2310_v25, %v2316_v38 }
0x1912   : > { %v2330_v40 = vmul.f32 1.442695, %v2326_v39 }
0x1914   : > { %6027 = vpow2.f32 %v2330_v40 }
0x191e   : > { %v6028_v42 = vpop.eup %6027 }
0x191f   : > { %v2338_v44 = vsel %vm513_vm8, %v6028_v42, 0.0 }
0x192c   : > { %2339 = vadd.xlane.f32.xlu0 %v2338_v44 }
0x1980   : > { %v2319_v45 = vpop.xlane.xlu0 %2318 }
0x1981   : > { %v2327_v46 = vsub.f32 %v2311_v30, %v2319_v45 }
0x1983   : > { %v2332_v47 = vmul.f32 1.442695, %v2327_v46 }
0x1984   : > { %v2322_v48 = vpop.xlane.xlu0 %2321 }
0x1985   : > { %6029 = vpow2.f32 %v2332_v47  ;;  %v2328_v50 = vsub.f32 %v2312_v32, %v2322_v48 }
0x1987   : > { %v2334_v51 = vmul.f32 1.442695, %v2328_v50 }
0x1988   : > { %v2363_v52 = vpop.permute.xlu0 %2362  ;;  %v2325_v53 = vpop.xlane.xlu1 %2324 }
0x1989   : > { %6031 = vpow2.f32 %v2334_v51  ;;  %v2368_v54 = vsel %vm774_vm10, %v2363_v52, 0  ;;  %v2329_v55 = vsub.f32 %v2313_v36, %v2325_v53  ;;  %v5148_v51 = vld [vmem:[%s7373_s6 + $0xf] ss:$0 sm:$0xff] }
0x198a   : > { %5634 = vmatpush3.bf16.msra.mxu1 %v2368_v54  ;;  %v1920_v52 = vadd.f32 %v5148_v51, %v6736_v22 }
0x198b   : > { %v2336_v56 = vmul.f32 1.442695, %v2329_v55  ;;  %5645 = vmatprep.subr.bf16.mxu1 %v6209_v2 }
0x198c   : > { %v2411_v58 = vpop.permute.xlu1 %2410  ;;  %v1925_v53 = vadd.f32 %v1920_v52, %v6674_v23 }
0x198d   : > { %6033 = vpow2.f32 %v2336_v56  ;;  %v2416_v60 = vsel %vm774_vm10, %v2411_v58, 0 }
0x198e   : > { %5640 = vmatpush3.bf16.msra.mxu0 %v2416_v60  ;;  %v1928_v54 = vsel %vm366_vm7, %v1925_v53, 0.0 }
0x198f   : > { %v6030_v0 = vpop.eup %6029  ;;  %5651 = vmatprep.subr.bf16.mxu0 %v6209_v2 }
0x1990   : > { %v2341_v10 = vsel %vm513_vm8, %v6030_v0, 0.0 }
0x1991   : > { %2342 = vadd.xlane.f32.xlu1 %v2341_v10 }
0x1993   : > { %v6032_v62 = vpop.eup %6031 }
0x1994   : > { %v2344_v3 = vsel %vm513_vm8, %v6032_v62, 0.0 }
0x1995   : > { %2345 = vadd.xlane.f32.xlu0 %v2344_v3 }
0x1997   : > { %v6034_v4 = vpop.eup %6033 }
0x1998   : > { %v2347_v5 = vsel %vm513_vm8, %v6034_v4, 0.0 }
0x1999   : > { %2348 = vadd.xlane.f32.xlu1 %v2347_v5 }
0x19aa   : > { %2458 = vrot.lane.b32.xlu1 %v6763_v57, %s7398_s23 }
0x19ab   : > { %2506 = vrot.lane.b32.xlu0 %v6768_v1, %s7398_s23 }
0x19b9   : > { %v2340_v6 = vpop.xlane.xlu0 %2339 }
0x19ba   : > { %6035 = vrcp.f32 %v2340_v6  ;;  %v2650_v6 = vld [vmem:[#allocation2 + $0x1a0] sm:$0xff] }
0x19c4   : > { %v6036_v7 = vpop.eup %6035 }
0x19c5   : > { %v2354_v8 = vmul.f32 %v6036_v7, %v6028_v42  ;;  %v2651_v7 = vld [vmem:[#allocation2 + $0x1a8] sm:$0xff] }
0x19c7   : > { %v2358_v61 = vpack.c.bf16 %v2354_v8, %v2354_v8  ;;  %v2711_v8 = vpack.c.bf16 %v2651_v7, %v2650_v6 }
0x19c9   : > { %5636 = vmatmul.mubr.msk.bf16.vlgmr.msra.gmra.mrb[60].mxu1 %vm513_vm8, %v2358_v61  ;;  %v2652_v61 = vld [vmem:[#allocation2 + $0x1b0] sm:$0xff] }
0x19ca   : > { %5647 = vmatprep.mubr.msk.bf16.mxu1 %vm6210_vm3, %v6209_v2 }
0x1a1e   : > { %v2343_v9 = vpop.xlane.xlu1 %2342 }
0x1a1f   : > { %6037 = vrcp.f32 %v2343_v9  ;;  %v2653_v9 = vld [vmem:[#allocation2 + $0x1b8] sm:$0xff] }
0x1a22   : > { %v2346_v63 = vpop.xlane.xlu0 %2345 }
0x1a23   : > { %6039 = vrcp.f32 %v2346_v63  ;;  %v2712_v63 = vpack.c.bf16 %v2653_v9, %v2652_v61 }
0x1a26   : > { %v2349_v59 = vpop.xlane.xlu1 %2348  ;;  %v2507_v1 = vpop.permute.xlu0 %2506 }
0x1a27   : > { %6041 = vrcp.f32 %v2349_v59  ;;  %v2512_v18 = vsel %vm774_vm10, %v2507_v1, 0 }
0x1a29   : > { %v6038_v57 = vpop.eup %6037 }
0x1a2a   : > { %v2355_v25 = vmul.f32 %v6038_v57, %v6030_v0  ;;  %v2459_v11 = vpop.permute.xlu1 %2458 }
0x1a2b   : > { %v2464_v12 = vsel %vm774_vm10, %v2459_v11, 0  ;;  %v5166_v11 = vld [vmem:[%s7373_s6 + $0x13] ss:$0 sm:$0xff] }
0x1a2c   : > { %5646 = vmatpush3.bf16.msra.mxu1 %v2464_v12  ;;  %v2359_v13 = vpack.c.bf16 %v2355_v25, %v2355_v25 }
0x1a2d   : > { %v6040_v15 = vpop.eup %6039  ;;  %5657 = vmatprep.subr.bf16.mxu1 %v6209_v2 }
0x1a2e   : > { %v2356_v16 = vmul.f32 %v6040_v15, %v6032_v62  ;;  %5642 = vmatmul.mubr.msk.bf16.vlgmr.msra.gmra.mrb[64].mxu0 %vm513_vm8, %v2359_v13 }
0x1a2f   : > { %5652 = vmatpush3.bf16.msra.mxu0 %v2512_v18  ;;  %5653 = vmatprep.mubr.msk.bf16.mxu0 %vm6210_vm3, %v6209_v2 }
0x1a30   : > { %v2360_v20 = vpack.c.bf16 %v2356_v16, %v2356_v16  ;;  %5665 = vmatprep.subr.bf16.mxu0 %v6209_v2 }
0x1a31   : > { %v6042_v24 = vpop.eup %6041 }
0x1a32   : > { %v2357_v27 = vmul.f32 %v6042_v24, %v6034_v4  ;;  %5648 = vmatmul.mubr.msk.bf16.vlgmr.msra.gmra.mrb[64].mxu1 %vm513_vm8, %v2360_v20  ;;  %v5150_v24 = vld [vmem:[%s7373_s6 + $0x10] ss:$0 sm:$0xff] }
0x1a33   : > { %5661 = vmatprep.mubr.msk.bf16.mxu1 %vm6210_vm3, %v6209_v2  ;;  %5658 = vmatpush3.bf16.msra.mxu1 %v2570_v21 }
0x1a34   : > { %v2361_v28 = vpack.c.bf16 %v2357_v27, %v2357_v27  ;;  %5659 = vmatprep.subr.bf16.mxu1 %v6209_v2 }
0x1a36   : > { %5654 = vmatmul.mubr.msk.bf16.vlgmr.msra.gmra.mrb[68].mxu0 %vm513_vm8, %v2361_v28 }
0x1a37   : > { %5669 = vmatprep.mubr.msk.bf16.mxu0 %vm6210_vm3, %v6209_v2  ;;  %5660 = vmatpush3.bf16.msra.mxu1 %v2571_v35  ;;  %v2646_v35 = vld [vmem:[#allocation2 + $0x188] sm:$0xff] }
0x1a38   : > { %5673 = vmatprep.subr.bf16.mxu1 %v6209_v2 }
0x1a9c   : > { %v2404_v29 = vpop.f32.mrb[60].mxu1 }
0x1a9d   : > { %v5637_v30 = vpop.f32.mrb[61].mxu1 }
0x1a9e   : > { %v2407_v31 = vpop.f32.mrb[62].mxu1 }
0x1a9f   : > { %v5638_v32 = vpop.f32.mrb[63].mxu1 }
0x1b01   : > { %v2452_v36 = vpop.f32.mrb[64].mxu0 }
0x1b02   : > { %2555 = vrot.lane.b32.xlu1 %v2452_v36, %s7399_s29  ;;  %v5643_v37 = vpop.f32.mrb[65].mxu0  ;;  %v2661_v36 = vpack.c.bf16 %v2646_v35, %v2645_v34 }
0x1b03   : > { %v2455_v38 = vpop.f32.mrb[66].mxu0  ;;  %v2647_v37 = vld [vmem:[#allocation2 + $0x190] sm:$0xff] }
0x1b04   : > { %v5644_v39 = vpop.f32.mrb[67].mxu0  ;;  %5666 = vmatpush3.bf16.msra.mxu0 %v2661_v36  ;;  %v2648_v38 = vld [vmem:[#allocation2 + $0x198] sm:$0xff] }
0x1b05   : > { %v2500_v40 = vpop.f32.mrb[64].mxu1  ;;  %5667 = vmatprep.subr.bf16.mxu0 %v6209_v2  ;;  %v2662_v39 = vpack.c.bf16 %v2648_v38, %v2647_v37 }
0x1b06   : > { %2559 = vrot.lane.b32.xlu0 %v2500_v40, %s7400_s9  ;;  %v5649_v42 = vpop.f32.mrb[65].mxu1  ;;  %v5172_v40 = vld [vmem:[%s7373_s6 + $0x15] ss:$0 sm:$0xff] }
0x1b07   : > { %v2503_v44 = vpop.f32.mrb[66].mxu1 }
0x1b08   : > { %v5650_v45 = vpop.f32.mrb[67].mxu1  ;;  %5668 = vmatpush3.bf16.msra.mxu0 %v2662_v39 }
0x1b09   : > { %v2548_v46 = vpop.f32.mrb[68].mxu0  ;;  %5681 = vmatprep.subr.bf16.mxu0 %v6209_v2 }
0x1b0a   : > { %2563 = vrot.lane.b32.xlu1 %v2548_v46, %s7396_s22  ;;  %v5655_v47 = vpop.f32.mrb[69].mxu0 }
0x1b0b   : > { %v2551_v48 = vpop.f32.mrb[70].mxu0 }
0x1b0c   : > { %v5656_v50 = vpop.f32.mrb[71].mxu0 }
0x1b25   : > { %1929 = vadd.xlane.f32.xlu0 %v1928_v54 }
0x1b74   : > { %v2556_v55 = vpop.permute.xlu1 %2555 }
0x1b75   : > { %v2566_v58 = vsel %vm513_vm8, %v2404_v29, %v2556_v55  ;;  %v5151_v29 = vld [vmem:[%s7373_s6 + $0x11] ss:$0 sm:$0xff] }
0x1b78   : > { %v2560_v56 = vpop.permute.xlu0 %2559 }
0x1b79   : > { %v2567_v60 = vsel %vm975_vm11, %v2566_v58, %v2560_v56 }
0x1b7c   : > { %v2564_v0 = vpop.permute.xlu1 %2563 }
0x1b7d   : > { %v2568_v10 = vsel %vm977_vm12, %v2567_v60, %v2564_v0 }
0x1b7e   : > { %v2569_v62 = vpack.c.bf16 %v2568_v10, %v2568_v10 }
0x1b80   : > { %5662 = vmatmul.mubr.msk.bf16.vlgmr.msra.gmra.mrb[68].mxu1 %vm366_vm7, %v2569_v62  ;;  %v5170_v62 = vld [vmem:[%s7373_s6 + $0x14] ss:$0 sm:$0xff] }
0x1b81   : > { %5677 = vmatprep.mubr.msk.bf16.mxu1 %vm6210_vm3, %v6209_v2  ;;  %5674 = vmatpush3.bf16.msra.mxu1 %v2711_v8 }
0x1b82   : > { %5675 = vmatprep.subr.bf16.mxu1 %v6209_v2 }
0x1b85   : > { %5676 = vmatpush3.bf16.msra.mxu1 %v2712_v63 }
0x1b86   : > { %5687 = vmatprep.subr.bf16.mxu1 %v6209_v2 }
0x1bb2   : > { %v1930_v22 = vpop.xlane.xlu0 %1929 }
0x1bb3   : > { %v1931_v23 = vmul.f32 0.03125, %v1930_v22 }
0x1bb5   : > { %v1932_v3 = vsub.f32 %v1925_v53, %v1931_v23 }
0x1bb7   : > { %v1933_v4 = vmul.f32 %v1932_v3, %v1932_v3 }
0x1bb9   : > { %v1934_v5 = vsel %vm366_vm7, %v1933_v4, 0.0 }
0x1bba   : > { %1935 = vadd.xlane.f32.xlu0 %v1934_v5 }
0x1c47   : > { %v1936_v59 = vpop.xlane.xlu0 %1935 }
0x1c48   : > { %v1937_v57 = vmul.f32 0.03125, %v1936_v59 }
0x1c4a   : > { %v1938_v25 = vadd.f32 1e-05, %v1937_v57 }
0x1c4c   : > { %6043 = vrsqrt.f32 %v1938_v25 }
0x1c53   : > { %v2613_v1 = vpop.f32.mrb[68].mxu1 }
0x1c54   : > { %v2614_v12 = vadd.f32 %v5166_v11, %v2613_v1  ;;  %v5663_v13 = vpop.f32.mrb[69].mxu1 }
0x1c55   : > { %v2616_v15 = vpop.f32.mrb[70].mxu1 }
0x1c56   : > { %v6044_v16 = vpop.eup %6043  ;;  %v5664_v18 = vpop.f32.mrb[71].mxu1  ;;  %v2619_v20 = vadd.f32 %v2614_v12, %v6728_v14 }
0x1c57   : > { %v1940_v27 = vmul.f32 %v6044_v16, %v1932_v3 }
0x1c58   : > { %v2622_v28 = vsel %vm366_vm7, %v2619_v20, 0.0 }
0x1c59   : > { %2623 = vadd.xlane.f32.xlu1 %v2622_v28  ;;  %v1945_v30 = vmul.f32 %v5150_v24, %v1940_v27 }
0x1c5b   : > { %v1950_v31 = vadd.f32 %v5151_v29, %v1945_v30 }
0x1c5d   : > { %v6869_v32 = vpack.c.bf16 %v1950_v31, %v1950_v31 }
0x1c5f   : > { %5678 = vmatmul.mubr.msk.bf16.vlgmr.msra.gmra.mrb[72].mxu1 %vm366_vm7, %v6869_v32 }
0x1c60   : > { %5689 = vmatprep.mubr.msk.bf16.mxu1 %vm6210_vm3, %v6209_v2 }
0x1ce6   : > { %v2624_v14 = vpop.xlane.xlu1 %2623 }
0x1ce7   : > { %v2625_v49 = vmul.f32 0.03125, %v2624_v14 }
0x1ce9   : > { %v2626_v33 = vsub.f32 %v2619_v20, %v2625_v49 }
0x1ceb   : > { %v2627_v21 = vmul.f32 %v2626_v33, %v2626_v33 }
0x1ced   : > { %v2628_v26 = vsel %vm366_vm7, %v2627_v21, 0.0 }
0x1cee   : > { %2629 = vadd.xlane.f32.xlu0 %v2628_v26 }
0x1d32   : > { %v2754_v42 = vpop.f32.mrb[72].mxu1 }
0x1d33   : > { %v2755_v44 = vadd.f32 %v5172_v40, %v2754_v42  ;;  %v5679_v45 = vpop.f32.mrb[73].mxu1 }
0x1d34   : > { %v2757_v46 = vpop.f32.mrb[74].mxu1 }
0x1d35   : > { %2778 = vrot.lane.b32.xlu0 %v2755_v44, %s6212_s19  ;;  %2775 = vrot.lane.b32.xlu1 %v2755_v44, %s6211_s15  ;;  %v5680_v47 = vpop.f32.mrb[75].mxu1  ;;  %v6887_v56 = vpack.c.bf16 %v2755_v44, %v2755_v44 }
0x1d37   : > { %v2792_v60 = vsel %vm513_vm8, %v6887_v56, 0 }
0x1d7b   : > { %v2630_v48 = vpop.xlane.xlu0 %2629 }
0x1d7c   : > { %v2631_v50 = vmul.f32 0.03125, %v2630_v48 }
0x1d7e   : > { %v2632_v51 = vadd.f32 1e-05, %v2631_v50 }
0x1d80   : > { %6045 = vrsqrt.f32 %v2632_v51 }
0x1d8a   : > { %v6046_v52 = vpop.eup %6045 }
0x1d8b   : > { %v2634_v53 = vmul.f32 %v6046_v52, %v2626_v33 }
0x1d8d   : > { %v2639_v54 = vmul.f32 %v6741_v41, %v2634_v53 }
0x1d8f   : > { %v6885_v55 = vadd.f32 %v6746_v43, %v2639_v54 }
0x1d91   : > { %v2660_v58 = vpack.c.bf16 %v6885_v55, %v6885_v55 }
0x1d93   : > { %5670 = vmatmul.mubr.msk.bf16.vlgmr.msra.gmra.mrb[72].mxu0 %vm366_vm7, %v2660_v58 }
0x1d94   : > { %5682 = vmatpush3.bf16.xpose.msra.mxu0 %v2792_v60  ;;  %5683 = vmatprep.mubr.msk.bf16.mxu0 %vm6210_vm3, %v6209_v2 }
0x1d95   : > { %5693 = vmatprep.subr.bf16.mxu0 %v6209_v2 }
0x1da7   : > { %v2776_v41 = vpop.permute.xlu1 %2775  ;;  %v2779_v10 = vpop.permute.xlu0 %2778 }
0x1da8   : > { %v6897_v0 = vpack.c.bf16 %v2776_v41, %v2776_v41  ;;  %v6905_v23 = vpack.c.bf16 %v2779_v10, %v2779_v10 }
0x1daa   : > { %v2838_v43 = vsel %vm513_vm8, %v6897_v0, 0  ;;  %v2884_v8 = vsel %vm513_vm8, %v6905_v23, 0 }
0x1dab   : > { %5688 = vmatpush3.bf16.xpose.msra.mxu1 %v2838_v43 }
0x1dac   : > { %5699 = vmatprep.subr.bf16.mxu1 %v6209_v2 }
0x1e66   : > { %v2704_v22 = vpop.f32.mrb[72].mxu0 }
0x1e67   : > { %v2705_v3 = vadd.f32 %v5170_v62, %v2704_v22  ;;  %v5671_v4 = vpop.f32.mrb[73].mxu0 }
0x1e68   : > { %v2707_v5 = vpop.f32.mrb[74].mxu0 }
0x1e69   : > { %v2770_v6 = vpack.c.bf16 %v2705_v3, %v2705_v3  ;;  %2764 = vrot.lane.b32.xlu0 %v2705_v3, %s6212_s19  ;;  %2761 = vrot.lane.b32.xlu1 %v2705_v3, %s6211_s15  ;;  %v5672_v7 = vpop.f32.mrb[75].mxu0 }
0x1e6b   : > { %5684 = vmatmul.mubr.msk.bf16.vlgmr.msra.gmra.mrb[76].mxu0 %vm513_vm8, %v2770_v6 }
0x1e6c   : > { %5694 = vmatpush3.bf16.xpose.msra.mxu0 %v2884_v8  ;;  %5695 = vmatprep.mubr.msk.bf16.mxu0 %vm6210_vm3, %v6209_v2 }
0x1e6d   : > { %2781 = vrot.lane.b32.xlu1 %v2755_v44, %s6213_s18  ;;  %5705 = vmatprep.subr.bf16.mxu0 %v6209_v2 }
0x1e71   : > { %2767 = vrot.lane.b32.xlu1 %v2705_v3, %s6213_s18 }
0x1edb   : > { %v2765_v61 = vpop.permute.xlu0 %2764  ;;  %v2762_v9 = vpop.permute.xlu1 %2761 }
0x1edc   : > { %v2772_v63 = vpack.c.bf16 %v2765_v61, %v2765_v61  ;;  %v2771_v59 = vpack.c.bf16 %v2762_v9, %v2762_v9 }
0x1ede   : > { %5690 = vmatmul.mubr.msk.bf16.vlgmr.msra.gmra.mrb[76].mxu1 %vm513_vm8, %v2771_v59  ;;  %5696 = vmatmul.mubr.msk.bf16.vlgmr.msra.gmra.mrb[80].mxu0 %vm513_vm8, %v2772_v63 }
0x1edf   : > { %v2782_v57 = vpop.permute.xlu1 %2781  ;;  %5701 = vmatprep.mubr.msk.bf16.mxu1 %vm6210_vm3, %v6209_v2  ;;  %5707 = vmatprep.mubr.msk.bf16.mxu0 %vm6210_vm3, %v6209_v2 }
0x1ee0   : > { %v6923_v25 = vpack.c.bf16 %v2782_v57, %v2782_v57 }
0x1ee2   : > { %v2930_v11 = vsel %vm513_vm8, %v6923_v25, 0 }
0x1ee3   : > { %5700 = vmatpush3.bf16.xpose.msra.mxu1 %v2930_v11  ;;  %v2768_v1 = vpop.permute.xlu1 %2767 }
0x1ee4   : > { %5711 = vmatprep.subr.bf16.mxu1 %v6209_v2  ;;  %v2773_v12 = vpack.c.bf16 %v2768_v1, %v2768_v1 }
0x1eea   : > { %5702 = vmatmul.mubr.msk.bf16.vlgmr.msra.gmra.mrb[80].mxu1 %vm513_vm8, %v2773_v12 }
0x1eeb   : > { %5713 = vmatprep.mubr.msk.bf16.mxu1 %vm6210_vm3, %v6209_v2 }
0x1f3e   : > { %v2828_v13 = vpop.f32.mrb[76].mxu0 }
0x1f3f   : > { %v2972_v15 = vmul.f32 0.35355338, %v2828_v13  ;;  %v5685_v16 = vpop.f32.mrb[77].mxu0 }
0x1f40   : > { %v2831_v18 = vpop.f32.mrb[78].mxu0 }
0x1f41   : > { %v5686_v20 = vpop.f32.mrb[79].mxu0  ;;  %v2976_v24 = vsel %vm716_vm9, %v2972_v15, -1e+09 }
0x1f42   : > { %v2980_v27 = vsel %vm513_vm8, %v2976_v24, -inf }
0x1f43   : > { %2981 = vmax.xlane.f32.xlu0 %v2980_v27 }
0x1fb1   : > { %v2874_v28 = vpop.f32.mrb[76].mxu1  ;;  %v2920_v29 = vpop.f32.mrb[80].mxu0 }
0x1fb2   : > { %v2973_v30 = vmul.f32 0.35355338, %v2874_v28  ;;  %v2974_v31 = vmul.f32 0.35355338, %v2920_v29  ;;  %v5691_v14 = vpop.f32.mrb[77].mxu1  ;;  %v5697_v49 = vpop.f32.mrb[81].mxu0 }
0x1fb3   : > { %v2877_v33 = vpop.f32.mrb[78].mxu1  ;;  %v2923_v21 = vpop.f32.mrb[82].mxu0 }
0x1fb4   : > { %v5692_v26 = vpop.f32.mrb[79].mxu1  ;;  %v5698_v34 = vpop.f32.mrb[83].mxu0  ;;  %v2977_v35 = vsel %vm716_vm9, %v2973_v30, -1e+09  ;;  %v2978_v36 = vsel %vm716_vm9, %v2974_v31, -1e+09 }
0x1fb5   : > { %v2983_v37 = vsel %vm513_vm8, %v2977_v35, -inf  ;;  %v2986_v38 = vsel %vm513_vm8, %v2978_v36, -inf }
0x1fb6   : > { %2984 = vmax.xlane.f32.xlu1 %v2983_v37  ;;  %2987 = vmax.xlane.f32.xlu0 %v2986_v38  ;;  %v2657_v38 = vld [vmem:[#allocation2 + $0x1d0] sm:$0xff] }
0x1fbd   : > { %v2966_v39 = vpop.f32.mrb[80].mxu1 }
0x1fbe   : > { %v2975_v40 = vmul.f32 0.35355338, %v2966_v39  ;;  %v5703_v42 = vpop.f32.mrb[81].mxu1  ;;  %v2658_v39 = vld [vmem:[#allocation2 + $0x1d8] sm:$0xff] }
0x1fbf   : > { %v2969_v44 = vpop.f32.mrb[82].mxu1 }
0x1fc0   : > { %v5704_v45 = vpop.f32.mrb[83].mxu1  ;;  %v2979_v46 = vsel %vm716_vm9, %v2975_v40, -1e+09  ;;  %v3241_v40 = vpack.c.bf16 %v2658_v39, %v2657_v38  ;;  %v3326_v38 = vld [vmem:[#allocation2 + $0x228] sm:$0xff] }
0x1fc1   : > { %v2989_v47 = vsel %vm513_vm8, %v2979_v46, -inf }
0x1fc2   : > { %2990 = vmax.xlane.f32.xlu0 %v2989_v47 }
0x1fc7   : > { %3029 = vrot.lane.b32.xlu1 %v6887_v56, %s6214_s20 }
0x1fd0   : > { %v2982_v48 = vpop.xlane.xlu0 %2981 }
0x1fd1   : > { %v2992_v50 = vsub.f32 %v2976_v24, %v2982_v48 }
0x1fd3   : > { %v2996_v51 = vmul.f32 1.442695, %v2992_v50 }
0x1fd5   : > { %6047 = vpow2.f32 %v2996_v51 }
0x1fdf   : > { %v6048_v52 = vpop.eup %6047 }
0x1fe0   : > { %v3004_v53 = vsel %vm513_vm8, %v6048_v52, 0.0 }
0x1feb   : > { %3005 = vadd.xlane.f32.xlu1 %v3004_v53 }
0x2043   : > { %v2985_v54 = vpop.xlane.xlu1 %2984  ;;  %v2988_v58 = vpop.xlane.xlu0 %2987 }
0x2044   : > { %v2993_v60 = vsub.f32 %v2977_v35, %v2985_v54  ;;  %v2994_v41 = vsub.f32 %v2978_v36, %v2988_v58  ;;  %v2655_v35 = vld [vmem:[#allocation2 + $0x1c0] sm:$0xff]  ;;  %v2656_v36 = vld [vmem:[#allocation2 + $0x1c8] sm:$0xff] }
0x2045   : > { %v3240_v37 = vpack.c.bf16 %v2656_v36, %v2655_v35 }
0x2046   : > { %v2998_v43 = vmul.f32 1.442695, %v2993_v60  ;;  %v3000_v10 = vmul.f32 1.442695, %v2994_v41 }
0x2047   : > { %v3030_v62 = vpop.permute.xlu1 %3029 }
0x2048   : > { %6049 = vpow2.f32 %v2998_v43  ;;  %v3035_v22 = vsel %vm774_vm10, %v3030_v62, 0 }
0x2049   : > { %6051 = vpow2.f32 %v3000_v10  ;;  %5706 = vmatpush3.bf16.msra.mxu0 %v3035_v22 }
0x204a   : > { %5717 = vmatprep.subr.bf16.mxu0 %v6209_v2 }
0x204f   : > { %v2991_v56 = vpop.xlane.xlu0 %2990 }
0x2050   : > { %v2995_v3 = vsub.f32 %v2979_v46, %v2991_v56 }
0x2052   : > { %v6050_v4 = vpop.eup %6049  ;;  %v3002_v5 = vmul.f32 1.442695, %v2995_v3  ;;  %v5182_v3 = vld [vmem:[%s7373_s6 + $0x16] ss:$0 sm:$0xff] }
0x2053   : > { %v6052_v6 = vpop.eup %6051  ;;  %v3007_v7 = vsel %vm513_vm8, %v6050_v4, 0.0 }
0x2054   : > { %6053 = vpow2.f32 %v3002_v5  ;;  %3008 = vadd.xlane.f32.xlu0 %v3007_v7  ;;  %v3010_v8 = vsel %vm513_vm8, %v6052_v6, 0.0 }
0x2055   : > { %3011 = vadd.xlane.f32.xlu1 %v3010_v8 }
0x205e   : > { %v6054_v61 = vpop.eup %6053 }
0x205f   : > { %v3013_v9 = vsel %vm513_vm8, %v6054_v61, 0.0 }
0x2060   : > { %3014 = vadd.xlane.f32.xlu0 %v3013_v9 }
0x2066   : > { %3127 = vrot.lane.b32.xlu1 %v6905_v23, %s6214_s20 }
0x206a   : > { %3176 = vrot.lane.b32.xlu1 %v6923_v25, %s6214_s20 }
0x2076   : > { %3078 = vrot.lane.b32.xlu0 %v6897_v0, %s6214_s20 }
0x2078   : > { %v3006_v63 = vpop.xlane.xlu1 %3005 }
0x2079   : > { %6055 = vrcp.f32 %v3006_v63 }
0x2083   : > { %v6056_v59 = vpop.eup %6055 }
0x2084   : > { %v3020_v57 = vmul.f32 %v6056_v59, %v6048_v52 }
0x2086   : > { %v3024_v11 = vpack.c.bf16 %v3020_v57, %v3020_v57 }
0x2088   : > { %5708 = vmatmul.mubr.msk.bf16.vlgmr.msra.gmra.mrb[84].mxu0 %vm513_vm8, %v3024_v11 }
0x2089   : > { %5719 = vmatprep.mubr.msk.bf16.mxu0 %vm6210_vm3, %v6209_v2 }
0x20e1   : > { %v3009_v1 = vpop.xlane.xlu0 %3008 }
0x20e2   : > { %v3012_v12 = vpop.xlane.xlu1 %3011  ;;  %6057 = vrcp.f32 %v3009_v1 }
0x20e3   : > { %6059 = vrcp.f32 %v3012_v12  ;;  %v3316_v12 = vld [vmem:[#allocation2 + $0x1e0] sm:$0xff] }
0x20e6   : > { %v3128_v23 = vpop.permute.xlu1 %3127 }
0x20e7   : > { %v3133_v25 = vsel %vm774_vm10, %v3128_v23, 0  ;;  %v3317_v23 = vld [vmem:[#allocation2 + $0x1e8] sm:$0xff] }
0x20e8   : > { %5718 = vmatpush3.bf16.msra.mxu0 %v3133_v25  ;;  %v3331_v25 = vpack.c.bf16 %v3317_v23, %v3316_v12 }
0x20e9   : > { %5729 = vmatprep.subr.bf16.mxu0 %v6209_v2 }
0x20ea   : > { %v3177_v28 = vpop.permute.xlu1 %3176 }
0x20eb   : > { %v3182_v30 = vsel %vm774_vm10, %v3177_v28, 0 }
0x20ec   : > { %v6058_v0 = vpop.eup %6057 }
0x20ed   : > { %v6060_v13 = vpop.eup %6059  ;;  %v3015_v15 = vpop.xlane.xlu0 %3014  ;;  %v3021_v18 = vmul.f32 %v6058_v0, %v6050_v4  ;;  %v3318_v0 = vld [vmem:[#allocation2 + $0x1f0] sm:$0xff] }
0x20ee   : > { %v3022_v16 = vmul.f32 %v6060_v13, %v6052_v6  ;;  %6061 = vrcp.f32 %v3015_v15  ;;  %v3319_v13 = vld [vmem:[#allocation2 + $0x1f8] sm:$0xff] }
0x20ef   : > { %v3025_v29 = vpack.c.bf16 %v3021_v18, %v3021_v18  ;;  %v3332_v15 = vpack.c.bf16 %v3319_v13, %v3318_v0  ;;  %v3322_v18 = vld [vmem:[#allocation2 + $0x208] sm:$0xff] }
0x20f0   : > { %v3026_v20 = vpack.c.bf16 %v3022_v16, %v3022_v16  ;;  %v3321_v16 = vld [vmem:[#allocation2 + $0x200] sm:$0xff] }
0x20f1   : > { %v3079_v24 = vpop.permute.xlu0 %3078 }
0x20f2   : > { %5720 = vmatmul.mubr.msk.bf16.vlgmr.msra.gmra.mrb[88].mxu0 %vm513_vm8, %v3026_v20  ;;  %v3084_v27 = vsel %vm774_vm10, %v3079_v24, 0  ;;  %v3323_v20 = vld [vmem:[#allocation2 + $0x210] sm:$0xff]  ;;  %v3382_v24 = vpack.c.bf16 %v3322_v18, %v3321_v16  ;;  %v3485_v16 = vld [vmem:[#allocation2 + $0x248] sm:$0xff] }
0x20f3   : > { %5712 = vmatpush3.bf16.msra.mxu1 %v3084_v27  ;;  %5733 = vmatprep.mubr.msk.bf16.mxu0 %vm6210_vm3, %v6209_v2  ;;  %v3324_v27 = vld [vmem:[#allocation2 + $0x218] sm:$0xff] }
0x20f4   : > { %5723 = vmatprep.subr.bf16.mxu1 %v6209_v2  ;;  %5730 = vmatpush3.bf16.msra.mxu0 %v3240_v37  ;;  %v3383_v28 = vpack.c.bf16 %v3324_v27, %v3323_v20  ;;  %v3325_v37 = vld [vmem:[#allocation2 + $0x220] sm:$0xff]  ;;  %v3486_v20 = vld [vmem:[#allocation2 + $0x250] sm:$0xff] }
0x20f5   : > { %5731 = vmatprep.subr.bf16.mxu0 %v6209_v2  ;;  %v3384_v39 = vpack.c.bf16 %v3326_v38, %v3325_v37 }
0x20f6   : > { %5714 = vmatmul.mubr.msk.bf16.vlgmr.msra.gmra.mrb[84].mxu1 %vm513_vm8, %v3025_v29 }
0x20f7   : > { %5724 = vmatpush3.bf16.msra.mxu1 %v3182_v30  ;;  %5725 = vmatprep.mubr.msk.bf16.mxu1 %vm6210_vm3, %v6209_v2 }
0x20f8   : > { %v6062_v31 = vpop.eup %6061  ;;  %5737 = vmatprep.subr.bf16.mxu1 %v6209_v2  ;;  %5732 = vmatpush3.bf16.msra.mxu0 %v3241_v40  ;;  %v3327_v40 = vld [vmem:[#allocation2 + $0x230] sm:$0xff] }
0x20f9   : > { %v3023_v14 = vmul.f32 %v6062_v31, %v6054_v61  ;;  %5745 = vmatprep.subr.bf16.mxu0 %v6209_v2 }
0x20fb   : > { %v3027_v49 = vpack.c.bf16 %v3023_v14, %v3023_v14 }
0x20fe   : > { %5726 = vmatmul.mubr.msk.bf16.vlgmr.msra.gmra.mrb[88].mxu1 %vm513_vm8, %v3027_v49  ;;  %v5184_v49 = vld [vmem:[%s7373_s6 + $0x19] ss:$0 sm:$0xff] }
0x20ff   : > { %5741 = vmatprep.mubr.msk.bf16.mxu1 %vm6210_vm3, %v6209_v2  ;;  %5738 = vmatpush3.bf16.msra.mxu1 %v3331_v25 }
0x2100   : > { %5739 = vmatprep.subr.bf16.mxu1 %v6209_v2 }
0x2103   : > { %5740 = vmatpush3.bf16.msra.mxu1 %v3332_v15  ;;  %v3484_v15 = vld [vmem:[#allocation2 + $0x240] sm:$0xff] }
0x2104   : > { %5757 = vmatprep.subr.bf16.mxu1 %v6209_v2  ;;  %v3495_v18 = vpack.c.bf16 %v3485_v16, %v3484_v15 }
0x215b   : > { %v3071_v33 = vpop.f32.mrb[84].mxu0 }
0x215c   : > { %v5709_v21 = vpop.f32.mrb[85].mxu0 }
0x215d   : > { %v3074_v26 = vpop.f32.mrb[86].mxu0  ;;  %v5185_v21 = vld [vmem:[%s7373_s6 + $0x1a] ss:$0 sm:$0xff] }
0x215e   : > { %v5710_v34 = vpop.f32.mrb[87].mxu0 }
0x21c5   : > { %v3169_v42 = vpop.f32.mrb[88].mxu0 }
0x21c6   : > { %3229 = vrot.lane.b32.xlu1 %v3169_v42, %s7400_s9  ;;  %v5721_v44 = vpop.f32.mrb[89].mxu0  ;;  %v3328_v42 = vld [vmem:[#allocation2 + $0x238] sm:$0xff] }
0x21c7   : > { %v3172_v45 = vpop.f32.mrb[90].mxu0  ;;  %v3385_v44 = vpack.c.bf16 %v3328_v42, %v3327_v40 }
0x21c8   : > { %v5722_v46 = vpop.f32.mrb[91].mxu0 }
0x21c9   : > { %v3120_v47 = vpop.f32.mrb[84].mxu1 }
0x21ca   : > { %3225 = vrot.lane.b32.xlu0 %v3120_v47, %s7399_s29  ;;  %v5715_v48 = vpop.f32.mrb[85].mxu1 }
0x21cb   : > { %v3123_v50 = vpop.f32.mrb[86].mxu1 }
0x21cc   : > { %v5716_v51 = vpop.f32.mrb[87].mxu1 }
0x21d1   : > { %v3218_v52 = vpop.f32.mrb[88].mxu1 }
0x21d2   : > { %3233 = vrot.lane.b32.xlu0 %v3218_v52, %s7396_s22  ;;  %v5727_v53 = vpop.f32.mrb[89].mxu1 }
0x21d3   : > { %v3221_v54 = vpop.f32.mrb[90].mxu1  ;;  %v5188_v53 = vld [vmem:[%s7373_s6 + $0x1e] ss:$0 sm:$0xff] }
0x21d4   : > { %v5728_v58 = vpop.f32.mrb[91].mxu1 }
0x2238   : > { %v3230_v43 = vpop.permute.xlu1 %3229 }
0x223c   : > { %v3226_v60 = vpop.permute.xlu0 %3225 }
0x223d   : > { %v3236_v41 = vsel %vm513_vm8, %v3071_v33, %v3226_v60 }
0x223e   : > { %v3237_v62 = vsel %vm975_vm11, %v3236_v41, %v3230_v43 }
0x2244   : > { %v3234_v10 = vpop.permute.xlu0 %3233 }
0x2245   : > { %v3238_v22 = vsel %vm977_vm12, %v3237_v62, %v3234_v10 }
0x2246   : > { %v3239_v56 = vpack.c.bf16 %v3238_v22, %v3238_v22 }
0x2248   : > { %5734 = vmatmul.mubr.msk.bf16.vlgmr.msra.gmra.mrb[92].mxu0 %vm366_vm7, %v3239_v56 }
0x2249   : > { %5753 = vmatprep.mubr.msk.bf16.mxu0 %vm6210_vm3, %v6209_v2  ;;  %5746 = vmatpush3.bf16.msra.mxu0 %v3382_v24  ;;  %v3487_v24 = vld [vmem:[#allocation2 + $0x258] sm:$0xff] }
0x224a   : > { %5747 = vmatprep.subr.bf16.mxu0 %v6209_v2  ;;  %v3496_v27 = vpack.c.bf16 %v3487_v24, %v3486_v20 }
0x224d   : > { %5748 = vmatpush3.bf16.msra.mxu0 %v3383_v28 }
0x224e   : > { %5749 = vmatprep.subr.bf16.mxu0 %v6209_v2 }
0x2251   : > { %5750 = vmatpush3.bf16.msra.mxu0 %v3384_v39 }
0x2252   : > { %5751 = vmatprep.subr.bf16.mxu0 %v6209_v2 }
0x2255   : > { %5752 = vmatpush3.bf16.msra.mxu0 %v3385_v44 }
0x2256   : > { %5771 = vmatprep.subr.bf16.mxu0 %v6209_v2 }
0x231b   : > { %v3283_v4 = vpop.f32.mrb[92].mxu0 }
0x231c   : > { %v3284_v5 = vadd.f32 %v5182_v3, %v3283_v4  ;;  %v5735_v6 = vpop.f32.mrb[93].mxu0 }
0x231d   : > { %v3286_v7 = vpop.f32.mrb[94].mxu0 }
0x231e   : > { %v3289_v8 = vadd.f32 %v3284_v5, %v6885_v55  ;;  %v5736_v61 = vpop.f32.mrb[95].mxu0 }
0x231f   : > { %v5190_v61 = vld [vmem:[%s7373_s6 + $0x1b] ss:$0 sm:$0xff] }
0x2320   : > { %v3292_v9 = vsel %vm366_vm7, %v3289_v8, 0.0 }
0x2321   : > { %3293 = vadd.xlane.f32.xlu1 %v3292_v9 }
0x23ae   : > { %v3294_v63 = vpop.xlane.xlu1 %3293 }
0x23af   : > { %v3295_v59 = vmul.f32 0.03125, %v3294_v63  ;;  %v5191_v63 = vld [vmem:[%s7373_s6 + $0x1c] ss:$0 sm:$0xff] }
0x23b1   : > { %v3296_v57 = vsub.f32 %v3289_v8, %v3295_v59 }
0x23b3   : > { %v3297_v11 = vmul.f32 %v3296_v57, %v3296_v57 }
0x23b5   : > { %v3298_v1 = vsel %vm366_vm7, %v3297_v11, 0.0 }
0x23b6   : > { %3299 = vadd.xlane.f32.xlu0 %v3298_v1 }
0x2443   : > { %v3300_v29 = vpop.xlane.xlu0 %3299 }
0x2444   : > { %v3301_v30 = vmul.f32 0.03125, %v3300_v29 }
0x2446   : > { %v3302_v31 = vadd.f32 1e-05, %v3301_v30 }
0x2448   : > { %6063 = vrsqrt.f32 %v3302_v31 }
0x2452   : > { %v6064_v14 = vpop.eup %6063 }
0x2453   : > { %v3304_v33 = vmul.f32 %v6064_v14, %v3296_v57  ;;  %v7036_v14 = vld [vmem:[%s7373_s6 + $0x24] ss:$0 sm:$0xff] }
0x2455   : > { %v3309_v26 = vmul.f32 %v5184_v49, %v3304_v33  ;;  %v7041_v33 = vld [vmem:[%s7373_s6 + $0x25] ss:$0 sm:$0xff] }
0x2457   : > { %v3314_v34 = vadd.f32 %v5185_v21, %v3309_v26 }
0x2459   : > { %v3315_v35 = vadd.f32 %v3314_v34, %v6885_v55  ;;  %v5186_v55 = vld [vmem:[%s7373_s6 + $0x1d] ss:$0 sm:$0xff] }
0x245b   : > { %v3330_v36 = vpack.c.bf16 %v3315_v35, %v3315_v35 }
0x245d   : > { %5742 = vmatmul.mubr.msk.bf16.vlgmr.msra.gmra.mrb[92].mxu1 %vm366_vm7, %v3330_v36 }
0x245e   : > { %5761 = vmatprep.mubr.msk.bf16.mxu1 %vm6210_vm3, %v6209_v2  ;;  %5758 = vmatpush3.bf16.msra.mxu1 %v3495_v18 }
0x245f   : > { %5759 = vmatprep.subr.bf16.mxu1 %v6209_v2 }
0x2462   : > { %5760 = vmatpush3.bf16.msra.mxu1 %v3496_v27 }
0x2463   : > { %5765 = vmatprep.subr.bf16.mxu1 %v6209_v2 }
0x2530   : > { %v3374_v45 = vpop.f32.mrb[92].mxu1 }
0x2531   : > { %v3375_v46 = vadd.f32 %v5186_v55, %v3374_v45  ;;  %v5743_v47 = vpop.f32.mrb[93].mxu1 }
0x2532   : > { %v3377_v48 = vpop.f32.mrb[94].mxu1 }
0x2533   : > { %v3380_v50 = vmax.f32 %v3375_v46, 0.0  ;;  %v5744_v51 = vpop.f32.mrb[95].mxu1 }
0x2535   : > { %v3381_v52 = vpack.c.bf16 %v3380_v50, %v3380_v50 }
0x2537   : > { %5754 = vmatmul.mubr.msk.bf16.vlgmr.msra.gmra.mrb[96].mxu0 %vm1129_vm13, %v3381_v52 }
0x2538   : > { %5773 = vmatprep.mubr.msk.bf16.mxu0 %vm6210_vm3, %v6209_v2 }
0x260a   : > { %v3427_v54 = vpop.f32.mrb[96].mxu0 }
0x260b   : > { %v3428_v58 = vadd.f32 %v5188_v53, %v3427_v54  ;;  %v5755_v60 = vpop.f32.mrb[97].mxu0 }
0x260c   : > { %v3430_v41 = vpop.f32.mrb[98].mxu0 }
0x260d   : > { %v5756_v43 = vpop.f32.mrb[99].mxu0  ;;  %v3435_v10 = vsel %vm366_vm7, %v3428_v58, 0.0 }
0x260e   : > { %3436 = vadd.xlane.f32.xlu0 %v3435_v10 }
0x269b   : > { %v3437_v62 = vpop.xlane.xlu0 %3436 }
0x269c   : > { %v3438_v22 = vmul.f32 0.03125, %v3437_v62 }
0x269e   : > { %v3439_v56 = vsub.f32 %v3428_v58, %v3438_v22 }
0x26a0   : > { %v3440_v3 = vmul.f32 %v3439_v56, %v3439_v56 }
0x26a2   : > { %v3441_v4 = vsel %vm366_vm7, %v3440_v3, 0.0 }
0x26a3   : > { %3442 = vadd.xlane.f32.xlu1 %v3441_v4 }
0x2730   : > { %v3443_v5 = vpop.xlane.xlu1 %3442 }
0x2731   : > { %v3444_v6 = vmul.f32 0.03125, %v3443_v5 }
0x2733   : > { %v3445_v7 = vadd.f32 1e-05, %v3444_v6 }
0x2735   : > { %6065 = vrsqrt.f32 %v3445_v7 }
0x273f   : > { %v6066_v8 = vpop.eup %6065 }
0x2740   : > { %v3447_v9 = vmul.f32 %v6066_v8, %v3439_v56 }
0x2742   : > { %v3452_v59 = vmul.f32 %v5190_v61, %v3447_v9 }
0x2744   : > { %v3457_v57 = vadd.f32 %v5191_v63, %v3452_v59 }
0x2746   : > { %v7025_v11 = vadd.f32 %v3457_v57, %v3315_v35  ;;  %v5194_v35 = vld [vmem:[%s7373_s6 + $0x1f] ss:$0 sm:$0xff] }
0x2748   : > { %v3461_v1 = vsel %vm366_vm7, %v7025_v11, 0.0 }
0x2749   : > { %3462 = vadd.xlane.f32.xlu0 %v3461_v1 }
0x27d6   : > { %v3463_v12 = vpop.xlane.xlu0 %3462 }
0x27d7   : > { %v3464_v23 = vmul.f32 0.03125, %v3463_v12 }
0x27d9   : > { %v3465_v25 = vsub.f32 %v7025_v11, %v3464_v23 }
0x27db   : > { %v3466_v0 = vmul.f32 %v3465_v25, %v3465_v25 }
0x27dd   : > { %v3467_v13 = vsel %vm366_vm7, %v3466_v0, 0.0 }
0x27de   : > { %3468 = vadd.xlane.f32.xlu1 %v3467_v13 }
0x286b   : > { %v3469_v28 = vpop.xlane.xlu1 %3468 }
0x286c   : > { %v3470_v29 = vmul.f32 0.03125, %v3469_v28 }
0x286e   : > { %v3471_v30 = vadd.f32 1e-05, %v3470_v29 }
0x2870   : > { %6067 = vrsqrt.f32 %v3471_v30 }
0x287a   : > { %v6068_v31 = vpop.eup %6067 }
0x287b   : > { %v3473_v49 = vmul.f32 %v6068_v31, %v3465_v25 }
0x287d   : > { %v3478_v21 = vmul.f32 %v7036_v14, %v3473_v49 }
0x287f   : > { %v3483_v26 = vadd.f32 %v7041_v33, %v3478_v21 }
0x2881   : > { %v3494_v34 = vpack.c.bf16 %v3483_v26, %v3483_v26 }
0x2883   : > { %5762 = vmatmul.mubr.msk.bf16.vlgmr.msra.gmra.mrb[96].mxu1 %vm366_vm7, %v3494_v34 }
0x2884   : > { %5767 = vmatprep.mubr.msk.bf16.mxu1 %vm6210_vm3, %v6209_v2 }
0x2956   : > { %v3538_v36 = vpop.f32.mrb[96].mxu1 }
0x2957   : > { %v3539_v37 = vadd.f32 %v5194_v35, %v3538_v36  ;;  %v5763_v38 = vpop.f32.mrb[97].mxu1 }
0x2958   : > { %v3541_v39 = vpop.f32.mrb[98].mxu1 }
0x2959   : > { %3548 = vrot.lane.b32.xlu1 %v3539_v37, %s6212_s19  ;;  %3545 = vrot.lane.b32.xlu0 %v3539_v37, %s6211_s15  ;;  %v5764_v40 = vpop.f32.mrb[99].mxu1  ;;  %v7053_v42 = vpack.c.bf16 %v3539_v37, %v3539_v37 }
0x295d   : > { %3551 = vrot.lane.b32.xlu1 %v3539_v37, %s6213_s18  ;;  %3559 = vrot.lane.b32.xlu0 %v7053_v42, %s6214_s20 }
0x29cb   : > { %v3549_v44 = vpop.permute.xlu1 %3548  ;;  %v3546_v55 = vpop.permute.xlu0 %3545 }
0x29cc   : > { %v7058_v45 = vpack.c.bf16 %v3549_v44, %v3549_v44  ;;  %v7060_v46 = vpack.c.bf16 %v3546_v55, %v3546_v55 }
0x29ce   : > { %3608 = vrot.lane.b32.xlu1 %v7060_v46, %s6214_s20  ;;  %3657 = vrot.lane.b32.xlu0 %v7058_v45, %s6214_s20 }
0x29cf   : > { %v3552_v47 = vpop.permute.xlu1 %3551  ;;  %v3560_v48 = vpop.permute.xlu0 %3559 }
0x29d0   : > { %v7066_v50 = vpack.c.bf16 %v3552_v47, %v3552_v47  ;;  %v3565_v51 = vsel %vm513_vm8, %v3560_v48, 0 }
0x29d1   : > { %5766 = vmatpush3.bf16.xpose.msra.mxu1 %v3565_v51 }
0x29d2   : > { %3706 = vrot.lane.b32.xlu1 %v7066_v50, %s6214_s20  ;;  %5777 = vmatprep.subr.bf16.mxu1 %v6209_v2 }
0x29d8   : > { %5768 = vmatmul.mubr.msk.bf16.vlgmr.msra.gmra.mrb[100].mxu1 %vm513_vm8, %v7053_v42 }
0x29d9   : > { %5779 = vmatprep.mubr.msk.bf16.mxu1 %vm6210_vm3, %v6209_v2 }
0x2a40   : > { %v3609_v52 = vpop.permute.xlu1 %3608  ;;  %v3658_v53 = vpop.permute.xlu0 %3657 }
0x2a41   : > { %v3614_v54 = vsel %vm513_vm8, %v3609_v52, 0  ;;  %v3663_v58 = vsel %vm513_vm8, %v3658_v53, 0 }
0x2a42   : > { %5772 = vmatpush3.bf16.xpose.msra.mxu0 %v3614_v54  ;;  %5778 = vmatpush3.bf16.xpose.msra.mxu1 %v3663_v58 }
0x2a43   : > { %5783 = vmatprep.subr.bf16.mxu0 %v6209_v2  ;;  %5789 = vmatprep.subr.bf16.mxu1 %v6209_v2 }
0x2a44   : > { %v3707_v60 = vpop.permute.xlu1 %3706 }
0x2a45   : > { %v3712_v41 = vsel %vm513_vm8, %v3707_v60, 0 }
0x2a49   : > { %5774 = vmatmul.mubr.msk.bf16.vlgmr.msra.gmra.mrb[100].mxu0 %vm513_vm8, %v7060_v46  ;;  %5780 = vmatmul.mubr.msk.bf16.vlgmr.msra.gmra.mrb[104].mxu1 %vm513_vm8, %v7058_v45 }
0x2a4a   : > { %5784 = vmatpush3.bf16.xpose.msra.mxu0 %v3712_v41  ;;  %5785 = vmatprep.mubr.msk.bf16.mxu0 %vm6210_vm3, %v6209_v2 }
0x2a4b   : > { %5791 = vmatprep.mubr.msk.bf16.mxu1 %vm6210_vm3, %v6209_v2  ;;  %5795 = vmatprep.subr.bf16.mxu0 %v6209_v2 }
0x2a51   : > { %5786 = vmatmul.mubr.msk.bf16.vlgmr.msra.gmra.mrb[104].mxu0 %vm513_vm8, %v7066_v50 }
0x2a52   : > { %5797 = vmatprep.mubr.msk.bf16.mxu0 %vm6210_vm3, %v6209_v2 }
0x2aab   : > { %v3601_v43 = vpop.f32.mrb[100].mxu1 }
0x2aac   : > { %v3754_v10 = vmul.f32 0.35355338, %v3601_v43  ;;  %v5769_v62 = vpop.f32.mrb[101].mxu1 }
0x2aad   : > { %v3604_v22 = vpop.f32.mrb[102].mxu1 }
0x2aae   : > { %v3758_v56 = vsel %vm6385_vm5, %v3754_v10, -1e+09  ;;  %v5770_v3 = vpop.f32.mrb[103].mxu1 }
0x2aaf   : > { %v3762_v4 = vsel %vm513_vm8, %v3758_v56, -inf }
0x2ab0   : > { %3763 = vmax.xlane.f32.xlu0 %v3762_v4 }
0x2b1c   : > { %v3650_v5 = vpop.f32.mrb[100].mxu0  ;;  %v3699_v6 = vpop.f32.mrb[104].mxu1 }
0x2b1d   : > { %v3755_v7 = vmul.f32 0.35355338, %v3650_v5  ;;  %v3756_v8 = vmul.f32 0.35355338, %v3699_v6  ;;  %v5775_v61 = vpop.f32.mrb[101].mxu0  ;;  %v5781_v9 = vpop.f32.mrb[105].mxu1 }
0x2b1e   : > { %v3653_v63 = vpop.f32.mrb[102].mxu0  ;;  %v3702_v59 = vpop.f32.mrb[106].mxu1 }
0x2b1f   : > { %v3759_v57 = vsel %vm6385_vm5, %v3755_v7, -1e+09  ;;  %v3760_v1 = vsel %vm6385_vm5, %v3756_v8, -1e+09  ;;  %v5776_v12 = vpop.f32.mrb[103].mxu0  ;;  %v5782_v23 = vpop.f32.mrb[107].mxu1 }
0x2b20   : > { %v3768_v25 = vsel %vm513_vm8, %v3760_v1, -inf  ;;  %v3765_v0 = vsel %vm513_vm8, %v3759_v57, -inf  ;;  %v3489_v23 = vld [vmem:[#allocation2 + $0x260] sm:$0xff] }
0x2b21   : > { %3769 = vmax.xlane.f32.xlu0 %v3768_v25  ;;  %3766 = vmax.xlane.f32.xlu1 %v3765_v0  ;;  %v3490_v25 = vld [vmem:[#allocation2 + $0x268] sm:$0xff] }
0x2b22   : > { %v4018_v0 = vpack.c.bf16 %v3490_v25, %v3489_v23 }
0x2b24   : > { %v3748_v13 = vpop.f32.mrb[104].mxu0 }
0x2b25   : > { %v3757_v15 = vmul.f32 0.35355338, %v3748_v13  ;;  %v5787_v16 = vpop.f32.mrb[105].mxu0  ;;  %v3491_v13 = vld [vmem:[#allocation2 + $0x270] sm:$0xff] }
0x2b26   : > { %v3751_v18 = vpop.f32.mrb[106].mxu0 }
0x2b27   : > { %v3761_v20 = vsel %vm6385_vm5, %v3757_v15, -1e+09  ;;  %v5788_v24 = vpop.f32.mrb[107].mxu0  ;;  %v3492_v15 = vld [vmem:[#allocation2 + $0x278] sm:$0xff] }
0x2b28   : > { %v3771_v27 = vsel %vm513_vm8, %v3761_v20, -inf  ;;  %v4019_v16 = vpack.c.bf16 %v3492_v15, %v3491_v13 }
0x2b29   : > { %3772 = vmax.xlane.f32.xlu0 %v3771_v27 }
0x2b32   : > { %3810 = vrot.lane.b32.xlu1 %v7053_v42, %s7398_s23 }
0x2b3d   : > { %v3764_v28 = vpop.xlane.xlu0 %3763 }
0x2b3e   : > { %v3774_v29 = vsub.f32 %v3758_v56, %v3764_v28 }
0x2b40   : > { %v3778_v30 = vmul.f32 1.442695, %v3774_v29 }
0x2b42   : > { %6069 = vpow2.f32 %v3778_v30 }
0x2b4c   : > { %v6070_v31 = vpop.eup %6069 }
0x2b4d   : > { %v3786_v49 = vsel %vm513_vm8, %v6070_v31, 0.0 }
0x2b56   : > { %3787 = vadd.xlane.f32.xlu1 %v3786_v49 }
0x2bae   : > { %v3770_v21 = vpop.xlane.xlu0 %3769  ;;  %v3767_v26 = vpop.xlane.xlu1 %3766 }
0x2baf   : > { %v3776_v34 = vsub.f32 %v3760_v1, %v3770_v21  ;;  %v3775_v19 = vsub.f32 %v3759_v57, %v3767_v26 }
0x2bb1   : > { %v3782_v35 = vmul.f32 1.442695, %v3776_v34  ;;  %v3780_v36 = vmul.f32 1.442695, %v3775_v19 }
0x2bb2   : > { %v3811_v37 = vpop.permute.xlu1 %3810 }
0x2bb3   : > { %6071 = vpow2.f32 %v3782_v35  ;;  %v3816_v38 = vsel %vm774_vm10, %v3811_v37, 0  ;;  %v4099_v37 = vld [vmem:[#allocation2 + $0x2a8] sm:$0xff] }
0x2bb4   : > { %6073 = vpow2.f32 %v3780_v36  ;;  %5790 = vmatpush3.bf16.msra.mxu1 %v3816_v38  ;;  %v4098_v36 = vld [vmem:[#allocation2 + $0x2a0] sm:$0xff] }
0x2bb5   : > { %5801 = vmatprep.subr.bf16.mxu1 %v6209_v2 }
0x2bb6   : > { %v3773_v39 = vpop.xlane.xlu0 %3772 }
0x2bb7   : > { %v3777_v40 = vsub.f32 %v3761_v20, %v3773_v39 }
0x2bb9   : > { %v3784_v42 = vmul.f32 1.442695, %v3777_v40 }
0x2bbb   : > { %6075 = vpow2.f32 %v3784_v42 }
0x2bbd   : > { %v6072_v44 = vpop.eup %6071 }
0x2bbe   : > { %v6074_v55 = vpop.eup %6073  ;;  %v3792_v47 = vsel %vm513_vm8, %v6072_v44, 0.0 }
0x2bbf   : > { %3793 = vadd.xlane.f32.xlu1 %v3792_v47  ;;  %v3789_v48 = vsel %vm513_vm8, %v6074_v55, 0.0  ;;  %v4100_v47 = vld [vmem:[#allocation2 + $0x2b0] sm:$0xff] }
0x2bc0   : > { %3790 = vadd.xlane.f32.xlu0 %v3789_v48  ;;  %v4101_v48 = vld [vmem:[#allocation2 + $0x2b8] sm:$0xff] }
0x2bc5   : > { %v6076_v51 = vpop.eup %6075 }
0x2bc6   : > { %v3795_v52 = vsel %vm513_vm8, %v6076_v51, 0.0 }
0x2bc7   : > { %3796 = vadd.xlane.f32.xlu0 %v3795_v52  ;;  %v5204_v52 = vld [vmem:[%s7373_s6 + $0x20] ss:$0 sm:$0xff] }
0x2bd0   : > { %3906 = vrot.lane.b32.xlu1 %v7058_v45, %s7398_s23 }
0x2bd4   : > { %3954 = vrot.lane.b32.xlu1 %v7066_v50, %s7398_s23 }
0x2bdd   : > { %3858 = vrot.lane.b32.xlu0 %v7060_v46, %s7398_s23  ;;  %s5235_s23 = sshll.u32 %s6281_s28, 7 }
0x2bde   : > { %s7325_s14 = scalar_lea.hbm %s7374_s7, %s5235_s23 }
0x2be3   : > { %v3788_v53 = vpop.xlane.xlu1 %3787 }
0x2be4   : > { %6077 = vrcp.f32 %v3788_v53 }
0x2bee   : > { %v6078_v54 = vpop.eup %6077 }
0x2bef   : > { %v3802_v58 = vmul.f32 %v6078_v54, %v6070_v31 }
0x2bf1   : > { %v3806_v60 = vpack.c.bf16 %v3802_v58, %v3802_v58 }
0x2bf3   : > { %5792 = vmatmul.mubr.msk.bf16.vlgmr.msra.gmra.mrb[108].mxu1 %vm513_vm8, %v3806_v60 }
0x2bf4   : > { %5803 = vmatprep.mubr.msk.bf16.mxu1 %vm6210_vm3, %v6209_v2 }
0x2c4c   : > { %v3794_v41 = vpop.xlane.xlu1 %3793 }
0x2c4d   : > { %6079 = vrcp.f32 %v3794_v41  ;;  %v3791_v43 = vpop.xlane.xlu0 %3790 }
0x2c4e   : > { %6081 = vrcp.f32 %v3791_v43 }
0x2c50   : > { %v3907_v45 = vpop.permute.xlu1 %3906 }
0x2c51   : > { %v3912_v50 = vsel %vm774_vm10, %v3907_v45, 0 }
0x2c52   : > { %5802 = vmatpush3.bf16.msra.mxu1 %v3912_v50 }
0x2c53   : > { %5813 = vmatprep.subr.bf16.mxu1 %v6209_v2 }
0x2c54   : > { %v3797_v46 = vpop.xlane.xlu0 %3796  ;;  %v3955_v5 = vpop.permute.xlu1 %3954 }
0x2c55   : > { %6083 = vrcp.f32 %v3797_v46  ;;  %v3960_v8 = vsel %vm774_vm10, %v3955_v5, 0 }
0x2c57   : > { %v6080_v10 = vpop.eup %6079 }
0x2c58   : > { %v6082_v62 = vpop.eup %6081  ;;  %v3804_v22 = vmul.f32 %v6080_v10, %v6072_v44  ;;  %v3859_v56 = vpop.permute.xlu0 %3858  ;;  %v4158_v44 = vpack.c.bf16 %v4099_v37, %v4098_v36 }
0x2c59   : > { %v3803_v3 = vmul.f32 %v6082_v62, %v6074_v55  ;;  %v3864_v4 = vsel %vm774_vm10, %v3859_v56, 0  ;;  %v5210_v62 = vld [vmem:[%s7373_s6 + $0x22] ss:$0 sm:$0xff] }
0x2c5a   : > { %5796 = vmatpush3.bf16.msra.mxu0 %v3864_v4  ;;  %v3808_v6 = vpack.c.bf16 %v3804_v22, %v3804_v22 }
0x2c5b   : > { %v3807_v7 = vpack.c.bf16 %v3803_v3, %v3803_v3  ;;  %5807 = vmatprep.subr.bf16.mxu0 %v6209_v2 }
0x2c5c   : > { %5804 = vmatmul.mubr.msk.bf16.vlgmr.msra.gmra.mrb[112].mxu1 %vm513_vm8, %v3808_v6  ;;  %v4093_v6 = vld [vmem:[#allocation2 + $0x280] sm:$0xff] }
0x2c5d   : > { %5798 = vmatmul.mubr.msk.bf16.vlgmr.msra.gmra.mrb[108].mxu0 %vm513_vm8, %v3807_v7  ;;  %5817 = vmatprep.mubr.msk.bf16.mxu1 %vm6210_vm3, %v6209_v2  ;;  %v4094_v7 = vld [vmem:[#allocation2 + $0x288] sm:$0xff] }
0x2c5e   : > { %5808 = vmatpush3.bf16.msra.mxu0 %v3960_v8  ;;  %5809 = vmatprep.mubr.msk.bf16.mxu0 %vm6210_vm3, %v6209_v2  ;;  %v4109_v8 = vpack.c.bf16 %v4094_v7, %v4093_v6 }
0x2c5f   : > { %v6084_v61 = vpop.eup %6083  ;;  %5821 = vmatprep.subr.bf16.mxu0 %v6209_v2  ;;  %5814 = vmatpush3.bf16.msra.mxu1 %v4018_v0 }
0x2c60   : > { %v3805_v9 = vmul.f32 %v6084_v61, %v6076_v51  ;;  %5815 = vmatprep.subr.bf16.mxu1 %v6209_v2  ;;  %v4159_v51 = vpack.c.bf16 %v4101_v48, %v4100_v47  ;;  %v4095_v61 = vld [vmem:[#allocation2 + $0x290] sm:$0xff] }
0x2c62   : > { %v3809_v63 = vpack.c.bf16 %v3805_v9, %v3805_v9  ;;  %v4096_v9 = vld [vmem:[#allocation2 + $0x298] sm:$0xff] }
0x2c63   : > { %5816 = vmatpush3.bf16.msra.mxu1 %v4019_v16 }
0x2c64   : > { %5829 = vmatprep.subr.bf16.mxu1 %v6209_v2 }
0x2c65   : > { %5810 = vmatmul.mubr.msk.bf16.vlgmr.msra.gmra.mrb[112].mxu0 %vm513_vm8, %v3809_v63  ;;  %v4110_v63 = vpack.c.bf16 %v4096_v9, %v4095_v61 }
0x2c66   : > { %5825 = vmatprep.mubr.msk.bf16.mxu0 %vm6210_vm3, %v6209_v2  ;;  %5822 = vmatpush3.bf16.msra.mxu0 %v4109_v8 }
0x2c67   : > { %5823 = vmatprep.subr.bf16.mxu0 %v6209_v2 }
0x2c6a   : > { %5824 = vmatpush3.bf16.msra.mxu0 %v4110_v63 }
0x2c6b   : > { %5837 = vmatprep.subr.bf16.mxu0 %v6209_v2 }
0x2cc6   : > { %v3852_v59 = vpop.f32.mrb[108].mxu1 }
0x2cc7   : > { %v5793_v57 = vpop.f32.mrb[109].mxu1 }
0x2cc8   : > { %v3855_v1 = vpop.f32.mrb[110].mxu1 }
0x2cc9   : > { %v5794_v12 = vpop.f32.mrb[111].mxu1 }
0x2d2f   : > { %v3948_v18 = vpop.f32.mrb[112].mxu1 }
0x2d30   : > { %4007 = vrot.lane.b32.xlu1 %v3948_v18, %s7400_s9  ;;  %v3900_v20 = vpop.f32.mrb[108].mxu0  ;;  %v5805_v24 = vpop.f32.mrb[113].mxu1 }
0x2d31   : > { %v3951_v27 = vpop.f32.mrb[114].mxu1  ;;  %4003 = vrot.lane.b32.xlu0 %v3900_v20, %s7399_s29  ;;  %v5799_v28 = vpop.f32.mrb[109].mxu0 }
0x2d32   : > { %v3903_v29 = vpop.f32.mrb[110].mxu0  ;;  %v5806_v30 = vpop.f32.mrb[115].mxu1 }
0x2d33   : > { %v5800_v31 = vpop.f32.mrb[111].mxu0 }
0x2d38   : > { %v3996_v49 = vpop.f32.mrb[112].mxu0 }
0x2d39   : > { %4011 = vrot.lane.b32.xlu0 %v3996_v49, %s7396_s22  ;;  %v5811_v21 = vpop.f32.mrb[113].mxu0 }
0x2d3a   : > { %v3999_v26 = vpop.f32.mrb[114].mxu0 }
0x2d3b   : > { %v5812_v34 = vpop.f32.mrb[115].mxu0 }
0x2da2   : > { %v4008_v38 = vpop.permute.xlu1 %4007 }
0x2da3   : > { %v4004_v19 = vpop.permute.xlu0 %4003 }
0x2da4   : > { %v4014_v35 = vsel %vm513_vm8, %v3852_v59, %v4004_v19 }
0x2da5   : > { %v4015_v39 = vsel %vm975_vm11, %v4014_v35, %v4008_v38 }
0x2dab   : > { %v4012_v40 = vpop.permute.xlu0 %4011 }
0x2dac   : > { %v4016_v42 = vsel %vm977_vm12, %v4015_v39, %v4012_v40 }
0x2dad   : > { %v4017_v55 = vpack.c.bf16 %v4016_v42, %v4016_v42 }
0x2daf   : > { %5818 = vmatmul.mubr.msk.bf16.vlgmr.msra.gmra.mrb[116].mxu1 %vm366_vm7, %v4017_v55 }
0x2db0   : > { %5830 = vmatpush3.bf16.msra.mxu1 %v4158_v44  ;;  %5833 = vmatprep.mubr.msk.bf16.mxu1 %vm6210_vm3, %v6209_v2 }
0x2db1   : > { %5831 = vmatprep.subr.bf16.mxu1 %v6209_v2 }
0x2db4   : > { %5832 = vmatpush3.bf16.msra.mxu1 %v4159_v51 }
0x2db5   : > { %5843 = vmatprep.subr.bf16.mxu1 %v6209_v2 }
0x2db7   : > { %5834 = vmatmul.mubr.msk.bf16.vlgmr.msra.gmra.mrb[120].mxu1 %vm366_vm7, %v6869_v32 }
0x2db8   : > { %5845 = vmatprep.mubr.msk.bf16.mxu1 %vm6210_vm3, %v6209_v2 }
0x2e82   : > { %v4061_v53 = vpop.f32.mrb[116].mxu1 }
0x2e83   : > { %v4062_v54 = vadd.f32 %v5204_v52, %v4061_v53  ;;  %v5819_v58 = vpop.f32.mrb[117].mxu1 }
0x2e84   : > { %v4064_v60 = vpop.f32.mrb[118].mxu1 }
0x2e85   : > { %v4067_v41 = vadd.f32 %v4062_v54, %v7025_v11  ;;  %v5820_v43 = vpop.f32.mrb[119].mxu1 }
0x2e87   : > { %v4070_v45 = vsel %vm366_vm7, %v4067_v41, 0.0 }
0x2e88   : > { %4071 = vadd.xlane.f32.xlu1 %v4070_v45 }
0x2e8a   : > { %v4198_v50 = vpop.f32.mrb[120].mxu1 }
0x2e8b   : > { %v5835_v46 = vpop.f32.mrb[121].mxu1  ;;  %v4199_v22 = vadd.f32 %v5210_v62, %v4198_v50 }
0x2e8c   : > { %v4201_v32 = vpop.f32.mrb[122].mxu1 }
0x2e8d   : > { %v5836_v10 = vpop.f32.mrb[123].mxu1  ;;  %v7178_v18 = vpack.c.bf16 %v4199_v22, %v4199_v22 }
0x2e8f   : > { %v4236_v24 = vsel %vm513_vm8, %v7178_v18, 0 }
0x2e99   : > { %4222 = vrot.lane.b32.xlu1 %v4199_v22, %s6212_s19 }
0x2f15   : > { %v4072_v56 = vpop.xlane.xlu1 %4071 }
0x2f16   : > { %v4073_v3 = vmul.f32 0.03125, %v4072_v56 }
0x2f18   : > { %v4074_v4 = vsub.f32 %v4067_v41, %v4073_v3 }
0x2f1a   : > { %v4075_v5 = vmul.f32 %v4074_v4, %v4074_v4 }
0x2f1c   : > { %v4076_v11 = vsel %vm366_vm7, %v4075_v5, 0.0 }
0x2f1d   : > { %4077 = vadd.xlane.f32.xlu0 %v4076_v11 }
0x2f33   : > { %4219 = vrot.lane.b32.xlu0 %v4199_v22, %s6211_s15 }
0x2f37   : > { %4225 = vrot.lane.b32.xlu0 %v4199_v22, %s6213_s18 }
0x2faa   : > { %v4078_v59 = vpop.xlane.xlu0 %4077 }
0x2fab   : > { %v4079_v57 = vmul.f32 0.03125, %v4078_v59 }
0x2fad   : > { %v4080_v1 = vadd.f32 1e-05, %v4079_v57 }
0x2fae   : > { %v4220_v12 = vpop.permute.xlu0 %4219 }
0x2faf   : > { %6085 = vrsqrt.f32 %v4080_v1  ;;  %v7169_v23 = vpack.c.bf16 %v4220_v12, %v4220_v12 }
0x2fb1   : > { %v4282_v25 = vsel %vm513_vm8, %v7169_v23, 0 }
0x2fb2   : > { %5844 = vmatpush3.bf16.xpose.msra.mxu1 %v4282_v25  ;;  %v4226_v34 = vpop.permute.xlu0 %4225 }
0x2fb3   : > { %5855 = vmatprep.subr.bf16.mxu1 %v6209_v2  ;;  %v7202_v19 = vpack.c.bf16 %v4226_v34, %v4226_v34 }
0x2fb5   : > { %v4374_v37 = vsel %vm513_vm8, %v7202_v19, 0 }
0x2fb9   : > { %v6086_v0 = vpop.eup %6085 }
0x2fba   : > { %v4082_v13 = vmul.f32 %v6086_v0, %v4074_v4 }
0x2fbc   : > { %v4087_v15 = vmul.f32 %v7036_v14, %v4082_v13  ;;  %v4223_v14 = vpop.permute.xlu1 %4222 }
0x2fbd   : > { %v7191_v28 = vpack.c.bf16 %v4223_v14, %v4223_v14 }
0x2fbe   : > { %v7176_v16 = vadd.f32 %v7041_v33, %v4087_v15  ;;  %v5208_v33 = vld [vmem:[%s7373_s6 + $0x21] ss:$0 sm:$0xff] }
0x2fbf   : > { %v4328_v26 = vsel %vm513_vm8, %v7191_v28, 0 }
0x2fc0   : > { %v4108_v20 = vpack.c.bf16 %v7176_v16, %v7176_v16 }
0x2fc2   : > { %5826 = vmatmul.mubr.msk.bf16.vlgmr.msra.gmra.mrb[116].mxu0 %vm366_vm7, %v4108_v20 }
0x2fc3   : > { %5838 = vmatpush3.bf16.xpose.msra.mxu0 %v4236_v24  ;;  %5839 = vmatprep.mubr.msk.bf16.mxu0 %vm6210_vm3, %v6209_v2 }
0x2fc4   : > { %5849 = vmatprep.subr.bf16.mxu0 %v6209_v2 }
0x3095   : > { %v4152_v27 = vpop.f32.mrb[116].mxu0 }
0x3096   : > { %v4153_v29 = vadd.f32 %v5208_v33, %v4152_v27  ;;  %v5827_v30 = vpop.f32.mrb[117].mxu0 }
0x3097   : > { %v4155_v31 = vpop.f32.mrb[118].mxu0 }
0x3098   : > { %v4214_v49 = vpack.c.bf16 %v4153_v29, %v4153_v29  ;;  %4211 = vrot.lane.b32.xlu0 %v4153_v29, %s6213_s18  ;;  %4205 = vrot.lane.b32.xlu1 %v4153_v29, %s6211_s15  ;;  %v5828_v21 = vpop.f32.mrb[119].mxu0 }
0x309a   : > { %5840 = vmatmul.mubr.msk.bf16.vlgmr.msra.gmra.mrb[120].mxu0 %vm513_vm8, %v4214_v49 }
0x309b   : > { %5850 = vmatpush3.bf16.xpose.msra.mxu0 %v4328_v26  ;;  %5851 = vmatprep.mubr.msk.bf16.mxu0 %vm6210_vm3, %v6209_v2 }
0x309c   : > { %4208 = vrot.lane.b32.xlu1 %v4153_v29, %s6212_s19  ;;  %5861 = vmatprep.subr.bf16.mxu0 %v6209_v2  ;;  %s6219_s19 = smov [#allocation5]  }
0x309d   : > { %s6141_s18 = sshll.u32 %s6219_s19, 4  ;;  %s6142_s18 = int_to_ptr.vmem [resolvable:$false] %s6141_s18 }
0x310a   : > { %v4206_v35 = vpop.permute.xlu1 %4205  ;;  %v4212_v40 = vpop.permute.xlu0 %4211 }
0x310b   : > { %v4215_v36 = vpack.c.bf16 %v4206_v35, %v4206_v35  ;;  %v4217_v42 = vpack.c.bf16 %v4212_v40, %v4212_v40 }
0x310d   : > { %5846 = vmatmul.mubr.msk.bf16.vlgmr.msra.gmra.mrb[124].mxu1 %vm513_vm8, %v4215_v36 }
0x310e   : > { %5856 = vmatpush3.bf16.xpose.msra.mxu1 %v4374_v37  ;;  %v4209_v38 = vpop.permute.xlu1 %4208  ;;  %5857 = vmatprep.mubr.msk.bf16.mxu1 %vm6210_vm3, %v6209_v2 }
0x310f   : > { %v4216_v39 = vpack.c.bf16 %v4209_v38, %v4209_v38  ;;  %5867 = vmatprep.subr.bf16.mxu1 %v6209_v2 }
0x3111   : > { %5852 = vmatmul.mubr.msk.bf16.vlgmr.msra.gmra.mrb[124].mxu0 %vm513_vm8, %v4216_v39 }
0x3112   : > { %5863 = vmatprep.mubr.msk.bf16.mxu0 %vm6210_vm3, %v6209_v2 }
0x3115   : > { %5858 = vmatmul.mubr.msk.bf16.vlgmr.msra.gmra.mrb[128].mxu1 %vm513_vm8, %v4217_v42 }
0x3116   : > { %5869 = vmatprep.mubr.msk.bf16.mxu1 %vm6210_vm3, %v6209_v2 }
0x316d   : > { %v4272_v44 = vpop.f32.mrb[120].mxu0 }
0x316e   : > { %v4416_v55 = vmul.f32 0.35355338, %v4272_v44  ;;  %v5841_v47 = vpop.f32.mrb[121].mxu0 }
0x316f   : > { %v4275_v48 = vpop.f32.mrb[122].mxu0 }
0x3170   : > { %v4420_v51 = vsel %vm716_vm9, %v4416_v55, -1e+09  ;;  %v5842_v52 = vpop.f32.mrb[123].mxu0 }
0x3171   : > { %v4424_v53 = vsel %vm513_vm8, %v4420_v51, -inf }
0x3172   : > { %4425 = vmax.xlane.f32.xlu1 %v4424_v53 }
0x31e0   : > { %v4318_v54 = vpop.f32.mrb[124].mxu1 }
0x31e1   : > { %v4417_v58 = vmul.f32 0.35355338, %v4318_v54  ;;  %v5847_v60 = vpop.f32.mrb[125].mxu1 }
0x31e2   : > { %v4321_v41 = vpop.f32.mrb[126].mxu1 }
0x31e3   : > { %v4421_v43 = vsel %vm716_vm9, %v4417_v58, -1e+09  ;;  %v5848_v45 = vpop.f32.mrb[127].mxu1 }
0x31e4   : > { %v4364_v50 = vpop.f32.mrb[124].mxu0  ;;  %v4427_v46 = vsel %vm513_vm8, %v4421_v43, -inf }
0x31e5   : > { %v4418_v32 = vmul.f32 0.35355338, %v4364_v50  ;;  %4428 = vmax.xlane.f32.xlu0 %v4427_v46  ;;  %v5853_v10 = vpop.f32.mrb[125].mxu0  ;;  %v4103_v46 = vld [vmem:[#allocation2 + $0x2c0] sm:$0xff] }
0x31e6   : > { %v4367_v62 = vpop.f32.mrb[126].mxu0 }
0x31e7   : > { %v4422_v22 = vsel %vm716_vm9, %v4418_v32, -1e+09  ;;  %v5854_v56 = vpop.f32.mrb[127].mxu0  ;;  %v4104_v32 = vld [vmem:[#allocation2 + $0x2c8] sm:$0xff]  ;;  %v4105_v62 = vld [vmem:[#allocation2 + $0x2d0] sm:$0xff] }
0x31e8   : > { %v4410_v3 = vpop.f32.mrb[128].mxu1  ;;  %v4430_v4 = vsel %vm513_vm8, %v4422_v22, -inf  ;;  %v4684_v10 = vpack.c.bf16 %v4104_v32, %v4103_v46  ;;  %v4770_v46 = vld [vmem:[#allocation2 + $0x328] sm:$0xff] }
0x31e9   : > { %v4419_v5 = vmul.f32 0.35355338, %v4410_v3  ;;  %v5859_v11 = vpop.f32.mrb[129].mxu1  ;;  %4431 = vmax.xlane.f32.xlu0 %v4430_v4 }
0x31ea   : > { %v4413_v6 = vpop.f32.mrb[130].mxu1 }
0x31eb   : > { %v4423_v7 = vsel %vm716_vm9, %v4419_v5, -1e+09  ;;  %v5860_v8 = vpop.f32.mrb[131].mxu1 }
0x31ec   : > { %v4433_v61 = vsel %vm513_vm8, %v4423_v7, -inf }
0x31ed   : > { %4434 = vmax.xlane.f32.xlu1 %v4433_v61 }
0x31fe   : > { %4522 = vrot.lane.b32.xlu1 %v7169_v23, %s6214_s20 }
0x31ff   : > { %4473 = vrot.lane.b32.xlu0 %v7178_v18, %s6214_s20  ;;  %v4426_v9 = vpop.xlane.xlu1 %4425 }
0x3200   : > { %v4436_v63 = vsub.f32 %v4420_v51, %v4426_v9 }
0x3202   : > { %v4440_v59 = vmul.f32 1.442695, %v4436_v63 }
0x3204   : > { %6087 = vpow2.f32 %v4440_v59 }
0x320e   : > { %v6088_v57 = vpop.eup %6087 }
0x320f   : > { %v4448_v1 = vsel %vm513_vm8, %v6088_v57, 0.0 }
0x321e   : > { %4449 = vadd.xlane.f32.xlu0 %v4448_v1 }
0x3272   : > { %v4429_v17 = vpop.xlane.xlu0 %4428 }
0x3273   : > { %v4437_v12 = vsub.f32 %v4421_v43, %v4429_v17 }
0x3275   : > { %v4442_v25 = vmul.f32 1.442695, %v4437_v12 }
0x3276   : > { %v4432_v0 = vpop.xlane.xlu0 %4431 }
0x3277   : > { %6089 = vpow2.f32 %v4442_v25  ;;  %v4438_v13 = vsub.f32 %v4422_v22, %v4432_v0  ;;  %v4106_v22 = vld [vmem:[#allocation2 + $0x2d8] sm:$0xff] }
0x3278   : > { %v4685_v56 = vpack.c.bf16 %v4106_v22, %v4105_v62  ;;  %v4772_v62 = vld [vmem:[#allocation2 + $0x338] sm:$0xff] }
0x3279   : > { %v4444_v15 = vmul.f32 1.442695, %v4438_v13 }
0x327a   : > { %v4435_v20 = vpop.xlane.xlu1 %4434  ;;  %v4474_v23 = vpop.permute.xlu0 %4473 }
0x327b   : > { %6091 = vpow2.f32 %v4444_v15  ;;  %v4439_v24 = vsub.f32 %v4423_v7, %v4435_v20  ;;  %v4479_v18 = vsel %vm774_vm10, %v4474_v23, 0  ;;  %v5220_v20 = vld [vmem:[%s7373_s6 + $0x23] ss:$0 sm:$0xff] }
0x327c   : > { %5862 = vmatpush3.bf16.msra.mxu0 %v4479_v18 }
0x327d   : > { %v4446_v14 = vmul.f32 1.442695, %v4439_v24  ;;  %5873 = vmatprep.subr.bf16.mxu0 %v6209_v2 }
0x327e   : > { %v4523_v33 = vpop.permute.xlu1 %4522 }
0x327f   : > { %6093 = vpow2.f32 %v4446_v14  ;;  %v4528_v27 = vsel %vm774_vm10, %v4523_v33, 0 }
0x3280   : > { %5868 = vmatpush3.bf16.msra.mxu1 %v4528_v27 }
0x3281   : > { %v6090_v29 = vpop.eup %6089  ;;  %5879 = vmatprep.subr.bf16.mxu1 %v6209_v2 }
0x3282   : > { %v4451_v30 = vsel %vm513_vm8, %v6090_v29, 0.0 }
0x3283   : > { %4452 = vadd.xlane.f32.xlu1 %v4451_v30 }
0x3285   : > { %v6092_v31 = vpop.eup %6091 }
0x3286   : > { %v4454_v49 = vsel %vm513_vm8, %v6092_v31, 0.0 }
0x3287   : > { %4455 = vadd.xlane.f32.xlu0 %v4454_v49 }
0x3289   : > { %v6094_v21 = vpop.eup %6093 }
0x328a   : > { %v4457_v26 = vsel %vm513_vm8, %v6094_v21, 0.0 }
0x328b   : > { %4458 = vadd.xlane.f32.xlu1 %v4457_v26 }
0x329c   : > { %4571 = vrot.lane.b32.xlu1 %v7191_v28, %s6214_s20 }
0x329d   : > { %4620 = vrot.lane.b32.xlu0 %v7202_v19, %s6214_s20  ;;  %s6143_s20 = scalar_lea.vmem %s6142_s18, 256 }
0x32ab   : > { %v4450_v34 = vpop.xlane.xlu0 %4449 }
0x32ac   : > { %6095 = vrcp.f32 %v4450_v34  ;;  %v4760_v34 = vld [vmem:[#allocation2 + $0x2e0] sm:$0xff] }
0x32b6   : > { %v6096_v35 = vpop.eup %6095 }
0x32b7   : > { %v4464_v36 = vmul.f32 %v6096_v35, %v6088_v57  ;;  %v4761_v35 = vld [vmem:[#allocation2 + $0x2e8] sm:$0xff] }
0x32b9   : > { %v4468_v37 = vpack.c.bf16 %v4464_v36, %v4464_v36  ;;  %v4775_v36 = vpack.c.bf16 %v4761_v35, %v4760_v34 }
0x32bb   : > { %5864 = vmatmul.mubr.msk.bf16.vlgmr.msra.gmra.mrb[128].mxu0 %vm513_vm8, %v4468_v37  ;;  %v4762_v37 = vld [vmem:[#allocation2 + $0x2f0] sm:$0xff] }
0x32bc   : > { %5875 = vmatprep.mubr.msk.bf16.mxu0 %vm6210_vm3, %v6209_v2 }
0x3310   : > { %v4453_v38 = vpop.xlane.xlu1 %4452 }
0x3311   : > { %6097 = vrcp.f32 %v4453_v38  ;;  %v4763_v38 = vld [vmem:[#allocation2 + $0x2f8] sm:$0xff] }
0x3314   : > { %v4456_v39 = vpop.xlane.xlu0 %4455 }
0x3315   : > { %6099 = vrcp.f32 %v4456_v39  ;;  %v4776_v39 = vpack.c.bf16 %v4763_v38, %v4762_v37  ;;  %v4930_v37 = vld [vmem:[#allocation2 + $0x348] sm:$0xff] }
0x3318   : > { %v4459_v40 = vpop.xlane.xlu1 %4458  ;;  %v4621_v19 = vpop.permute.xlu0 %4620 }
0x3319   : > { %6101 = vrcp.f32 %v4459_v40  ;;  %v4626_v52 = vsel %vm774_vm10, %v4621_v19, 0  ;;  %v4765_v40 = vld [vmem:[#allocation2 + $0x300] sm:$0xff]  ;;  %v4768_v19 = vld [vmem:[#allocation2 + $0x318] sm:$0xff] }
0x331b   : > { %v6098_v28 = vpop.eup %6097 }
0x331c   : > { %v4465_v42 = vmul.f32 %v6098_v28, %v6090_v29  ;;  %v4572_v44 = vpop.permute.xlu1 %4571  ;;  %v4766_v28 = vld [vmem:[#allocation2 + $0x308] sm:$0xff] }
0x331d   : > { %v4577_v55 = vsel %vm774_vm10, %v4572_v44, 0  ;;  %v4826_v44 = vpack.c.bf16 %v4766_v28, %v4765_v40  ;;  %v4932_v40 = vld [vmem:[#allocation2 + $0x358] sm:$0xff] }
0x331e   : > { %5874 = vmatpush3.bf16.msra.mxu0 %v4577_v55  ;;  %v4469_v47 = vpack.c.bf16 %v4465_v42, %v4465_v42  ;;  %v4767_v42 = vld [vmem:[#allocation2 + $0x310] sm:$0xff] }
0x331f   : > { %v6100_v48 = vpop.eup %6099  ;;  %5885 = vmatprep.subr.bf16.mxu0 %v6209_v2  ;;  %v4827_v55 = vpack.c.bf16 %v4768_v19, %v4767_v42 }
0x3320   : > { %v4466_v51 = vmul.f32 %v6100_v48, %v6092_v31  ;;  %5870 = vmatmul.mubr.msk.bf16.vlgmr.msra.gmra.mrb[132].mxu1 %vm513_vm8, %v4469_v47 }
0x3321   : > { %5880 = vmatpush3.bf16.msra.mxu1 %v4626_v52  ;;  %5881 = vmatprep.mubr.msk.bf16.mxu1 %vm6210_vm3, %v6209_v2 }
0x3322   : > { %v4470_v53 = vpack.c.bf16 %v4466_v51, %v4466_v51  ;;  %5893 = vmatprep.subr.bf16.mxu1 %v6209_v2 }
0x3323   : > { %v6102_v54 = vpop.eup %6101 }
0x3324   : > { %v4467_v58 = vmul.f32 %v6102_v54, %v6094_v21  ;;  %5876 = vmatmul.mubr.msk.bf16.vlgmr.msra.gmra.mrb[132].mxu0 %vm513_vm8, %v4470_v53  ;;  %v5222_v53 = vld [vmem:[%s7373_s6 + $0x26] ss:$0 sm:$0xff] }
0x3325   : > { %5889 = vmatprep.mubr.msk.bf16.mxu0 %vm6210_vm3, %v6209_v2  ;;  %5886 = vmatpush3.bf16.msra.mxu0 %v4684_v10  ;;  %v4771_v10 = vld [vmem:[#allocation2 + $0x330] sm:$0xff] }
0x3326   : > { %v4471_v60 = vpack.c.bf16 %v4467_v58, %v4467_v58  ;;  %5887 = vmatprep.subr.bf16.mxu0 %v6209_v2  ;;  %v5223_v58 = vld [vmem:[%s7373_s6 + $0x27] ss:$0 sm:$0xff]  ;;  %v4829_v22 = vpack.c.bf16 %v4772_v62, %v4771_v10 }
0x3328   : > { %5882 = vmatmul.mubr.msk.bf16.vlgmr.msra.gmra.mrb[136].mxu1 %vm513_vm8, %v4471_v60 }
0x3329   : > { %5897 = vmatprep.mubr.msk.bf16.mxu1 %vm6210_vm3, %v6209_v2  ;;  %5888 = vmatpush3.bf16.msra.mxu0 %v4685_v56 }
0x332a   : > { %5901 = vmatprep.subr.bf16.mxu0 %v6209_v2  ;;  %5894 = vmatpush3.bf16.msra.mxu1 %v4775_v36  ;;  %v4929_v36 = vld [vmem:[#allocation2 + $0x340] sm:$0xff] }
0x332b   : > { %5895 = vmatprep.subr.bf16.mxu1 %v6209_v2  ;;  %v4933_v38 = vpack.c.bf16 %v4930_v37, %v4929_v36 }
0x332e   : > { %5896 = vmatpush3.bf16.msra.mxu1 %v4776_v39  ;;  %v4931_v39 = vld [vmem:[#allocation2 + $0x350] sm:$0xff] }
0x332f   : > { %5913 = vmatprep.subr.bf16.mxu1 %v6209_v2  ;;  %v4934_v28 = vpack.c.bf16 %v4932_v40, %v4931_v39 }
0x338e   : > { %v4515_v41 = vpop.f32.mrb[128].mxu0 }
0x338f   : > { %v5865_v43 = vpop.f32.mrb[129].mxu0 }
0x3390   : > { %v4518_v45 = vpop.f32.mrb[130].mxu0 }
0x3391   : > { %v5866_v50 = vpop.f32.mrb[131].mxu0 }
0x3392   : > { %v4769_v50 = vld [vmem:[#allocation2 + $0x320] sm:$0xff] }
0x3393   : > { %v4828_v32 = vpack.c.bf16 %v4770_v46, %v4769_v50 }
0x33f3   : > { %v4564_v3 = vpop.f32.mrb[132].mxu1 }
0x33f4   : > { %4669 = vrot.lane.b32.xlu1 %v4564_v3, %s7399_s29  ;;  %v5871_v4 = vpop.f32.mrb[133].mxu1 }
0x33f5   : > { %v4567_v5 = vpop.f32.mrb[134].mxu1 }
0x33f6   : > { %v5872_v11 = vpop.f32.mrb[135].mxu1 }
0x33f7   : > { %v4613_v6 = vpop.f32.mrb[132].mxu0 }
0x33f8   : > { %4673 = vrot.lane.b32.xlu0 %v4613_v6, %s7400_s9  ;;  %v5877_v7 = vpop.f32.mrb[133].mxu0 }
0x33f9   : > { %v4616_v8 = vpop.f32.mrb[134].mxu0 }
0x33fa   : > { %v5878_v61 = vpop.f32.mrb[135].mxu0  ;;  %v5226_v8 = vld [vmem:[%s7373_s6 + $0x2b] ss:$0 sm:$0xff] }
0x33fb   : > { %v4662_v9 = vpop.f32.mrb[136].mxu1 }
0x33fc   : > { %4677 = vrot.lane.b32.xlu1 %v4662_v9, %s7396_s22  ;;  %v5883_v63 = vpop.f32.mrb[137].mxu1  ;;  %s317_s22 = sand.u32 1, %s6195_s25  }
0x33fd   : > { %v4665_v59 = vpop.f32.mrb[138].mxu1  ;;  %s5105_s29 = sshll.u32 %s317_s22, 3  ;;  %s4985_s15 = scalar_lea.sflag [#allocation4], %s317_s22 }
0x33fe   : > { %v5884_v57 = vpop.f32.mrb[139].mxu1  ;;  %s319_s16 = scalar_lea.vmem [#allocation5], %s5105_s29 }
0x33ff   : > { %s4998_s17 = sshll.u32 %s319_s16, 4  ;;  %s7327_s17 = int_to_ptr.vmem [resolvable:$true] %s4998_s17 }
0x3400   : > { %s6137_s28 = scalar_lea.vmem %s7327_s17, 128  ;;  %p6144_p2 = scmp.lt.s32.totalorder %s7327_s17, %s6142_s18 }
0x3401   : > { %p6138_p6 = scmp.ne.s32.totalorder %s7327_s17, %s6137_s28  ;;  %p6145_p3 = scmp.lt.s32.totalorder %s6143_s20, %s6137_s28 }
0x3403   : > { %p6139_p10 = pnand %p6138_p6, %p7401_p9  ;;  %p6146_p4 = por %p6145_p3, %p6144_p2 }
0x3405   : > { %p6140_p12 = pneg %p6139_p10 }
0x3407   : > { %p6147_p7 = pnand %p6146_p4, %p6140_p12 }
0x3466   : > { %v4670_v1 = vpop.permute.xlu1 %4669 }
0x3467   : > { %v4680_v12 = vsel %vm513_vm8, %v4515_v41, %v4670_v1 }
0x346a   : > { %v4674_v17 = vpop.permute.xlu0 %4673 }
0x346b   : > { %v4681_v25 = vsel %vm975_vm11, %v4680_v12, %v4674_v17 }
0x346e   : > { %v4678_v0 = vpop.permute.xlu1 %4677 }
0x346f   : > { %v4682_v13 = vsel %vm977_vm12, %v4681_v25, %v4678_v0 }
0x3470   : > { %v4683_v15 = vpack.c.bf16 %v4682_v13, %v4682_v13 }
0x3472   : > { %5890 = vmatmul.mubr.msk.bf16.vlgmr.msra.gmra.mrb[136].mxu0 %vm366_vm7, %v4683_v15 }
0x3473   : > { %5909 = vmatprep.mubr.msk.bf16.mxu0 %vm6210_vm3, %v6209_v2  ;;  %5902 = vmatpush3.bf16.msra.mxu0 %v4826_v44 }
0x3474   : > { %5903 = vmatprep.subr.bf16.mxu0 %v6209_v2 }
0x3477   : > { %5904 = vmatpush3.bf16.msra.mxu0 %v4827_v55 }
0x3478   : > { %5905 = vmatprep.subr.bf16.mxu0 %v6209_v2 }
0x347b   : > { %5906 = vmatpush3.bf16.msra.mxu0 %v4828_v32 }
0x347c   : > { %5907 = vmatprep.subr.bf16.mxu0 %v6209_v2 }
0x347f   : > { %5908 = vmatpush3.bf16.msra.mxu0 %v4829_v22 }
0x3545   : > { %v4727_v23 = vpop.f32.mrb[136].mxu0 }
0x3546   : > { %v4728_v24 = vadd.f32 %v5220_v20, %v4727_v23  ;;  %v5891_v18 = vpop.f32.mrb[137].mxu0 }
0x3547   : > { %v4730_v14 = vpop.f32.mrb[138].mxu0  ;;  %v5228_v18 = vld [vmem:[%s7373_s6 + $0x28] ss:$0 sm:$0xff] }
0x3548   : > { %v4733_v33 = vadd.f32 %v4728_v24, %v7176_v16  ;;  %v5892_v27 = vpop.f32.mrb[139].mxu0 }
0x354a   : > { %v4736_v29 = vsel %vm366_vm7, %v4733_v33, 0.0 }
0x354b   : > { %4737 = vadd.xlane.f32.xlu0 %v4736_v29 }
0x35d8   : > { %v4738_v30 = vpop.xlane.xlu0 %4737 }
0x35d9   : > { %v4739_v31 = vmul.f32 0.03125, %v4738_v30 }
0x35db   : > { %v4740_v49 = vsub.f32 %v4733_v33, %v4739_v31  ;;  %v5229_v33 = vld [vmem:[%s7373_s6 + $0x29] ss:$0 sm:$0xff] }
0x35dd   : > { %v4741_v21 = vmul.f32 %v4740_v49, %v4740_v49 }
0x35df   : > { %v4742_v26 = vsel %vm366_vm7, %v4741_v21, 0.0 }
0x35e0   : > { %4743 = vadd.xlane.f32.xlu1 %v4742_v26 }
0x366d   : > { %v4744_v47 = vpop.xlane.xlu1 %4743 }
0x366e   : > { %v4745_v48 = vmul.f32 0.03125, %v4744_v47  ;;  %v5230_v47 = vld [vmem:[%s7373_s6 + $0x2c] ss:$0 sm:$0xff] }
0x3670   : > { %v4746_v51 = vadd.f32 1e-05, %v4745_v48 }
0x3672   : > { %6103 = vrsqrt.f32 %v4746_v51  ;;  %v5231_v51 = vld [vmem:[%s7373_s6 + $0x2d] ss:$0 sm:$0xff] }
0x367c   : > { %v6104_v52 = vpop.eup %6103 }
0x367d   : > { %v4748_v54 = vmul.f32 %v6104_v52, %v4740_v49 }
0x367f   : > { %v4753_v60 = vmul.f32 %v5222_v53, %v4748_v54  ;;  %v5232_v54 = vld [vmem:[%s7373_s6 + $0x2e] ss:$0 sm:$0xff] }
0x3681   : > { %v4758_v41 = vadd.f32 %v5223_v58, %v4753_v60 }
0x3683   : > { %v4759_v43 = vadd.f32 %v4758_v41, %v7176_v16  ;;  %v5224_v16 = vld [vmem:[%s7373_s6 + $0x2a] ss:$0 sm:$0xff] }
0x3685   : > { %v4774_v45 = vpack.c.bf16 %v4759_v43, %v4759_v43 }
0x3687   : > { %5898 = vmatmul.mubr.msk.bf16.vlgmr.msra.gmra.mrb[140].mxu1 %vm366_vm7, %v4774_v45 }
0x3688   : > { %5917 = vmatprep.mubr.msk.bf16.mxu1 %vm6210_vm3, %v6209_v2  ;;  %5914 = vmatpush3.bf16.msra.mxu1 %v4933_v38 }
0x3689   : > { %5915 = vmatprep.subr.bf16.mxu1 %v6209_v2 }
0x368c   : > { %5916 = vmatpush3.bf16.msra.mxu1 %v4934_v28 }
0x375a   : > { %v4818_v56 = vpop.f32.mrb[140].mxu1 }
0x375b   : > { %v4819_v3 = vadd.f32 %v5224_v16, %v4818_v56  ;;  %v5899_v4 = vpop.f32.mrb[141].mxu1 }
0x375c   : > { %v4821_v5 = vpop.f32.mrb[142].mxu1 }
0x375d   : > { %v4824_v11 = vmax.f32 %v4819_v3, 0.0  ;;  %v5900_v6 = vpop.f32.mrb[143].mxu1 }
0x375f   : > { %v4825_v7 = vpack.c.bf16 %v4824_v11, %v4824_v11 }
0x3761   : > { %5910 = vmatmul.mubr.msk.bf16.vlgmr.msra.gmra.mrb[140].mxu0 %vm1129_vm13, %v4825_v7 }
0x3834   : > { %v4871_v61 = vpop.f32.mrb[140].mxu0 }
0x3835   : > { %v4872_v9 = vadd.f32 %v5226_v8, %v4871_v61  ;;  %v5911_v63 = vpop.f32.mrb[141].mxu0 }
0x3836   : > { %v4874_v59 = vpop.f32.mrb[142].mxu0 }
0x3837   : > { %v5912_v57 = vpop.f32.mrb[143].mxu0  ;;  %v4879_v1 = vsel %vm366_vm7, %v4872_v9, 0.0 }
0x3838   : > { %4880 = vadd.xlane.f32.xlu0 %v4879_v1 }
0x38c5   : > { %v4881_v17 = vpop.xlane.xlu0 %4880 }
0x38c6   : > { %v4882_v12 = vmul.f32 0.03125, %v4881_v17 }
0x38c8   : > { %v4883_v25 = vsub.f32 %v4872_v9, %v4882_v12 }
0x38ca   : > { %v4884_v0 = vmul.f32 %v4883_v25, %v4883_v25 }
0x38cc   : > { %v4885_v13 = vsel %vm366_vm7, %v4884_v0, 0.0 }
0x38cd   : > { %4886 = vadd.xlane.f32.xlu0 %v4885_v13 }
0x395a   : > { %v4887_v15 = vpop.xlane.xlu0 %4886 }
0x395b   : > { %v4888_v20 = vmul.f32 0.03125, %v4887_v15 }
0x395d   : > { %v4889_v23 = vadd.f32 1e-05, %v4888_v20 }
0x395f   : > { %6105 = vrsqrt.f32 %v4889_v23 }
0x3969   : > { %v6106_v24 = vpop.eup %6105 }
0x396a   : > { %v4891_v14 = vmul.f32 %v6106_v24, %v4883_v25 }
0x396c   : > { %v4896_v27 = vmul.f32 %v5228_v18, %v4891_v14 }
0x396e   : > { %v4901_v29 = vadd.f32 %v5229_v33, %v4896_v27 }
0x3970   : > { %v4902_v30 = vadd.f32 %v4901_v29, %v4759_v43 }
0x3972   : > { %v4905_v31 = vsel %vm366_vm7, %v4902_v30, 0.0 }
0x3973   : > { %4906 = vadd.xlane.f32.xlu1 %v4905_v31 }
0x3a00   : > { %v4907_v49 = vpop.xlane.xlu1 %4906 }
0x3a01   : > { %v4908_v21 = vmul.f32 0.03125, %v4907_v49 }
0x3a03   : > { %v4909_v26 = vsub.f32 %v4902_v30, %v4908_v21 }
0x3a05   : > { %v4910_v34 = vmul.f32 %v4909_v26, %v4909_v26 }
0x3a07   : > { %v4911_v35 = vsel %vm366_vm7, %v4910_v34, 0.0 }
0x3a08   : > { %4912 = vadd.xlane.f32.xlu0 %v4911_v35 }
0x3a95   : > { %v4913_v42 = vpop.xlane.xlu0 %4912 }
0x3a96   : > { %v4914_v44 = vmul.f32 0.03125, %v4913_v42 }
0x3a98   : > { %v4915_v19 = vadd.f32 1e-05, %v4914_v44 }
0x3a9a   : > { %6107 = vrsqrt.f32 %v4915_v19 }
0x3aa4   : > { %v6108_v55 = vpop.eup %6107 }
0x3aa5   : > { %v4917_v48 = vmul.f32 %v6108_v55, %v4909_v26 }
0x3aa7   : > { %v4922_v52 = vmul.f32 %v5230_v47, %v4917_v48 }
0x3aa9   : > { %v4927_v53 = vadd.f32 %v5231_v51, %v4922_v52 }
0x3aab   : > { %v4928_v2 = vpack.c.bf16 %v4927_v53, %v4927_v53 }
0x3aad   : > { %5918 = vmatmul.mubr.msk.bf16.vlgmr.msra.gmra.mrb[144].mxu1 %vm366_vm7, %v4928_v2 }
0x3b80   : > { %v4977_v58 = vpop.f32.mrb[144].mxu1 }
0x3b81   : > { %v4978_v60 = vadd.f32 %v5232_v54, %v4977_v58  ;;  %v5919_v41 = vpop.f32.mrb[145].mxu1 }
0x3b82   : > { %v4980_v43 = vpop.f32.mrb[146].mxu1 }
0x3b83   : > { %4983 = vst [vmem:[%s319_s16] sm:$0xff] %v4978_v60  ;;  %v5920_v45 = vpop.f32.mrb[147].mxu1 }
0x3b84   : > { %6150 = shalt.err (!%p6147_p7)
}
0x3b85   : > { %s6151_s22 = scalar_lea.hbm %s7325_s14, 128  ;;  %s6155_s8 = scalar_lea.hbm %s7374_s7, 256 }
0x3b86   : > { %p6152_p8 = scmp.ne.s32.totalorder %s7325_s14, %s6151_s22  ;;  %p6156_p1 = scmp.lt.u32.totalorder %s7325_s14, %s7374_s7 }
0x3b87   : > { %p6157_p0 = scmp.lt.u32.totalorder %s6155_s8, %s6151_s22  ;;  %p6159_p6 = scmp.lt.u32.totalorder %s6151_s22, %s7325_s14 }
0x3b88   : > { %p6153_p11 = pnand %p6152_p8, %p7401_p9 }
0x3b89   : > { %p6158_p5 = por %p6157_p0, %p6156_p1 }
0x3b8a   : > { %p6154_p13 = pneg %p6153_p11 }
0x3b8b   : > { %p6160_p10 = por %p6159_p6, %p6158_p5 }
0x3b8d   : > { %p6161_p12 = pnand %p6160_p10, %p6154_p13 }
0x3b8f   : > { %6164 = shalt.err (!%p6161_p12)
}
0x3b90   : > { %5925 = dma.vmem_to_hbm [thread:$0]  (%p7401_p9), %s7327_s17, 128, %s7325_s14, %s4985_s15  }
0x3b91 PF: > { %p5937_p2 = scmp.ge.s32.totalorder %s6203_s27, 2  ;;  %s5010_s13 = sand.u32 1, %s6191_s24  }
0x3b92   : > { %p7402_p3 = scmp.ne.s32.totalorder %s7388_s12, 0  ;;  %s5011_s21 = scalar_lea.sflag [#allocation4], %s5010_s13 }
0x3b94   : > { %p5932_p4 = pnand %p5937_p2, %p7402_p3 }
0x3b96   : > { %6186 = dma.done.wait (!%p5932_p4), %s5011_s21, 128  }
0x3b97   : > { %6188 = vsyncadd (!%p5932_p4), %s5011_s21, 4294967168  ;;  %p18_p7 = scmp.ge.s32.totalorder %s6285_s30, 4   ;;  %s7403_s24 = smov %s6195_s25 }
0x3b98   : > { %s7404_s25 = smov %s6199_s26  ;;  %s7405_s26 = smov %s6296_s10 }
0x3b99   : > { %s7406_s27 = smov %s6285_s30  ;;  %20 = sbr.rel (!%p18_p7) target bundleno = 4 (0x4), region = 97 }
0x3ba0   :  { %5016 = vsyncpa [#allocation3], 1 }
0x3ba1   :  { %5018 = vsyncpa [#allocation3 + $0x1], 1 }
0x3ba2   :  { %5019 = vsyncpa [#allocation4], 1 }
0x3ba3   :  { %5021 = vsyncpa [#allocation4 + $0x1], 1 }

</bundles_post_ra>
